<compile_context>
chip_gen: v7x
topology: tpu7x:2x2x1
jax: 0.10.0
libtpu: 0.0.40
codegen_flags: <defaults>
</compile_context>

<pallas_src>
import math

import jax
import jax.numpy as jnp
from jax.experimental import pallas as pl
from jax.experimental.pallas import tpu as pltpu

# ---- TPU-friendly stand-ins for the module hyper-parameters -----------------
D_MODEL = 128          # module uses d_model=350; 128 keeps lanes aligned
NUM_HEADS = 2
HEAD_DIM = D_MODEL // NUM_HEADS
HIDDEN_DIM = 256       # module uses 1024
NUM_LAYERS = 2         # => num_layers-1 = 1 encoder block / 1 decoder block
SRC_VOCAB = 96
TRG_VOCAB = 128
BATCH = 2
S_SRC = 16             # source (encoder) sequence length
S_TRG = 8              # target (decoder) sequence length
LN_EPS = 1e-5          # torch nn.LayerNorm default
ATTN_SCALE = 1.0 / math.sqrt(HEAD_DIM)


# ---- packed parameter layout -------------------------------------------------
def _layout(segs):
    off, c = {}, 0
    for name, w in segs:
        off[name] = (c, w)
        c += w
    return off, c


# slab A: every weight with D_MODEL (=128) rows, concatenated along lanes (bf16)
_A_SEGS = [("enc_wqkv", 3 * D_MODEL), ("enc_wfc", D_MODEL), ("enc_w1", HIDDEN_DIM),
           ("dec_wqkv", 3 * D_MODEL), ("dec_wfc1", D_MODEL), ("dec_wq2", D_MODEL),
           ("dec_wkv2", 2 * D_MODEL), ("dec_wfc2", D_MODEL), ("dec_w1", HIDDEN_DIM),
           ("w_out", TRG_VOCAB)]
A_OFF, A_WIDTH = _layout(_A_SEGS)          # A_WIDTH = 2176 (17 * 128)

# slab B: every weight with HIDDEN_DIM (=256) rows (bf16)
_B_SEGS = [("enc_w2", D_MODEL), ("dec_w2", D_MODEL)]
B_OFF, B_WIDTH = _layout(_B_SEGS)          # B_WIDTH = 256

# vec pack: all 1-row params (biases + LayerNorm gamma/beta), one row each (f32)
_VEC_SEGS = [("enc_bqkv", 3 * D_MODEL), ("enc_bfc", D_MODEL), ("enc_b1", HIDDEN_DIM),
             ("enc_b2", D_MODEL), ("enc_ln_g", D_MODEL), ("enc_ln_b", D_MODEL),
             ("dec_bqkv", 3 * D_MODEL), ("dec_bfc1", D_MODEL), ("dec_bq2", D_MODEL),
             ("dec_bkv2", 2 * D_MODEL), ("dec_bfc2", D_MODEL), ("dec_b1", HIDDEN_DIM),
             ("dec_b2", D_MODEL), ("dec_ln_g", D_MODEL), ("dec_ln_b", D_MODEL),
             ("b_out", TRG_VOCAB)]
VEC_OFF = {name: (i, w) for i, (name, w) in enumerate(_VEC_SEGS)}
N_VEC = len(_VEC_SEGS)                     # 16 rows
VEC_WIDTH = 3 * D_MODEL                    # 384 lanes


# ---- shared math (used by BOTH the Pallas kernel and the pure-JAX reference) -
def _dot(x, w_bf16):
    """bf16 operands, f32 accumulate (MXU-native on v6e/v7x, fine on v5e)."""
    return jnp.dot(x.astype(jnp.bfloat16), w_bf16,
                   preferred_element_type=jnp.float32)


def _layer_norm(x, gamma, beta):
    mu = jnp.mean(x, axis=-1, keepdims=True)
    var = jnp.mean(jnp.square(x - mu), axis=-1, keepdims=True)   # biased, like torch
    return (x - mu) * jax.lax.rsqrt(var + LN_EPS) * gamma + beta


def _mha_heads(q, k, v, wfc, bfc, recip):
    """Multi-head attention core on per-batch 2-D tensors.

    q: (Sq, D) f32, k/v: (Sk, D) f32, wfc: (D, D) bf16, bfc: (1, D) f32.
    Heads stay as lane slices of the fused projection.  Instead of concat(heads)
    @ Wfc (lane-axis concat + full matmul) each head multiplies its own row
    block of Wfc and the partials are summed.  K is transposed once, not per
    head / per dot_general.
    """
    k_t = jnp.transpose(k)                                      # (D, Sk)
    out = None
    for h in range(NUM_HEADS):
        lo = h * HEAD_DIM
        qh = q[:, lo:lo + HEAD_DIM].astype(jnp.bfloat16)        # (Sq, HD)
        kh_t = k_t[lo:lo + HEAD_DIM, :].astype(jnp.bfloat16)    # (HD, Sk)
        vh = v[:, lo:lo + HEAD_DIM].astype(jnp.bfloat16)        # (Sk, HD)
        s = jnp.dot(qh, kh_t, preferred_element_type=jnp.float32) * ATTN_SCALE
        s = s - jnp.max(s, axis=-1, keepdims=True)
        p = jnp.exp(s)
        p = p * recip(jnp.sum(p, axis=-1, keepdims=True))
        oh = jnp.dot(p.astype(jnp.bfloat16), vh,
                     preferred_element_type=jnp.float32)        # (Sq, HD)
        part = jnp.dot(oh.astype(jnp.bfloat16), wfc[lo:lo + HEAD_DIM, :],
                       preferred_element_type=jnp.float32)      # (Sq, D)
        out = part if out is None else out + part
    return out + bfc


def _attention(q, k, v, wfc, bfc, sq, sk, recip):
    """Attention on batch-flattened rows; unrolled over the (tiny) batch."""
    outs = []
    for b in range(BATCH):
        outs.append(_mha_heads(q[b * sq:(b + 1) * sq, :],
                               k[b * sk:(b + 1) * sk, :],
                               v[b * sk:(b + 1) * sk, :],
                               wfc, bfc, recip))
    return jnp.concatenate(outs, axis=0)        # sublane-axis concat (cheap)


def _forward_math(src_x, trg_x, wa, wb, vec, recip):
    """Encoder block -> decoder block -> vocab projection on flattened rows."""
    def w_a(name):
        c, w = A_OFF[name]
        return wa[:, c:c + w]

    def w_b(name):
        c, w = B_OFF[name]
        return wb[:, c:c + w]

    def v_(name):
        r, w = VEC_OFF[name]
        return vec[r:r + 1, :w]

    # ---------------- encoder block ----------------
    qkv = _dot(src_x, w_a("enc_wqkv")) + v_("enc_bqkv")          # fused QKV
    attn = _attention(qkv[:, :D_MODEL], qkv[:, D_MODEL:2 * D_MODEL],
                      qkv[:, 2 * D_MODEL:], w_a("enc_wfc"), v_("enc_bfc"),
                      S_SRC, S_SRC, recip)
    g_e = jnp.broadcast_to(v_("enc_ln_g"), src_x.shape)          # hoisted
    b_e = jnp.broadcast_to(v_("enc_ln_b"), src_x.shape)
    n1 = _layer_norm(src_x + attn, g_e, b_e)
    hid = jnp.maximum(_dot(n1, w_a("enc_w1")) + v_("enc_b1"), 0.0)
    ffn = _dot(hid, w_b("enc_w2")) + v_("enc_b2")
    enc_out = _layer_norm(n1 + ffn, g_e, b_e)

    # ---------------- decoder block ----------------
    qkv = _dot(trg_x, w_a("dec_wqkv")) + v_("dec_bqkv")
    attn = _attention(qkv[:, :D_MODEL], qkv[:, D_MODEL:2 * D_MODEL],
                      qkv[:, 2 * D_MODEL:], w_a("dec_wfc1"), v_("dec_bfc1"),
                      S_TRG, S_TRG, recip)
    g_d = jnp.broadcast_to(v_("dec_ln_g"), trg_x.shape)
    b_d = jnp.broadcast_to(v_("dec_ln_b"), trg_x.shape)
    n1 = _layer_norm(trg_x + attn, g_d, b_d)

    # cross attention: query from RAW self-attn output (matches the PyTorch
    # DecoderBlock), key/value from the encoder output (fused K|V projection).
    q2 = _dot(attn, w_a("dec_wq2")) + v_("dec_bq2")
    kv2 = _dot(enc_out, w_a("dec_wkv2")) + v_("dec_bkv2")
    cross = _attention(q2, kv2[:, :D_MODEL], kv2[:, D_MODEL:],
                       w_a("dec_wfc2"), v_("dec_bfc2"), S_TRG, S_SRC, recip)
    n2 = _layer_norm(n1 + cross, g_d, b_d)

    hid = jnp.maximum(_dot(n2, w_a("dec_w1")) + v_("dec_b1"), 0.0)
    ffn = _dot(hid, w_b("dec_w2")) + v_("dec_b2")
    dec_out = _layer_norm(n2 + ffn, g_d, b_d)

    # ---------------- final vocab projection (lane-dense output) -------------
    return _dot(dec_out, w_a("w_out")) + v_("b_out")


# ---- Pallas kernel -----------------------------------------------------------
def _transformer_kernel(src_ref, trg_ref, wa_ref, wb_ref, vec_ref, out_ref):
    out_ref[...] = _forward_math(
        src_ref[...], trg_ref[...], wa_ref[...], wb_ref[...], vec_ref[...],
        lambda x: pl.reciprocal(x, approx=True))


def _pallas_blocks(src2d, trg2d, wa, wb, vec):
    def full(shape):
        return pl.BlockSpec(shape, lambda i, _n=len(shape): (0,) * _n)

    # Single-step grid (v5e/v6e single-TC advice): whole problem in one kernel
    # invocation, so weights are DMA'd exactly once and there is no per-step
    # pipelining overhead.  On v7x with larger B this could be re-split over B.
    return pl.pallas_call(
        _transformer_kernel,
        out_shape=jax.ShapeDtypeStruct((BATCH * S_TRG, TRG_VOCAB), jnp.float32),
        grid=(1,),
        in_specs=[full(src2d.shape), full(trg2d.shape),
                  full(wa.shape), full(wb.shape), full(vec.shape)],
        out_specs=full((BATCH * S_TRG, TRG_VOCAB)),
        compiler_params=pltpu.CompilerParams(
            dimension_semantics=("arbitrary",)),
    )(src2d, trg2d, wa, wb, vec)


# ---- host side: embedding, positional encoding, parameter packing ------------
def positional_encoding(seq_len, d_model):
    position = jnp.arange(seq_len, dtype=jnp.float32)[:, None]
    div_term = jnp.exp(jnp.arange(0, d_model, 2, dtype=jnp.float32)
                       * (-math.log(10000.0) / d_model))
    pe = jnp.zeros((seq_len, d_model), jnp.float32)
    pe = pe.at[:, 0::2].set(jnp.sin(position * div_term))
    pe = pe.at[:, 1::2].set(jnp.cos(position * div_term))
    return pe


def make_params(key):
    def lin(k, din, dout):
        kw, kb = jax.random.split(k)
        w = jax.random.normal(kw, (din, dout), jnp.float32) * 0.02
        b = jax.random.normal(kb, (dout,), jnp.float32) * 0.02
        return w, b

    ki = iter(jax.random.split(key, 32))
    weights, vecs = {}, {}

    # encoder block
    wq, bq = lin(next(ki), D_MODEL, D_MODEL)
    wk, bk = lin(next(ki), D_MODEL, D_MODEL)
    wv, bv = lin(next(ki), D_MODEL, D_MODEL)
    weights["enc_wqkv"] = jnp.concatenate([wq, wk, wv], axis=1)
    vecs["enc_bqkv"] = jnp.concatenate([bq, bk, bv], axis=0)
    weights["enc_wfc"], vecs["enc_bfc"] = lin(next(ki), D_MODEL, D_MODEL)
    weights["enc_w1"], vecs["enc_b1"] = lin(next(ki), D_MODEL, HIDDEN_DIM)
    weights["enc_w2"], vecs["enc_b2"] = lin(next(ki), HIDDEN_DIM, D_MODEL)
    vecs["enc_ln_g"] = jnp.ones((D_MODEL,), jnp.float32)    # one shared AddLayerNorm
    vecs["enc_ln_b"] = jnp.zeros((D_MODEL,), jnp.float32)   # per block (as in torch)

    # decoder block
    wq, bq = lin(next(ki), D_MODEL, D_MODEL)
    wk, bk = lin(next(ki), D_MODEL, D_MODEL)
    wv, bv = lin(next(ki), D_MODEL, D_MODEL)
    weights["dec_wqkv"] = jnp.concatenate([wq, wk, wv], axis=1)
    vecs["dec_bqkv"] = jnp.concatenate([bq, bk, bv], axis=0)
    weights["dec_wfc1"], vecs["dec_bfc1"] = lin(next(ki), D_MODEL, D_MODEL)
    weights["dec_wq2"], vecs["dec_bq2"] = lin(next(ki), D_MODEL, D_MODEL)
    wk2, bk2 = lin(next(ki), D_MODEL, D_MODEL)
    wv2, bv2 = lin(next(ki), D_MODEL, D_MODEL)
    weights["dec_wkv2"] = jnp.concatenate([wk2, wv2], axis=1)
    vecs["dec_bkv2"] = jnp.concatenate([bk2, bv2], axis=0)
    weights["dec_wfc2"], vecs["dec_bfc2"] = lin(next(ki), D_MODEL, D_MODEL)
    weights["dec_w1"], vecs["dec_b1"] = lin(next(ki), D_MODEL, HIDDEN_DIM)
    weights["dec_w2"], vecs["dec_b2"] = lin(next(ki), HIDDEN_DIM, D_MODEL)
    vecs["dec_ln_g"] = jnp.ones((D_MODEL,), jnp.float32)
    vecs["dec_ln_b"] = jnp.zeros((D_MODEL,), jnp.float32)

    # final vocab projection
    weights["w_out"], vecs["b_out"] = lin(next(ki), D_MODEL, TRG_VOCAB)

    # embedding tables
    src_emb = jax.random.normal(next(ki), (SRC_VOCAB, D_MODEL), jnp.float32) * 0.02
    trg_emb = jax.random.normal(next(ki), (TRG_VOCAB, D_MODEL), jnp.float32) * 0.02

    # pack weights / vectors into slabs
    wa = jnp.concatenate([weights[n] for n, _ in _A_SEGS], axis=1).astype(jnp.bfloat16)
    wb = jnp.concatenate([weights[n] for n, _ in _B_SEGS], axis=1).astype(jnp.bfloat16)
    vec = jnp.zeros((N_VEC, VEC_WIDTH), jnp.float32)
    for name, w in _VEC_SEGS:
        row, _ = VEC_OFF[name]
        vec = vec.at[row, :w].set(vecs[name])

    return dict(src_emb=src_emb, trg_emb=trg_emb,
                pos_src=positional_encoding(S_SRC, D_MODEL),
                pos_trg=positional_encoding(S_TRG, D_MODEL),
                wa=wa, wb=wb, vec=vec)


def _embed(params, src_tokens, trg_tokens):
    # TODO(synk): nn.Embedding gather + PositionalEncoding add stay in plain JAX
    # (data-dependent vocab lookup); all block compute runs inside the kernel.
    src = jnp.take(params["src_emb"], src_tokens, axis=0) + params["pos_src"][None]
    trg = jnp.take(params["trg_emb"], trg_tokens, axis=0) + params["pos_trg"][None]
    return (src.reshape(BATCH * S_SRC, D_MODEL),
            trg.reshape(BATCH * S_TRG, D_MODEL))


def transformer_forward(src_tokens, trg_tokens, params):
    src2d, trg2d = _embed(params, src_tokens, trg_tokens)
    logits = _pallas_blocks(src2d, trg2d, params["wa"], params["wb"], params["vec"])
    return logits.reshape(BATCH, S_TRG, TRG_VOCAB)


def ref_forward(src_tokens, trg_tokens, params):
    src2d, trg2d = _embed(params, src_tokens, trg_tokens)
    logits = _forward_math(src2d, trg2d, params["wa"], params["wb"], params["vec"],
                           lambda x: 1.0 / x)
    return logits.reshape(BATCH, S_TRG, TRG_VOCAB)


if __name__ == "__main__":
    # TODO(synk): dropout (p=0.5 / p=0.6) is stochastic in torch training mode;
    # implemented as identity (eval-mode semantics).  mask=None path only.
    key = jax.random.PRNGKey(0)
    k_src, k_trg, k_par = jax.random.split(key, 3)

    src_tokens = jax.random.randint(k_src, (BATCH, S_SRC), 0, SRC_VOCAB)
    trg_tokens = jax.random.randint(k_trg, (BATCH, S_TRG), 0, TRG_VOCAB)
    params = make_params(k_par)

    out = jax.block_until_ready(transformer_forward(src_tokens, trg_tokens, params))
    ref = jax.block_until_ready(ref_forward(src_tokens, trg_tokens, params))

    assert out.shape == (BATCH, S_TRG, TRG_VOCAB)
    assert jnp.allclose(out, ref, atol=2e-2, rtol=2e-2), "mismatch vs JAX ref"
    print("KERNEL_OK")
</pallas_src>

<mosaic_0001>
module attributes {stable_mosaic.version = 11 : i64} {
  func.func @_transformer_kernel(%arg0: i32, %arg1: memref<32x128xf32, #tpu.memory_space<vmem>>, %arg2: memref<16x128xf32, #tpu.memory_space<vmem>>, %arg3: memref<128x2176xbf16, #tpu.memory_space<vmem>>, %arg4: memref<256x256xbf16, #tpu.memory_space<vmem>>, %arg5: memref<16x384xf32, #tpu.memory_space<vmem>>, %arg6: memref<16x128xf32, #tpu.memory_space<vmem>>) attributes {dimension_semantics = [#tpu.dimension_semantics<arbitrary>], iteration_bounds = array<i64: 1>, scalar_prefetch = 0 : i64, scratch_operands = 0 : i64, tpu.core_type = #tpu.core_type<tc>, window_params = [{pipeline_mode = #tpu.pipeline_mode<synchronous>, transform_indices = @transform_0, window_bounds = array<i64: 32, 128>}, {pipeline_mode = #tpu.pipeline_mode<synchronous>, transform_indices = @transform_1, window_bounds = array<i64: 16, 128>}, {pipeline_mode = #tpu.pipeline_mode<synchronous>, transform_indices = @transform_2, window_bounds = array<i64: 128, 2176>}, {pipeline_mode = #tpu.pipeline_mode<synchronous>, transform_indices = @transform_3, window_bounds = array<i64: 256, 256>}, {pipeline_mode = #tpu.pipeline_mode<synchronous>, transform_indices = @transform_4, window_bounds = array<i64: 16, 384>}, {pipeline_mode = #tpu.pipeline_mode<synchronous>, transform_indices = @transform_5, window_bounds = array<i64: 16, 128>}]} {
    %c0 = arith.constant 0 : index
    %c0_0 = arith.constant 0 : index
    %0 = vector.load %arg1[%c0, %c0_0] : memref<32x128xf32, #tpu.memory_space<vmem>>, vector<32x128xf32>
    %c0_1 = arith.constant 0 : index
    %c0_2 = arith.constant 0 : index
    %1 = vector.load %arg2[%c0_1, %c0_2] : memref<16x128xf32, #tpu.memory_space<vmem>>, vector<16x128xf32>
    %c0_3 = arith.constant 0 : index
    %c0_4 = arith.constant 0 : index
    %2 = vector.load %arg3[%c0_3, %c0_4] : memref<128x2176xbf16, #tpu.memory_space<vmem>>, vector<128x2176xbf16>
    %c0_5 = arith.constant 0 : index
    %c0_6 = arith.constant 0 : index
    %3 = vector.load %arg4[%c0_5, %c0_6] : memref<256x256xbf16, #tpu.memory_space<vmem>>, vector<256x256xbf16>
    %c0_7 = arith.constant 0 : index
    %c0_8 = arith.constant 0 : index
    %4 = vector.load %arg5[%c0_7, %c0_8] : memref<16x384xf32, #tpu.memory_space<vmem>>, vector<16x384xf32>
    %5 = vector.extract_strided_slice %2 {offsets = [0, 0], sizes = [128, 384], strides = [1, 1]} : vector<128x2176xbf16> to vector<128x384xbf16>
    %6 = arith.truncf %0 : vector<32x128xf32> to vector<32x128xbf16>
    %cst = arith.constant dense<0.000000e+00> : vector<32x384xf32>
    %7 = tpu.matmul %6, %5, %cst {dimension_numbers = #tpu.dot_dimension_numbers<[1], [0], [0], [1], [0, 0, 1, 1], [], []>} : vector<32x128xbf16>, vector<128x384xbf16>, vector<32x384xf32> -> vector<32x384xf32>
    %8 = vector.extract_strided_slice %4 {offsets = [0, 0], sizes = [1, 384], strides = [1, 1]} : vector<16x384xf32> to vector<1x384xf32>
    %9 = vector.broadcast %8 : vector<1x384xf32> to vector<32x384xf32>
    %10 = arith.addf %7, %9 : vector<32x384xf32>
    %11 = vector.extract_strided_slice %10 {offsets = [0, 0], sizes = [32, 128], strides = [1, 1]} : vector<32x384xf32> to vector<32x128xf32>
    %12 = vector.extract_strided_slice %10 {offsets = [0, 128], sizes = [32, 128], strides = [1, 1]} : vector<32x384xf32> to vector<32x128xf32>
    %13 = vector.extract_strided_slice %10 {offsets = [0, 256], sizes = [32, 128], strides = [1, 1]} : vector<32x384xf32> to vector<32x128xf32>
    %14 = vector.extract_strided_slice %2 {offsets = [0, 384], sizes = [128, 128], strides = [1, 1]} : vector<128x2176xbf16> to vector<128x128xbf16>
    %15 = vector.extract_strided_slice %4 {offsets = [1, 0], sizes = [1, 128], strides = [1, 1]} : vector<16x384xf32> to vector<1x128xf32>
    %16 = vector.extract_strided_slice %11 {offsets = [0, 0], sizes = [16, 128], strides = [1, 1]} : vector<32x128xf32> to vector<16x128xf32>
    %17 = vector.extract_strided_slice %12 {offsets = [0, 0], sizes = [16, 128], strides = [1, 1]} : vector<32x128xf32> to vector<16x128xf32>
    %18 = vector.extract_strided_slice %13 {offsets = [0, 0], sizes = [16, 128], strides = [1, 1]} : vector<32x128xf32> to vector<16x128xf32>
    %19 = tpu.transpose %17, [1, 0] : vector<16x128xf32> -> vector<128x16xf32>
    %20 = vector.extract_strided_slice %16 {offsets = [0, 0], sizes = [16, 64], strides = [1, 1]} : vector<16x128xf32> to vector<16x64xf32>
    %21 = arith.truncf %20 : vector<16x64xf32> to vector<16x64xbf16>
    %22 = vector.extract_strided_slice %19 {offsets = [0, 0], sizes = [64, 16], strides = [1, 1]} : vector<128x16xf32> to vector<64x16xf32>
    %23 = arith.truncf %22 : vector<64x16xf32> to vector<64x16xbf16>
    %24 = vector.extract_strided_slice %18 {offsets = [0, 0], sizes = [16, 64], strides = [1, 1]} : vector<16x128xf32> to vector<16x64xf32>
    %25 = arith.truncf %24 : vector<16x64xf32> to vector<16x64xbf16>
    %cst_9 = arith.constant dense<0.000000e+00> : vector<16x16xf32>
    %26 = tpu.matmul %21, %23, %cst_9 {dimension_numbers = #tpu.dot_dimension_numbers<[1], [0], [0], [1], [0, 0, 1, 1], [], []>} : vector<16x64xbf16>, vector<64x16xbf16>, vector<16x16xf32> -> vector<16x16xf32>
    %cst_10 = arith.constant 1.250000e-01 : f32
    %27 = vector.broadcast %cst_10 : f32 to vector<16x16xf32>
    %28 = arith.mulf %26, %27 : vector<16x16xf32>
    %cst_11 = arith.constant dense<0xFF800000> : vector<16xf32>
    %29 = vector.multi_reduction <maximumf>, %28, %cst_11 [1] : vector<16x16xf32> to vector<16xf32>
    %30 = vector.shape_cast %29 : vector<16xf32> to vector<16x1xf32>
    %31 = vector.broadcast %30 : vector<16x1xf32> to vector<16x16xf32>
    %32 = arith.subf %28, %31 : vector<16x16xf32>
    %33 = math.exp %32 : vector<16x16xf32>
    %cst_12 = arith.constant dense<0.000000e+00> : vector<16xf32>
    %34 = vector.multi_reduction <add>, %33, %cst_12 [1] : vector<16x16xf32> to vector<16xf32>
    %35 = vector.shape_cast %34 : vector<16xf32> to vector<16x1xf32>
    %36 = tpu.reciprocal %35 {approx = true} : vector<16x1xf32> -> vector<16x1xf32>
    %37 = vector.broadcast %36 : vector<16x1xf32> to vector<16x16xf32>
    %38 = arith.mulf %33, %37 : vector<16x16xf32>
    %39 = arith.truncf %38 : vector<16x16xf32> to vector<16x16xbf16>
    %cst_13 = arith.constant dense<0.000000e+00> : vector<16x64xf32>
    %40 = tpu.matmul %39, %25, %cst_13 {dimension_numbers = #tpu.dot_dimension_numbers<[1], [0], [0], [1], [0, 0, 1, 1], [], []>} : vector<16x16xbf16>, vector<16x64xbf16>, vector<16x64xf32> -> vector<16x64xf32>
    %41 = arith.truncf %40 : vector<16x64xf32> to vector<16x64xbf16>
    %42 = vector.extract_strided_slice %14 {offsets = [0, 0], sizes = [64, 128], strides = [1, 1]} : vector<128x128xbf16> to vector<64x128xbf16>
    %cst_14 = arith.constant dense<0.000000e+00> : vector<16x128xf32>
    %43 = tpu.matmul %41, %42, %cst_14 {dimension_numbers = #tpu.dot_dimension_numbers<[1], [0], [0], [1], [0, 0, 1, 1], [], []>} : vector<16x64xbf16>, vector<64x128xbf16>, vector<16x128xf32> -> vector<16x128xf32>
    %44 = vector.extract_strided_slice %16 {offsets = [0, 64], sizes = [16, 64], strides = [1, 1]} : vector<16x128xf32> to vector<16x64xf32>
    %45 = arith.truncf %44 : vector<16x64xf32> to vector<16x64xbf16>
    %46 = vector.extract_strided_slice %19 {offsets = [64, 0], sizes = [64, 16], strides = [1, 1]} : vector<128x16xf32> to vector<64x16xf32>
    %47 = arith.truncf %46 : vector<64x16xf32> to vector<64x16xbf16>
    %48 = vector.extract_strided_slice %18 {offsets = [0, 64], sizes = [16, 64], strides = [1, 1]} : vector<16x128xf32> to vector<16x64xf32>
    %49 = arith.truncf %48 : vector<16x64xf32> to vector<16x64xbf16>
    %cst_15 = arith.constant dense<0.000000e+00> : vector<16x16xf32>
    %50 = tpu.matmul %45, %47, %cst_15 {dimension_numbers = #tpu.dot_dimension_numbers<[1], [0], [0], [1], [0, 0, 1, 1], [], []>} : vector<16x64xbf16>, vector<64x16xbf16>, vector<16x16xf32> -> vector<16x16xf32>
    %cst_16 = arith.constant 1.250000e-01 : f32
    %51 = vector.broadcast %cst_16 : f32 to vector<16x16xf32>
    %52 = arith.mulf %50, %51 : vector<16x16xf32>
    %cst_17 = arith.constant dense<0xFF800000> : vector<16xf32>
    %53 = vector.multi_reduction <maximumf>, %52, %cst_17 [1] : vector<16x16xf32> to vector<16xf32>
    %54 = vector.shape_cast %53 : vector<16xf32> to vector<16x1xf32>
    %55 = vector.broadcast %54 : vector<16x1xf32> to vector<16x16xf32>
    %56 = arith.subf %52, %55 : vector<16x16xf32>
    %57 = math.exp %56 : vector<16x16xf32>
    %cst_18 = arith.constant dense<0.000000e+00> : vector<16xf32>
    %58 = vector.multi_reduction <add>, %57, %cst_18 [1] : vector<16x16xf32> to vector<16xf32>
    %59 = vector.shape_cast %58 : vector<16xf32> to vector<16x1xf32>
    %60 = tpu.reciprocal %59 {approx = true} : vector<16x1xf32> -> vector<16x1xf32>
    %61 = vector.broadcast %60 : vector<16x1xf32> to vector<16x16xf32>
    %62 = arith.mulf %57, %61 : vector<16x16xf32>
    %63 = arith.truncf %62 : vector<16x16xf32> to vector<16x16xbf16>
    %cst_19 = arith.constant dense<0.000000e+00> : vector<16x64xf32>
    %64 = tpu.matmul %63, %49, %cst_19 {dimension_numbers = #tpu.dot_dimension_numbers<[1], [0], [0], [1], [0, 0, 1, 1], [], []>} : vector<16x16xbf16>, vector<16x64xbf16>, vector<16x64xf32> -> vector<16x64xf32>
    %65 = arith.truncf %64 : vector<16x64xf32> to vector<16x64xbf16>
    %66 = vector.extract_strided_slice %14 {offsets = [64, 0], sizes = [64, 128], strides = [1, 1]} : vector<128x128xbf16> to vector<64x128xbf16>
    %cst_20 = arith.constant dense<0.000000e+00> : vector<16x128xf32>
    %67 = tpu.matmul %65, %66, %cst_20 {dimension_numbers = #tpu.dot_dimension_numbers<[1], [0], [0], [1], [0, 0, 1, 1], [], []>} : vector<16x64xbf16>, vector<64x128xbf16>, vector<16x128xf32> -> vector<16x128xf32>
    %68 = arith.addf %43, %67 : vector<16x128xf32>
    %69 = vector.broadcast %15 : vector<1x128xf32> to vector<16x128xf32>
    %70 = arith.addf %68, %69 : vector<16x128xf32>
    %71 = vector.extract_strided_slice %11 {offsets = [16, 0], sizes = [16, 128], strides = [1, 1]} : vector<32x128xf32> to vector<16x128xf32>
    %72 = vector.extract_strided_slice %12 {offsets = [16, 0], sizes = [16, 128], strides = [1, 1]} : vector<32x128xf32> to vector<16x128xf32>
    %73 = vector.extract_strided_slice %13 {offsets = [16, 0], sizes = [16, 128], strides = [1, 1]} : vector<32x128xf32> to vector<16x128xf32>
    %74 = tpu.transpose %72, [1, 0] : vector<16x128xf32> -> vector<128x16xf32>
    %75 = vector.extract_strided_slice %71 {offsets = [0, 0], sizes = [16, 64], strides = [1, 1]} : vector<16x128xf32> to vector<16x64xf32>
    %76 = arith.truncf %75 : vector<16x64xf32> to vector<16x64xbf16>
    %77 = vector.extract_strided_slice %74 {offsets = [0, 0], sizes = [64, 16], strides = [1, 1]} : vector<128x16xf32> to vector<64x16xf32>
    %78 = arith.truncf %77 : vector<64x16xf32> to vector<64x16xbf16>
    %79 = vector.extract_strided_slice %73 {offsets = [0, 0], sizes = [16, 64], strides = [1, 1]} : vector<16x128xf32> to vector<16x64xf32>
    %80 = arith.truncf %79 : vector<16x64xf32> to vector<16x64xbf16>
    %cst_21 = arith.constant dense<0.000000e+00> : vector<16x16xf32>
    %81 = tpu.matmul %76, %78, %cst_21 {dimension_numbers = #tpu.dot_dimension_numbers<[1], [0], [0], [1], [0, 0, 1, 1], [], []>} : vector<16x64xbf16>, vector<64x16xbf16>, vector<16x16xf32> -> vector<16x16xf32>
    %cst_22 = arith.constant 1.250000e-01 : f32
    %82 = vector.broadcast %cst_22 : f32 to vector<16x16xf32>
    %83 = arith.mulf %81, %82 : vector<16x16xf32>
    %cst_23 = arith.constant dense<0xFF800000> : vector<16xf32>
    %84 = vector.multi_reduction <maximumf>, %83, %cst_23 [1] : vector<16x16xf32> to vector<16xf32>
    %85 = vector.shape_cast %84 : vector<16xf32> to vector<16x1xf32>
    %86 = vector.broadcast %85 : vector<16x1xf32> to vector<16x16xf32>
    %87 = arith.subf %83, %86 : vector<16x16xf32>
    %88 = math.exp %87 : vector<16x16xf32>
    %cst_24 = arith.constant dense<0.000000e+00> : vector<16xf32>
    %89 = vector.multi_reduction <add>, %88, %cst_24 [1] : vector<16x16xf32> to vector<16xf32>
    %90 = vector.shape_cast %89 : vector<16xf32> to vector<16x1xf32>
    %91 = tpu.reciprocal %90 {approx = true} : vector<16x1xf32> -> vector<16x1xf32>
    %92 = vector.broadcast %91 : vector<16x1xf32> to vector<16x16xf32>
    %93 = arith.mulf %88, %92 : vector<16x16xf32>
    %94 = arith.truncf %93 : vector<16x16xf32> to vector<16x16xbf16>
    %cst_25 = arith.constant dense<0.000000e+00> : vector<16x64xf32>
    %95 = tpu.matmul %94, %80, %cst_25 {dimension_numbers = #tpu.dot_dimension_numbers<[1], [0], [0], [1], [0, 0, 1, 1], [], []>} : vector<16x16xbf16>, vector<16x64xbf16>, vector<16x64xf32> -> vector<16x64xf32>
    %96 = arith.truncf %95 : vector<16x64xf32> to vector<16x64xbf16>
    %97 = vector.extract_strided_slice %14 {offsets = [0, 0], sizes = [64, 128], strides = [1, 1]} : vector<128x128xbf16> to vector<64x128xbf16>
    %cst_26 = arith.constant dense<0.000000e+00> : vector<16x128xf32>
    %98 = tpu.matmul %96, %97, %cst_26 {dimension_numbers = #tpu.dot_dimension_numbers<[1], [0], [0], [1], [0, 0, 1, 1], [], []>} : vector<16x64xbf16>, vector<64x128xbf16>, vector<16x128xf32> -> vector<16x128xf32>
    %99 = vector.extract_strided_slice %71 {offsets = [0, 64], sizes = [16, 64], strides = [1, 1]} : vector<16x128xf32> to vector<16x64xf32>
    %100 = arith.truncf %99 : vector<16x64xf32> to vector<16x64xbf16>
    %101 = vector.extract_strided_slice %74 {offsets = [64, 0], sizes = [64, 16], strides = [1, 1]} : vector<128x16xf32> to vector<64x16xf32>
    %102 = arith.truncf %101 : vector<64x16xf32> to vector<64x16xbf16>
    %103 = vector.extract_strided_slice %73 {offsets = [0, 64], sizes = [16, 64], strides = [1, 1]} : vector<16x128xf32> to vector<16x64xf32>
    %104 = arith.truncf %103 : vector<16x64xf32> to vector<16x64xbf16>
    %cst_27 = arith.constant dense<0.000000e+00> : vector<16x16xf32>
    %105 = tpu.matmul %100, %102, %cst_27 {dimension_numbers = #tpu.dot_dimension_numbers<[1], [0], [0], [1], [0, 0, 1, 1], [], []>} : vector<16x64xbf16>, vector<64x16xbf16>, vector<16x16xf32> -> vector<16x16xf32>
    %cst_28 = arith.constant 1.250000e-01 : f32
    %106 = vector.broadcast %cst_28 : f32 to vector<16x16xf32>
    %107 = arith.mulf %105, %106 : vector<16x16xf32>
    %cst_29 = arith.constant dense<0xFF800000> : vector<16xf32>
    %108 = vector.multi_reduction <maximumf>, %107, %cst_29 [1] : vector<16x16xf32> to vector<16xf32>
    %109 = vector.shape_cast %108 : vector<16xf32> to vector<16x1xf32>
    %110 = vector.broadcast %109 : vector<16x1xf32> to vector<16x16xf32>
    %111 = arith.subf %107, %110 : vector<16x16xf32>
    %112 = math.exp %111 : vector<16x16xf32>
    %cst_30 = arith.constant dense<0.000000e+00> : vector<16xf32>
    %113 = vector.multi_reduction <add>, %112, %cst_30 [1] : vector<16x16xf32> to vector<16xf32>
    %114 = vector.shape_cast %113 : vector<16xf32> to vector<16x1xf32>
    %115 = tpu.reciprocal %114 {approx = true} : vector<16x1xf32> -> vector<16x1xf32>
    %116 = vector.broadcast %115 : vector<16x1xf32> to vector<16x16xf32>
    %117 = arith.mulf %112, %116 : vector<16x16xf32>
    %118 = arith.truncf %117 : vector<16x16xf32> to vector<16x16xbf16>
    %cst_31 = arith.constant dense<0.000000e+00> : vector<16x64xf32>
    %119 = tpu.matmul %118, %104, %cst_31 {dimension_numbers = #tpu.dot_dimension_numbers<[1], [0], [0], [1], [0, 0, 1, 1], [], []>} : vector<16x16xbf16>, vector<16x64xbf16>, vector<16x64xf32> -> vector<16x64xf32>
    %120 = arith.truncf %119 : vector<16x64xf32> to vector<16x64xbf16>
    %121 = vector.extract_strided_slice %14 {offsets = [64, 0], sizes = [64, 128], strides = [1, 1]} : vector<128x128xbf16> to vector<64x128xbf16>
    %cst_32 = arith.constant dense<0.000000e+00> : vector<16x128xf32>
    %122 = tpu.matmul %120, %121, %cst_32 {dimension_numbers = #tpu.dot_dimension_numbers<[1], [0], [0], [1], [0, 0, 1, 1], [], []>} : vector<16x64xbf16>, vector<64x128xbf16>, vector<16x128xf32> -> vector<16x128xf32>
    %123 = arith.addf %98, %122 : vector<16x128xf32>
    %124 = vector.broadcast %15 : vector<1x128xf32> to vector<16x128xf32>
    %125 = arith.addf %123, %124 : vector<16x128xf32>
    %126 = tpu.concatenate %70, %125 in 0 : vector<16x128xf32>, vector<16x128xf32> -> vector<32x128xf32>
    %127 = vector.extract_strided_slice %4 {offsets = [4, 0], sizes = [1, 128], strides = [1, 1]} : vector<16x384xf32> to vector<1x128xf32>
    %128 = vector.shape_cast %127 : vector<1x128xf32> to vector<1x128xf32>
    %129 = vector.broadcast %128 : vector<1x128xf32> to vector<32x128xf32>
    %130 = vector.extract_strided_slice %4 {offsets = [5, 0], sizes = [1, 128], strides = [1, 1]} : vector<16x384xf32> to vector<1x128xf32>
    %131 = vector.shape_cast %130 : vector<1x128xf32> to vector<1x128xf32>
    %132 = vector.broadcast %131 : vector<1x128xf32> to vector<32x128xf32>
    %133 = arith.addf %0, %126 : vector<32x128xf32>
    %cst_33 = arith.constant dense<0.000000e+00> : vector<32xf32>
    %134 = vector.multi_reduction <add>, %133, %cst_33 [1] : vector<32x128xf32> to vector<32xf32>
    %135 = vector.shape_cast %134 : vector<32xf32> to vector<32x1xf32>
    %cst_34 = arith.constant 1.280000e+02 : f32
    %136 = vector.broadcast %cst_34 : f32 to vector<32x1xf32>
    %137 = arith.divf %135, %136 : vector<32x1xf32>
    %138 = vector.broadcast %137 : vector<32x1xf32> to vector<32x128xf32>
    %139 = arith.subf %133, %138 : vector<32x128xf32>
    %140 = arith.mulf %139, %139 : vector<32x128xf32>
    %cst_35 = arith.constant dense<0.000000e+00> : vector<32xf32>
    %141 = vector.multi_reduction <add>, %140, %cst_35 [1] : vector<32x128xf32> to vector<32xf32>
    %142 = vector.shape_cast %141 : vector<32xf32> to vector<32x1xf32>
    %cst_36 = arith.constant 1.280000e+02 : f32
    %143 = vector.broadcast %cst_36 : f32 to vector<32x1xf32>
    %144 = arith.divf %142, %143 : vector<32x1xf32>
    %145 = vector.broadcast %137 : vector<32x1xf32> to vector<32x128xf32>
    %146 = arith.subf %133, %145 : vector<32x128xf32>
    %cst_37 = arith.constant 9.99999974E-6 : f32
    %147 = vector.broadcast %cst_37 : f32 to vector<32x1xf32>
    %148 = arith.addf %144, %147 : vector<32x1xf32>
    %149 = math.rsqrt %148 : vector<32x1xf32>
    %150 = vector.broadcast %149 : vector<32x1xf32> to vector<32x128xf32>
    %151 = arith.mulf %146, %150 : vector<32x128xf32>
    %152 = arith.mulf %151, %129 : vector<32x128xf32>
    %153 = arith.addf %152, %132 : vector<32x128xf32>
    %154 = vector.extract_strided_slice %2 {offsets = [0, 512], sizes = [128, 256], strides = [1, 1]} : vector<128x2176xbf16> to vector<128x256xbf16>
    %155 = arith.truncf %153 : vector<32x128xf32> to vector<32x128xbf16>
    %cst_38 = arith.constant dense<0.000000e+00> : vector<32x256xf32>
    %156 = tpu.matmul %155, %154, %cst_38 {dimension_numbers = #tpu.dot_dimension_numbers<[1], [0], [0], [1], [0, 0, 1, 1], [], []>} : vector<32x128xbf16>, vector<128x256xbf16>, vector<32x256xf32> -> vector<32x256xf32>
    %157 = vector.extract_strided_slice %4 {offsets = [2, 0], sizes = [1, 256], strides = [1, 1]} : vector<16x384xf32> to vector<1x256xf32>
    %158 = vector.broadcast %157 : vector<1x256xf32> to vector<32x256xf32>
    %159 = arith.addf %156, %158 : vector<32x256xf32>
    %cst_39 = arith.constant 0.000000e+00 : f32
    %160 = vector.broadcast %cst_39 : f32 to vector<32x256xf32>
    %161 = arith.maximumf %159, %160 : vector<32x256xf32>
    %162 = vector.extract_strided_slice %3 {offsets = [0, 0], sizes = [256, 128], strides = [1, 1]} : vector<256x256xbf16> to vector<256x128xbf16>
    %163 = arith.truncf %161 : vector<32x256xf32> to vector<32x256xbf16>
    %cst_40 = arith.constant dense<0.000000e+00> : vector<32x128xf32>
    %164 = tpu.matmul %163, %162, %cst_40 {dimension_numbers = #tpu.dot_dimension_numbers<[1], [0], [0], [1], [0, 0, 1, 1], [], []>} : vector<32x256xbf16>, vector<256x128xbf16>, vector<32x128xf32> -> vector<32x128xf32>
    %165 = vector.extract_strided_slice %4 {offsets = [3, 0], sizes = [1, 128], strides = [1, 1]} : vector<16x384xf32> to vector<1x128xf32>
    %166 = vector.broadcast %165 : vector<1x128xf32> to vector<32x128xf32>
    %167 = arith.addf %164, %166 : vector<32x128xf32>
    %168 = arith.addf %153, %167 : vector<32x128xf32>
    %cst_41 = arith.constant dense<0.000000e+00> : vector<32xf32>
    %169 = vector.multi_reduction <add>, %168, %cst_41 [1] : vector<32x128xf32> to vector<32xf32>
    %170 = vector.shape_cast %169 : vector<32xf32> to vector<32x1xf32>
    %cst_42 = arith.constant 1.280000e+02 : f32
    %171 = vector.broadcast %cst_42 : f32 to vector<32x1xf32>
    %172 = arith.divf %170, %171 : vector<32x1xf32>
    %173 = vector.broadcast %172 : vector<32x1xf32> to vector<32x128xf32>
    %174 = arith.subf %168, %173 : vector<32x128xf32>
    %175 = arith.mulf %174, %174 : vector<32x128xf32>
    %cst_43 = arith.constant dense<0.000000e+00> : vector<32xf32>
    %176 = vector.multi_reduction <add>, %175, %cst_43 [1] : vector<32x128xf32> to vector<32xf32>
    %177 = vector.shape_cast %176 : vector<32xf32> to vector<32x1xf32>
    %cst_44 = arith.constant 1.280000e+02 : f32
    %178 = vector.broadcast %cst_44 : f32 to vector<32x1xf32>
    %179 = arith.divf %177, %178 : vector<32x1xf32>
    %180 = vector.broadcast %172 : vector<32x1xf32> to vector<32x128xf32>
    %181 = arith.subf %168, %180 : vector<32x128xf32>
    %cst_45 = arith.constant 9.99999974E-6 : f32
    %182 = vector.broadcast %cst_45 : f32 to vector<32x1xf32>
    %183 = arith.addf %179, %182 : vector<32x1xf32>
    %184 = math.rsqrt %183 : vector<32x1xf32>
    %185 = vector.broadcast %184 : vector<32x1xf32> to vector<32x128xf32>
    %186 = arith.mulf %181, %185 : vector<32x128xf32>
    %187 = arith.mulf %186, %129 : vector<32x128xf32>
    %188 = arith.addf %187, %132 : vector<32x128xf32>
    %189 = vector.extract_strided_slice %2 {offsets = [0, 768], sizes = [128, 384], strides = [1, 1]} : vector<128x2176xbf16> to vector<128x384xbf16>
    %190 = arith.truncf %1 : vector<16x128xf32> to vector<16x128xbf16>
    %cst_46 = arith.constant dense<0.000000e+00> : vector<16x384xf32>
    %191 = tpu.matmul %190, %189, %cst_46 {dimension_numbers = #tpu.dot_dimension_numbers<[1], [0], [0], [1], [0, 0, 1, 1], [], []>} : vector<16x128xbf16>, vector<128x384xbf16>, vector<16x384xf32> -> vector<16x384xf32>
    %192 = vector.extract_strided_slice %4 {offsets = [6, 0], sizes = [1, 384], strides = [1, 1]} : vector<16x384xf32> to vector<1x384xf32>
    %193 = vector.broadcast %192 : vector<1x384xf32> to vector<16x384xf32>
    %194 = arith.addf %191, %193 : vector<16x384xf32>
    %195 = vector.extract_strided_slice %194 {offsets = [0, 0], sizes = [16, 128], strides = [1, 1]} : vector<16x384xf32> to vector<16x128xf32>
    %196 = vector.extract_strided_slice %194 {offsets = [0, 128], sizes = [16, 128], strides = [1, 1]} : vector<16x384xf32> to vector<16x128xf32>
    %197 = vector.extract_strided_slice %194 {offsets = [0, 256], sizes = [16, 128], strides = [1, 1]} : vector<16x384xf32> to vector<16x128xf32>
    %198 = vector.extract_strided_slice %2 {offsets = [0, 1152], sizes = [128, 128], strides = [1, 1]} : vector<128x2176xbf16> to vector<128x128xbf16>
    %199 = vector.extract_strided_slice %4 {offsets = [7, 0], sizes = [1, 128], strides = [1, 1]} : vector<16x384xf32> to vector<1x128xf32>
    %200 = vector.extract_strided_slice %195 {offsets = [0, 0], sizes = [8, 128], strides = [1, 1]} : vector<16x128xf32> to vector<8x128xf32>
    %201 = vector.extract_strided_slice %196 {offsets = [0, 0], sizes = [8, 128], strides = [1, 1]} : vector<16x128xf32> to vector<8x128xf32>
    %202 = vector.extract_strided_slice %197 {offsets = [0, 0], sizes = [8, 128], strides = [1, 1]} : vector<16x128xf32> to vector<8x128xf32>
    %203 = tpu.transpose %201, [1, 0] : vector<8x128xf32> -> vector<128x8xf32>
    %204 = vector.extract_strided_slice %200 {offsets = [0, 0], sizes = [8, 64], strides = [1, 1]} : vector<8x128xf32> to vector<8x64xf32>
    %205 = arith.truncf %204 : vector<8x64xf32> to vector<8x64xbf16>
    %206 = vector.extract_strided_slice %203 {offsets = [0, 0], sizes = [64, 8], strides = [1, 1]} : vector<128x8xf32> to vector<64x8xf32>
    %207 = arith.truncf %206 : vector<64x8xf32> to vector<64x8xbf16>
    %208 = vector.extract_strided_slice %202 {offsets = [0, 0], sizes = [8, 64], strides = [1, 1]} : vector<8x128xf32> to vector<8x64xf32>
    %209 = arith.truncf %208 : vector<8x64xf32> to vector<8x64xbf16>
    %cst_47 = arith.constant dense<0.000000e+00> : vector<8x8xf32>
    %210 = tpu.matmul %205, %207, %cst_47 {dimension_numbers = #tpu.dot_dimension_numbers<[1], [0], [0], [1], [0, 0, 1, 1], [], []>} : vector<8x64xbf16>, vector<64x8xbf16>, vector<8x8xf32> -> vector<8x8xf32>
    %cst_48 = arith.constant 1.250000e-01 : f32
    %211 = vector.broadcast %cst_48 : f32 to vector<8x8xf32>
    %212 = arith.mulf %210, %211 : vector<8x8xf32>
    %cst_49 = arith.constant dense<0xFF800000> : vector<8xf32>
    %213 = vector.multi_reduction <maximumf>, %212, %cst_49 [1] : vector<8x8xf32> to vector<8xf32>
    %214 = vector.shape_cast %213 : vector<8xf32> to vector<8x1xf32>
    %215 = vector.broadcast %214 : vector<8x1xf32> to vector<8x8xf32>
    %216 = arith.subf %212, %215 : vector<8x8xf32>
    %217 = math.exp %216 : vector<8x8xf32>
    %cst_50 = arith.constant dense<0.000000e+00> : vector<8xf32>
    %218 = vector.multi_reduction <add>, %217, %cst_50 [1] : vector<8x8xf32> to vector<8xf32>
    %219 = vector.shape_cast %218 : vector<8xf32> to vector<8x1xf32>
    %220 = tpu.reciprocal %219 {approx = true} : vector<8x1xf32> -> vector<8x1xf32>
    %221 = vector.broadcast %220 : vector<8x1xf32> to vector<8x8xf32>
    %222 = arith.mulf %217, %221 : vector<8x8xf32>
    %223 = arith.truncf %222 : vector<8x8xf32> to vector<8x8xbf16>
    %cst_51 = arith.constant dense<0.000000e+00> : vector<8x64xf32>
    %224 = tpu.matmul %223, %209, %cst_51 {dimension_numbers = #tpu.dot_dimension_numbers<[1], [0], [0], [1], [0, 0, 1, 1], [], []>} : vector<8x8xbf16>, vector<8x64xbf16>, vector<8x64xf32> -> vector<8x64xf32>
    %225 = arith.truncf %224 : vector<8x64xf32> to vector<8x64xbf16>
    %226 = vector.extract_strided_slice %198 {offsets = [0, 0], sizes = [64, 128], strides = [1, 1]} : vector<128x128xbf16> to vector<64x128xbf16>
    %cst_52 = arith.constant dense<0.000000e+00> : vector<8x128xf32>
    %227 = tpu.matmul %225, %226, %cst_52 {dimension_numbers = #tpu.dot_dimension_numbers<[1], [0], [0], [1], [0, 0, 1, 1], [], []>} : vector<8x64xbf16>, vector<64x128xbf16>, vector<8x128xf32> -> vector<8x128xf32>
    %228 = vector.extract_strided_slice %200 {offsets = [0, 64], sizes = [8, 64], strides = [1, 1]} : vector<8x128xf32> to vector<8x64xf32>
    %229 = arith.truncf %228 : vector<8x64xf32> to vector<8x64xbf16>
    %230 = vector.extract_strided_slice %203 {offsets = [64, 0], sizes = [64, 8], strides = [1, 1]} : vector<128x8xf32> to vector<64x8xf32>
    %231 = arith.truncf %230 : vector<64x8xf32> to vector<64x8xbf16>
    %232 = vector.extract_strided_slice %202 {offsets = [0, 64], sizes = [8, 64], strides = [1, 1]} : vector<8x128xf32> to vector<8x64xf32>
    %233 = arith.truncf %232 : vector<8x64xf32> to vector<8x64xbf16>
    %cst_53 = arith.constant dense<0.000000e+00> : vector<8x8xf32>
    %234 = tpu.matmul %229, %231, %cst_53 {dimension_numbers = #tpu.dot_dimension_numbers<[1], [0], [0], [1], [0, 0, 1, 1], [], []>} : vector<8x64xbf16>, vector<64x8xbf16>, vector<8x8xf32> -> vector<8x8xf32>
    %cst_54 = arith.constant 1.250000e-01 : f32
    %235 = vector.broadcast %cst_54 : f32 to vector<8x8xf32>
    %236 = arith.mulf %234, %235 : vector<8x8xf32>
    %cst_55 = arith.constant dense<0xFF800000> : vector<8xf32>
    %237 = vector.multi_reduction <maximumf>, %236, %cst_55 [1] : vector<8x8xf32> to vector<8xf32>
    %238 = vector.shape_cast %237 : vector<8xf32> to vector<8x1xf32>
    %239 = vector.broadcast %238 : vector<8x1xf32> to vector<8x8xf32>
    %240 = arith.subf %236, %239 : vector<8x8xf32>
    %241 = math.exp %240 : vector<8x8xf32>
    %cst_56 = arith.constant dense<0.000000e+00> : vector<8xf32>
    %242 = vector.multi_reduction <add>, %241, %cst_56 [1] : vector<8x8xf32> to vector<8xf32>
    %243 = vector.shape_cast %242 : vector<8xf32> to vector<8x1xf32>
    %244 = tpu.reciprocal %243 {approx = true} : vector<8x1xf32> -> vector<8x1xf32>
    %245 = vector.broadcast %244 : vector<8x1xf32> to vector<8x8xf32>
    %246 = arith.mulf %241, %245 : vector<8x8xf32>
    %247 = arith.truncf %246 : vector<8x8xf32> to vector<8x8xbf16>
    %cst_57 = arith.constant dense<0.000000e+00> : vector<8x64xf32>
    %248 = tpu.matmul %247, %233, %cst_57 {dimension_numbers = #tpu.dot_dimension_numbers<[1], [0], [0], [1], [0, 0, 1, 1], [], []>} : vector<8x8xbf16>, vector<8x64xbf16>, vector<8x64xf32> -> vector<8x64xf32>
    %249 = arith.truncf %248 : vector<8x64xf32> to vector<8x64xbf16>
    %250 = vector.extract_strided_slice %198 {offsets = [64, 0], sizes = [64, 128], strides = [1, 1]} : vector<128x128xbf16> to vector<64x128xbf16>
    %cst_58 = arith.constant dense<0.000000e+00> : vector<8x128xf32>
    %251 = tpu.matmul %249, %250, %cst_58 {dimension_numbers = #tpu.dot_dimension_numbers<[1], [0], [0], [1], [0, 0, 1, 1], [], []>} : vector<8x64xbf16>, vector<64x128xbf16>, vector<8x128xf32> -> vector<8x128xf32>
    %252 = arith.addf %227, %251 : vector<8x128xf32>
    %253 = vector.broadcast %199 : vector<1x128xf32> to vector<8x128xf32>
    %254 = arith.addf %252, %253 : vector<8x128xf32>
    %255 = vector.extract_strided_slice %195 {offsets = [8, 0], sizes = [8, 128], strides = [1, 1]} : vector<16x128xf32> to vector<8x128xf32>
    %256 = vector.extract_strided_slice %196 {offsets = [8, 0], sizes = [8, 128], strides = [1, 1]} : vector<16x128xf32> to vector<8x128xf32>
    %257 = vector.extract_strided_slice %197 {offsets = [8, 0], sizes = [8, 128], strides = [1, 1]} : vector<16x128xf32> to vector<8x128xf32>
    %258 = tpu.transpose %256, [1, 0] : vector<8x128xf32> -> vector<128x8xf32>
    %259 = vector.extract_strided_slice %255 {offsets = [0, 0], sizes = [8, 64], strides = [1, 1]} : vector<8x128xf32> to vector<8x64xf32>
    %260 = arith.truncf %259 : vector<8x64xf32> to vector<8x64xbf16>
    %261 = vector.extract_strided_slice %258 {offsets = [0, 0], sizes = [64, 8], strides = [1, 1]} : vector<128x8xf32> to vector<64x8xf32>
    %262 = arith.truncf %261 : vector<64x8xf32> to vector<64x8xbf16>
    %263 = vector.extract_strided_slice %257 {offsets = [0, 0], sizes = [8, 64], strides = [1, 1]} : vector<8x128xf32> to vector<8x64xf32>
    %264 = arith.truncf %263 : vector<8x64xf32> to vector<8x64xbf16>
    %cst_59 = arith.constant dense<0.000000e+00> : vector<8x8xf32>
    %265 = tpu.matmul %260, %262, %cst_59 {dimension_numbers = #tpu.dot_dimension_numbers<[1], [0], [0], [1], [0, 0, 1, 1], [], []>} : vector<8x64xbf16>, vector<64x8xbf16>, vector<8x8xf32> -> vector<8x8xf32>
    %cst_60 = arith.constant 1.250000e-01 : f32
    %266 = vector.broadcast %cst_60 : f32 to vector<8x8xf32>
    %267 = arith.mulf %265, %266 : vector<8x8xf32>
    %cst_61 = arith.constant dense<0xFF800000> : vector<8xf32>
    %268 = vector.multi_reduction <maximumf>, %267, %cst_61 [1] : vector<8x8xf32> to vector<8xf32>
    %269 = vector.shape_cast %268 : vector<8xf32> to vector<8x1xf32>
    %270 = vector.broadcast %269 : vector<8x1xf32> to vector<8x8xf32>
    %271 = arith.subf %267, %270 : vector<8x8xf32>
    %272 = math.exp %271 : vector<8x8xf32>
    %cst_62 = arith.constant dense<0.000000e+00> : vector<8xf32>
    %273 = vector.multi_reduction <add>, %272, %cst_62 [1] : vector<8x8xf32> to vector<8xf32>
    %274 = vector.shape_cast %273 : vector<8xf32> to vector<8x1xf32>
    %275 = tpu.reciprocal %274 {approx = true} : vector<8x1xf32> -> vector<8x1xf32>
    %276 = vector.broadcast %275 : vector<8x1xf32> to vector<8x8xf32>
    %277 = arith.mulf %272, %276 : vector<8x8xf32>
    %278 = arith.truncf %277 : vector<8x8xf32> to vector<8x8xbf16>
    %cst_63 = arith.constant dense<0.000000e+00> : vector<8x64xf32>
    %279 = tpu.matmul %278, %264, %cst_63 {dimension_numbers = #tpu.dot_dimension_numbers<[1], [0], [0], [1], [0, 0, 1, 1], [], []>} : vector<8x8xbf16>, vector<8x64xbf16>, vector<8x64xf32> -> vector<8x64xf32>
    %280 = arith.truncf %279 : vector<8x64xf32> to vector<8x64xbf16>
    %281 = vector.extract_strided_slice %198 {offsets = [0, 0], sizes = [64, 128], strides = [1, 1]} : vector<128x128xbf16> to vector<64x128xbf16>
    %cst_64 = arith.constant dense<0.000000e+00> : vector<8x128xf32>
    %282 = tpu.matmul %280, %281, %cst_64 {dimension_numbers = #tpu.dot_dimension_numbers<[1], [0], [0], [1], [0, 0, 1, 1], [], []>} : vector<8x64xbf16>, vector<64x128xbf16>, vector<8x128xf32> -> vector<8x128xf32>
    %283 = vector.extract_strided_slice %255 {offsets = [0, 64], sizes = [8, 64], strides = [1, 1]} : vector<8x128xf32> to vector<8x64xf32>
    %284 = arith.truncf %283 : vector<8x64xf32> to vector<8x64xbf16>
    %285 = vector.extract_strided_slice %258 {offsets = [64, 0], sizes = [64, 8], strides = [1, 1]} : vector<128x8xf32> to vector<64x8xf32>
    %286 = arith.truncf %285 : vector<64x8xf32> to vector<64x8xbf16>
    %287 = vector.extract_strided_slice %257 {offsets = [0, 64], sizes = [8, 64], strides = [1, 1]} : vector<8x128xf32> to vector<8x64xf32>
    %288 = arith.truncf %287 : vector<8x64xf32> to vector<8x64xbf16>
    %cst_65 = arith.constant dense<0.000000e+00> : vector<8x8xf32>
    %289 = tpu.matmul %284, %286, %cst_65 {dimension_numbers = #tpu.dot_dimension_numbers<[1], [0], [0], [1], [0, 0, 1, 1], [], []>} : vector<8x64xbf16>, vector<64x8xbf16>, vector<8x8xf32> -> vector<8x8xf32>
    %cst_66 = arith.constant 1.250000e-01 : f32
    %290 = vector.broadcast %cst_66 : f32 to vector<8x8xf32>
    %291 = arith.mulf %289, %290 : vector<8x8xf32>
    %cst_67 = arith.constant dense<0xFF800000> : vector<8xf32>
    %292 = vector.multi_reduction <maximumf>, %291, %cst_67 [1] : vector<8x8xf32> to vector<8xf32>
    %293 = vector.shape_cast %292 : vector<8xf32> to vector<8x1xf32>
    %294 = vector.broadcast %293 : vector<8x1xf32> to vector<8x8xf32>
    %295 = arith.subf %291, %294 : vector<8x8xf32>
    %296 = math.exp %295 : vector<8x8xf32>
    %cst_68 = arith.constant dense<0.000000e+00> : vector<8xf32>
    %297 = vector.multi_reduction <add>, %296, %cst_68 [1] : vector<8x8xf32> to vector<8xf32>
    %298 = vector.shape_cast %297 : vector<8xf32> to vector<8x1xf32>
    %299 = tpu.reciprocal %298 {approx = true} : vector<8x1xf32> -> vector<8x1xf32>
    %300 = vector.broadcast %299 : vector<8x1xf32> to vector<8x8xf32>
    %301 = arith.mulf %296, %300 : vector<8x8xf32>
    %302 = arith.truncf %301 : vector<8x8xf32> to vector<8x8xbf16>
    %cst_69 = arith.constant dense<0.000000e+00> : vector<8x64xf32>
    %303 = tpu.matmul %302, %288, %cst_69 {dimension_numbers = #tpu.dot_dimension_numbers<[1], [0], [0], [1], [0, 0, 1, 1], [], []>} : vector<8x8xbf16>, vector<8x64xbf16>, vector<8x64xf32> -> vector<8x64xf32>
    %304 = arith.truncf %303 : vector<8x64xf32> to vector<8x64xbf16>
    %305 = vector.extract_strided_slice %198 {offsets = [64, 0], sizes = [64, 128], strides = [1, 1]} : vector<128x128xbf16> to vector<64x128xbf16>
    %cst_70 = arith.constant dense<0.000000e+00> : vector<8x128xf32>
    %306 = tpu.matmul %304, %305, %cst_70 {dimension_numbers = #tpu.dot_dimension_numbers<[1], [0], [0], [1], [0, 0, 1, 1], [], []>} : vector<8x64xbf16>, vector<64x128xbf16>, vector<8x128xf32> -> vector<8x128xf32>
    %307 = arith.addf %282, %306 : vector<8x128xf32>
    %308 = vector.broadcast %199 : vector<1x128xf32> to vector<8x128xf32>
    %309 = arith.addf %307, %308 : vector<8x128xf32>
    %310 = tpu.concatenate %254, %309 in 0 : vector<8x128xf32>, vector<8x128xf32> -> vector<16x128xf32>
    %311 = vector.extract_strided_slice %4 {offsets = [13, 0], sizes = [1, 128], strides = [1, 1]} : vector<16x384xf32> to vector<1x128xf32>
    %312 = vector.shape_cast %311 : vector<1x128xf32> to vector<1x128xf32>
    %313 = vector.broadcast %312 : vector<1x128xf32> to vector<16x128xf32>
    %314 = vector.extract_strided_slice %4 {offsets = [14, 0], sizes = [1, 128], strides = [1, 1]} : vector<16x384xf32> to vector<1x128xf32>
    %315 = vector.shape_cast %314 : vector<1x128xf32> to vector<1x128xf32>
    %316 = vector.broadcast %315 : vector<1x128xf32> to vector<16x128xf32>
    %317 = arith.addf %1, %310 : vector<16x128xf32>
    %cst_71 = arith.constant dense<0.000000e+00> : vector<16xf32>
    %318 = vector.multi_reduction <add>, %317, %cst_71 [1] : vector<16x128xf32> to vector<16xf32>
    %319 = vector.shape_cast %318 : vector<16xf32> to vector<16x1xf32>
    %cst_72 = arith.constant 1.280000e+02 : f32
    %320 = vector.broadcast %cst_72 : f32 to vector<16x1xf32>
    %321 = arith.divf %319, %320 : vector<16x1xf32>
    %322 = vector.broadcast %321 : vector<16x1xf32> to vector<16x128xf32>
    %323 = arith.subf %317, %322 : vector<16x128xf32>
    %324 = arith.mulf %323, %323 : vector<16x128xf32>
    %cst_73 = arith.constant dense<0.000000e+00> : vector<16xf32>
    %325 = vector.multi_reduction <add>, %324, %cst_73 [1] : vector<16x128xf32> to vector<16xf32>
    %326 = vector.shape_cast %325 : vector<16xf32> to vector<16x1xf32>
    %cst_74 = arith.constant 1.280000e+02 : f32
    %327 = vector.broadcast %cst_74 : f32 to vector<16x1xf32>
    %328 = arith.divf %326, %327 : vector<16x1xf32>
    %329 = vector.broadcast %321 : vector<16x1xf32> to vector<16x128xf32>
    %330 = arith.subf %317, %329 : vector<16x128xf32>
    %cst_75 = arith.constant 9.99999974E-6 : f32
    %331 = vector.broadcast %cst_75 : f32 to vector<16x1xf32>
    %332 = arith.addf %328, %331 : vector<16x1xf32>
    %333 = math.rsqrt %332 : vector<16x1xf32>
    %334 = vector.broadcast %333 : vector<16x1xf32> to vector<16x128xf32>
    %335 = arith.mulf %330, %334 : vector<16x128xf32>
    %336 = arith.mulf %335, %313 : vector<16x128xf32>
    %337 = arith.addf %336, %316 : vector<16x128xf32>
    %338 = vector.extract_strided_slice %2 {offsets = [0, 1280], sizes = [128, 128], strides = [1, 1]} : vector<128x2176xbf16> to vector<128x128xbf16>
    %339 = arith.truncf %310 : vector<16x128xf32> to vector<16x128xbf16>
    %cst_76 = arith.constant dense<0.000000e+00> : vector<16x128xf32>
    %340 = tpu.matmul %339, %338, %cst_76 {dimension_numbers = #tpu.dot_dimension_numbers<[1], [0], [0], [1], [0, 0, 1, 1], [], []>} : vector<16x128xbf16>, vector<128x128xbf16>, vector<16x128xf32> -> vector<16x128xf32>
    %341 = vector.extract_strided_slice %4 {offsets = [8, 0], sizes = [1, 128], strides = [1, 1]} : vector<16x384xf32> to vector<1x128xf32>
    %342 = vector.broadcast %341 : vector<1x128xf32> to vector<16x128xf32>
    %343 = arith.addf %340, %342 : vector<16x128xf32>
    %344 = vector.extract_strided_slice %2 {offsets = [0, 1408], sizes = [128, 256], strides = [1, 1]} : vector<128x2176xbf16> to vector<128x256xbf16>
    %345 = arith.truncf %188 : vector<32x128xf32> to vector<32x128xbf16>
    %cst_77 = arith.constant dense<0.000000e+00> : vector<32x256xf32>
    %346 = tpu.matmul %345, %344, %cst_77 {dimension_numbers = #tpu.dot_dimension_numbers<[1], [0], [0], [1], [0, 0, 1, 1], [], []>} : vector<32x128xbf16>, vector<128x256xbf16>, vector<32x256xf32> -> vector<32x256xf32>
    %347 = vector.extract_strided_slice %4 {offsets = [9, 0], sizes = [1, 256], strides = [1, 1]} : vector<16x384xf32> to vector<1x256xf32>
    %348 = vector.broadcast %347 : vector<1x256xf32> to vector<32x256xf32>
    %349 = arith.addf %346, %348 : vector<32x256xf32>
    %350 = vector.extract_strided_slice %349 {offsets = [0, 0], sizes = [32, 128], strides = [1, 1]} : vector<32x256xf32> to vector<32x128xf32>
    %351 = vector.extract_strided_slice %349 {offsets = [0, 128], sizes = [32, 128], strides = [1, 1]} : vector<32x256xf32> to vector<32x128xf32>
    %352 = vector.extract_strided_slice %2 {offsets = [0, 1664], sizes = [128, 128], strides = [1, 1]} : vector<128x2176xbf16> to vector<128x128xbf16>
    %353 = vector.extract_strided_slice %4 {offsets = [10, 0], sizes = [1, 128], strides = [1, 1]} : vector<16x384xf32> to vector<1x128xf32>
    %354 = vector.extract_strided_slice %343 {offsets = [0, 0], sizes = [8, 128], strides = [1, 1]} : vector<16x128xf32> to vector<8x128xf32>
    %355 = vector.extract_strided_slice %350 {offsets = [0, 0], sizes = [16, 128], strides = [1, 1]} : vector<32x128xf32> to vector<16x128xf32>
    %356 = vector.extract_strided_slice %351 {offsets = [0, 0], sizes = [16, 128], strides = [1, 1]} : vector<32x128xf32> to vector<16x128xf32>
    %357 = tpu.transpose %355, [1, 0] : vector<16x128xf32> -> vector<128x16xf32>
    %358 = vector.extract_strided_slice %354 {offsets = [0, 0], sizes = [8, 64], strides = [1, 1]} : vector<8x128xf32> to vector<8x64xf32>
    %359 = arith.truncf %358 : vector<8x64xf32> to vector<8x64xbf16>
    %360 = vector.extract_strided_slice %357 {offsets = [0, 0], sizes = [64, 16], strides = [1, 1]} : vector<128x16xf32> to vector<64x16xf32>
    %361 = arith.truncf %360 : vector<64x16xf32> to vector<64x16xbf16>
    %362 = vector.extract_strided_slice %356 {offsets = [0, 0], sizes = [16, 64], strides = [1, 1]} : vector<16x128xf32> to vector<16x64xf32>
    %363 = arith.truncf %362 : vector<16x64xf32> to vector<16x64xbf16>
    %cst_78 = arith.constant dense<0.000000e+00> : vector<8x16xf32>
    %364 = tpu.matmul %359, %361, %cst_78 {dimension_numbers = #tpu.dot_dimension_numbers<[1], [0], [0], [1], [0, 0, 1, 1], [], []>} : vector<8x64xbf16>, vector<64x16xbf16>, vector<8x16xf32> -> vector<8x16xf32>
    %cst_79 = arith.constant 1.250000e-01 : f32
    %365 = vector.broadcast %cst_79 : f32 to vector<8x16xf32>
    %366 = arith.mulf %364, %365 : vector<8x16xf32>
    %cst_80 = arith.constant dense<0xFF800000> : vector<8xf32>
    %367 = vector.multi_reduction <maximumf>, %366, %cst_80 [1] : vector<8x16xf32> to vector<8xf32>
    %368 = vector.shape_cast %367 : vector<8xf32> to vector<8x1xf32>
    %369 = vector.broadcast %368 : vector<8x1xf32> to vector<8x16xf32>
    %370 = arith.subf %366, %369 : vector<8x16xf32>
    %371 = math.exp %370 : vector<8x16xf32>
    %cst_81 = arith.constant dense<0.000000e+00> : vector<8xf32>
    %372 = vector.multi_reduction <add>, %371, %cst_81 [1] : vector<8x16xf32> to vector<8xf32>
    %373 = vector.shape_cast %372 : vector<8xf32> to vector<8x1xf32>
    %374 = tpu.reciprocal %373 {approx = true} : vector<8x1xf32> -> vector<8x1xf32>
    %375 = vector.broadcast %374 : vector<8x1xf32> to vector<8x16xf32>
    %376 = arith.mulf %371, %375 : vector<8x16xf32>
    %377 = arith.truncf %376 : vector<8x16xf32> to vector<8x16xbf16>
    %cst_82 = arith.constant dense<0.000000e+00> : vector<8x64xf32>
    %378 = tpu.matmul %377, %363, %cst_82 {dimension_numbers = #tpu.dot_dimension_numbers<[1], [0], [0], [1], [0, 0, 1, 1], [], []>} : vector<8x16xbf16>, vector<16x64xbf16>, vector<8x64xf32> -> vector<8x64xf32>
    %379 = arith.truncf %378 : vector<8x64xf32> to vector<8x64xbf16>
    %380 = vector.extract_strided_slice %352 {offsets = [0, 0], sizes = [64, 128], strides = [1, 1]} : vector<128x128xbf16> to vector<64x128xbf16>
    %cst_83 = arith.constant dense<0.000000e+00> : vector<8x128xf32>
    %381 = tpu.matmul %379, %380, %cst_83 {dimension_numbers = #tpu.dot_dimension_numbers<[1], [0], [0], [1], [0, 0, 1, 1], [], []>} : vector<8x64xbf16>, vector<64x128xbf16>, vector<8x128xf32> -> vector<8x128xf32>
    %382 = vector.extract_strided_slice %354 {offsets = [0, 64], sizes = [8, 64], strides = [1, 1]} : vector<8x128xf32> to vector<8x64xf32>
    %383 = arith.truncf %382 : vector<8x64xf32> to vector<8x64xbf16>
    %384 = vector.extract_strided_slice %357 {offsets = [64, 0], sizes = [64, 16], strides = [1, 1]} : vector<128x16xf32> to vector<64x16xf32>
    %385 = arith.truncf %384 : vector<64x16xf32> to vector<64x16xbf16>
    %386 = vector.extract_strided_slice %356 {offsets = [0, 64], sizes = [16, 64], strides = [1, 1]} : vector<16x128xf32> to vector<16x64xf32>
    %387 = arith.truncf %386 : vector<16x64xf32> to vector<16x64xbf16>
    %cst_84 = arith.constant dense<0.000000e+00> : vector<8x16xf32>
    %388 = tpu.matmul %383, %385, %cst_84 {dimension_numbers = #tpu.dot_dimension_numbers<[1], [0], [0], [1], [0, 0, 1, 1], [], []>} : vector<8x64xbf16>, vector<64x16xbf16>, vector<8x16xf32> -> vector<8x16xf32>
    %cst_85 = arith.constant 1.250000e-01 : f32
    %389 = vector.broadcast %cst_85 : f32 to vector<8x16xf32>
    %390 = arith.mulf %388, %389 : vector<8x16xf32>
    %cst_86 = arith.constant dense<0xFF800000> : vector<8xf32>
    %391 = vector.multi_reduction <maximumf>, %390, %cst_86 [1] : vector<8x16xf32> to vector<8xf32>
    %392 = vector.shape_cast %391 : vector<8xf32> to vector<8x1xf32>
    %393 = vector.broadcast %392 : vector<8x1xf32> to vector<8x16xf32>
    %394 = arith.subf %390, %393 : vector<8x16xf32>
    %395 = math.exp %394 : vector<8x16xf32>
    %cst_87 = arith.constant dense<0.000000e+00> : vector<8xf32>
    %396 = vector.multi_reduction <add>, %395, %cst_87 [1] : vector<8x16xf32> to vector<8xf32>
    %397 = vector.shape_cast %396 : vector<8xf32> to vector<8x1xf32>
    %398 = tpu.reciprocal %397 {approx = true} : vector<8x1xf32> -> vector<8x1xf32>
    %399 = vector.broadcast %398 : vector<8x1xf32> to vector<8x16xf32>
    %400 = arith.mulf %395, %399 : vector<8x16xf32>
    %401 = arith.truncf %400 : vector<8x16xf32> to vector<8x16xbf16>
    %cst_88 = arith.constant dense<0.000000e+00> : vector<8x64xf32>
    %402 = tpu.matmul %401, %387, %cst_88 {dimension_numbers = #tpu.dot_dimension_numbers<[1], [0], [0], [1], [0, 0, 1, 1], [], []>} : vector<8x16xbf16>, vector<16x64xbf16>, vector<8x64xf32> -> vector<8x64xf32>
    %403 = arith.truncf %402 : vector<8x64xf32> to vector<8x64xbf16>
    %404 = vector.extract_strided_slice %352 {offsets = [64, 0], sizes = [64, 128], strides = [1, 1]} : vector<128x128xbf16> to vector<64x128xbf16>
    %cst_89 = arith.constant dense<0.000000e+00> : vector<8x128xf32>
    %405 = tpu.matmul %403, %404, %cst_89 {dimension_numbers = #tpu.dot_dimension_numbers<[1], [0], [0], [1], [0, 0, 1, 1], [], []>} : vector<8x64xbf16>, vector<64x128xbf16>, vector<8x128xf32> -> vector<8x128xf32>
    %406 = arith.addf %381, %405 : vector<8x128xf32>
    %407 = vector.broadcast %353 : vector<1x128xf32> to vector<8x128xf32>
    %408 = arith.addf %406, %407 : vector<8x128xf32>
    %409 = vector.extract_strided_slice %343 {offsets = [8, 0], sizes = [8, 128], strides = [1, 1]} : vector<16x128xf32> to vector<8x128xf32>
    %410 = vector.extract_strided_slice %350 {offsets = [16, 0], sizes = [16, 128], strides = [1, 1]} : vector<32x128xf32> to vector<16x128xf32>
    %411 = vector.extract_strided_slice %351 {offsets = [16, 0], sizes = [16, 128], strides = [1, 1]} : vector<32x128xf32> to vector<16x128xf32>
    %412 = tpu.transpose %410, [1, 0] : vector<16x128xf32> -> vector<128x16xf32>
    %413 = vector.extract_strided_slice %409 {offsets = [0, 0], sizes = [8, 64], strides = [1, 1]} : vector<8x128xf32> to vector<8x64xf32>
    %414 = arith.truncf %413 : vector<8x64xf32> to vector<8x64xbf16>
    %415 = vector.extract_strided_slice %412 {offsets = [0, 0], sizes = [64, 16], strides = [1, 1]} : vector<128x16xf32> to vector<64x16xf32>
    %416 = arith.truncf %415 : vector<64x16xf32> to vector<64x16xbf16>
    %417 = vector.extract_strided_slice %411 {offsets = [0, 0], sizes = [16, 64], strides = [1, 1]} : vector<16x128xf32> to vector<16x64xf32>
    %418 = arith.truncf %417 : vector<16x64xf32> to vector<16x64xbf16>
    %cst_90 = arith.constant dense<0.000000e+00> : vector<8x16xf32>
    %419 = tpu.matmul %414, %416, %cst_90 {dimension_numbers = #tpu.dot_dimension_numbers<[1], [0], [0], [1], [0, 0, 1, 1], [], []>} : vector<8x64xbf16>, vector<64x16xbf16>, vector<8x16xf32> -> vector<8x16xf32>
    %cst_91 = arith.constant 1.250000e-01 : f32
    %420 = vector.broadcast %cst_91 : f32 to vector<8x16xf32>
    %421 = arith.mulf %419, %420 : vector<8x16xf32>
    %cst_92 = arith.constant dense<0xFF800000> : vector<8xf32>
    %422 = vector.multi_reduction <maximumf>, %421, %cst_92 [1] : vector<8x16xf32> to vector<8xf32>
    %423 = vector.shape_cast %422 : vector<8xf32> to vector<8x1xf32>
    %424 = vector.broadcast %423 : vector<8x1xf32> to vector<8x16xf32>
    %425 = arith.subf %421, %424 : vector<8x16xf32>
    %426 = math.exp %425 : vector<8x16xf32>
    %cst_93 = arith.constant dense<0.000000e+00> : vector<8xf32>
    %427 = vector.multi_reduction <add>, %426, %cst_93 [1] : vector<8x16xf32> to vector<8xf32>
    %428 = vector.shape_cast %427 : vector<8xf32> to vector<8x1xf32>
    %429 = tpu.reciprocal %428 {approx = true} : vector<8x1xf32> -> vector<8x1xf32>
    %430 = vector.broadcast %429 : vector<8x1xf32> to vector<8x16xf32>
    %431 = arith.mulf %426, %430 : vector<8x16xf32>
    %432 = arith.truncf %431 : vector<8x16xf32> to vector<8x16xbf16>
    %cst_94 = arith.constant dense<0.000000e+00> : vector<8x64xf32>
    %433 = tpu.matmul %432, %418, %cst_94 {dimension_numbers = #tpu.dot_dimension_numbers<[1], [0], [0], [1], [0, 0, 1, 1], [], []>} : vector<8x16xbf16>, vector<16x64xbf16>, vector<8x64xf32> -> vector<8x64xf32>
    %434 = arith.truncf %433 : vector<8x64xf32> to vector<8x64xbf16>
    %435 = vector.extract_strided_slice %352 {offsets = [0, 0], sizes = [64, 128], strides = [1, 1]} : vector<128x128xbf16> to vector<64x128xbf16>
    %cst_95 = arith.constant dense<0.000000e+00> : vector<8x128xf32>
    %436 = tpu.matmul %434, %435, %cst_95 {dimension_numbers = #tpu.dot_dimension_numbers<[1], [0], [0], [1], [0, 0, 1, 1], [], []>} : vector<8x64xbf16>, vector<64x128xbf16>, vector<8x128xf32> -> vector<8x128xf32>
    %437 = vector.extract_strided_slice %409 {offsets = [0, 64], sizes = [8, 64], strides = [1, 1]} : vector<8x128xf32> to vector<8x64xf32>
    %438 = arith.truncf %437 : vector<8x64xf32> to vector<8x64xbf16>
    %439 = vector.extract_strided_slice %412 {offsets = [64, 0], sizes = [64, 16], strides = [1, 1]} : vector<128x16xf32> to vector<64x16xf32>
    %440 = arith.truncf %439 : vector<64x16xf32> to vector<64x16xbf16>
    %441 = vector.extract_strided_slice %411 {offsets = [0, 64], sizes = [16, 64], strides = [1, 1]} : vector<16x128xf32> to vector<16x64xf32>
    %442 = arith.truncf %441 : vector<16x64xf32> to vector<16x64xbf16>
    %cst_96 = arith.constant dense<0.000000e+00> : vector<8x16xf32>
    %443 = tpu.matmul %438, %440, %cst_96 {dimension_numbers = #tpu.dot_dimension_numbers<[1], [0], [0], [1], [0, 0, 1, 1], [], []>} : vector<8x64xbf16>, vector<64x16xbf16>, vector<8x16xf32> -> vector<8x16xf32>
    %cst_97 = arith.constant 1.250000e-01 : f32
    %444 = vector.broadcast %cst_97 : f32 to vector<8x16xf32>
    %445 = arith.mulf %443, %444 : vector<8x16xf32>
    %cst_98 = arith.constant dense<0xFF800000> : vector<8xf32>
    %446 = vector.multi_reduction <maximumf>, %445, %cst_98 [1] : vector<8x16xf32> to vector<8xf32>
    %447 = vector.shape_cast %446 : vector<8xf32> to vector<8x1xf32>
    %448 = vector.broadcast %447 : vector<8x1xf32> to vector<8x16xf32>
    %449 = arith.subf %445, %448 : vector<8x16xf32>
    %450 = math.exp %449 : vector<8x16xf32>
    %cst_99 = arith.constant dense<0.000000e+00> : vector<8xf32>
    %451 = vector.multi_reduction <add>, %450, %cst_99 [1] : vector<8x16xf32> to vector<8xf32>
    %452 = vector.shape_cast %451 : vector<8xf32> to vector<8x1xf32>
    %453 = tpu.reciprocal %452 {approx = true} : vector<8x1xf32> -> vector<8x1xf32>
    %454 = vector.broadcast %453 : vector<8x1xf32> to vector<8x16xf32>
    %455 = arith.mulf %450, %454 : vector<8x16xf32>
    %456 = arith.truncf %455 : vector<8x16xf32> to vector<8x16xbf16>
    %cst_100 = arith.constant dense<0.000000e+00> : vector<8x64xf32>
    %457 = tpu.matmul %456, %442, %cst_100 {dimension_numbers = #tpu.dot_dimension_numbers<[1], [0], [0], [1], [0, 0, 1, 1], [], []>} : vector<8x16xbf16>, vector<16x64xbf16>, vector<8x64xf32> -> vector<8x64xf32>
    %458 = arith.truncf %457 : vector<8x64xf32> to vector<8x64xbf16>
    %459 = vector.extract_strided_slice %352 {offsets = [64, 0], sizes = [64, 128], strides = [1, 1]} : vector<128x128xbf16> to vector<64x128xbf16>
    %cst_101 = arith.constant dense<0.000000e+00> : vector<8x128xf32>
    %460 = tpu.matmul %458, %459, %cst_101 {dimension_numbers = #tpu.dot_dimension_numbers<[1], [0], [0], [1], [0, 0, 1, 1], [], []>} : vector<8x64xbf16>, vector<64x128xbf16>, vector<8x128xf32> -> vector<8x128xf32>
    %461 = arith.addf %436, %460 : vector<8x128xf32>
    %462 = vector.broadcast %353 : vector<1x128xf32> to vector<8x128xf32>
    %463 = arith.addf %461, %462 : vector<8x128xf32>
    %464 = tpu.concatenate %408, %463 in 0 : vector<8x128xf32>, vector<8x128xf32> -> vector<16x128xf32>
    %465 = arith.addf %337, %464 : vector<16x128xf32>
    %cst_102 = arith.constant dense<0.000000e+00> : vector<16xf32>
    %466 = vector.multi_reduction <add>, %465, %cst_102 [1] : vector<16x128xf32> to vector<16xf32>
    %467 = vector.shape_cast %466 : vector<16xf32> to vector<16x1xf32>
    %cst_103 = arith.constant 1.280000e+02 : f32
    %468 = vector.broadcast %cst_103 : f32 to vector<16x1xf32>
    %469 = arith.divf %467, %468 : vector<16x1xf32>
    %470 = vector.broadcast %469 : vector<16x1xf32> to vector<16x128xf32>
    %471 = arith.subf %465, %470 : vector<16x128xf32>
    %472 = arith.mulf %471, %471 : vector<16x128xf32>
    %cst_104 = arith.constant dense<0.000000e+00> : vector<16xf32>
    %473 = vector.multi_reduction <add>, %472, %cst_104 [1] : vector<16x128xf32> to vector<16xf32>
    %474 = vector.shape_cast %473 : vector<16xf32> to vector<16x1xf32>
    %cst_105 = arith.constant 1.280000e+02 : f32
    %475 = vector.broadcast %cst_105 : f32 to vector<16x1xf32>
    %476 = arith.divf %474, %475 : vector<16x1xf32>
    %477 = vector.broadcast %469 : vector<16x1xf32> to vector<16x128xf32>
    %478 = arith.subf %465, %477 : vector<16x128xf32>
    %cst_106 = arith.constant 9.99999974E-6 : f32
    %479 = vector.broadcast %cst_106 : f32 to vector<16x1xf32>
    %480 = arith.addf %476, %479 : vector<16x1xf32>
    %481 = math.rsqrt %480 : vector<16x1xf32>
    %482 = vector.broadcast %481 : vector<16x1xf32> to vector<16x128xf32>
    %483 = arith.mulf %478, %482 : vector<16x128xf32>
    %484 = arith.mulf %483, %313 : vector<16x128xf32>
    %485 = arith.addf %484, %316 : vector<16x128xf32>
    %486 = vector.extract_strided_slice %2 {offsets = [0, 1792], sizes = [128, 256], strides = [1, 1]} : vector<128x2176xbf16> to vector<128x256xbf16>
    %487 = arith.truncf %485 : vector<16x128xf32> to vector<16x128xbf16>
    %cst_107 = arith.constant dense<0.000000e+00> : vector<16x256xf32>
    %488 = tpu.matmul %487, %486, %cst_107 {dimension_numbers = #tpu.dot_dimension_numbers<[1], [0], [0], [1], [0, 0, 1, 1], [], []>} : vector<16x128xbf16>, vector<128x256xbf16>, vector<16x256xf32> -> vector<16x256xf32>
    %489 = vector.extract_strided_slice %4 {offsets = [11, 0], sizes = [1, 256], strides = [1, 1]} : vector<16x384xf32> to vector<1x256xf32>
    %490 = vector.broadcast %489 : vector<1x256xf32> to vector<16x256xf32>
    %491 = arith.addf %488, %490 : vector<16x256xf32>
    %cst_108 = arith.constant 0.000000e+00 : f32
    %492 = vector.broadcast %cst_108 : f32 to vector<16x256xf32>
    %493 = arith.maximumf %491, %492 : vector<16x256xf32>
    %494 = vector.extract_strided_slice %3 {offsets = [0, 128], sizes = [256, 128], strides = [1, 1]} : vector<256x256xbf16> to vector<256x128xbf16>
    %495 = arith.truncf %493 : vector<16x256xf32> to vector<16x256xbf16>
    %cst_109 = arith.constant dense<0.000000e+00> : vector<16x128xf32>
    %496 = tpu.matmul %495, %494, %cst_109 {dimension_numbers = #tpu.dot_dimension_numbers<[1], [0], [0], [1], [0, 0, 1, 1], [], []>} : vector<16x256xbf16>, vector<256x128xbf16>, vector<16x128xf32> -> vector<16x128xf32>
    %497 = vector.extract_strided_slice %4 {offsets = [12, 0], sizes = [1, 128], strides = [1, 1]} : vector<16x384xf32> to vector<1x128xf32>
    %498 = vector.broadcast %497 : vector<1x128xf32> to vector<16x128xf32>
    %499 = arith.addf %496, %498 : vector<16x128xf32>
    %500 = arith.addf %485, %499 : vector<16x128xf32>
    %cst_110 = arith.constant dense<0.000000e+00> : vector<16xf32>
    %501 = vector.multi_reduction <add>, %500, %cst_110 [1] : vector<16x128xf32> to vector<16xf32>
    %502 = vector.shape_cast %501 : vector<16xf32> to vector<16x1xf32>
    %cst_111 = arith.constant 1.280000e+02 : f32
    %503 = vector.broadcast %cst_111 : f32 to vector<16x1xf32>
    %504 = arith.divf %502, %503 : vector<16x1xf32>
    %505 = vector.broadcast %504 : vector<16x1xf32> to vector<16x128xf32>
    %506 = arith.subf %500, %505 : vector<16x128xf32>
    %507 = arith.mulf %506, %506 : vector<16x128xf32>
    %cst_112 = arith.constant dense<0.000000e+00> : vector<16xf32>
    %508 = vector.multi_reduction <add>, %507, %cst_112 [1] : vector<16x128xf32> to vector<16xf32>
    %509 = vector.shape_cast %508 : vector<16xf32> to vector<16x1xf32>
    %cst_113 = arith.constant 1.280000e+02 : f32
    %510 = vector.broadcast %cst_113 : f32 to vector<16x1xf32>
    %511 = arith.divf %509, %510 : vector<16x1xf32>
    %512 = vector.broadcast %504 : vector<16x1xf32> to vector<16x128xf32>
    %513 = arith.subf %500, %512 : vector<16x128xf32>
    %cst_114 = arith.constant 9.99999974E-6 : f32
    %514 = vector.broadcast %cst_114 : f32 to vector<16x1xf32>
    %515 = arith.addf %511, %514 : vector<16x1xf32>
    %516 = math.rsqrt %515 : vector<16x1xf32>
    %517 = vector.broadcast %516 : vector<16x1xf32> to vector<16x128xf32>
    %518 = arith.mulf %513, %517 : vector<16x128xf32>
    %519 = arith.mulf %518, %313 : vector<16x128xf32>
    %520 = arith.addf %519, %316 : vector<16x128xf32>
    %521 = vector.extract_strided_slice %2 {offsets = [0, 2048], sizes = [128, 128], strides = [1, 1]} : vector<128x2176xbf16> to vector<128x128xbf16>
    %522 = arith.truncf %520 : vector<16x128xf32> to vector<16x128xbf16>
    %cst_115 = arith.constant dense<0.000000e+00> : vector<16x128xf32>
    %523 = tpu.matmul %522, %521, %cst_115 {dimension_numbers = #tpu.dot_dimension_numbers<[1], [0], [0], [1], [0, 0, 1, 1], [], []>} : vector<16x128xbf16>, vector<128x128xbf16>, vector<16x128xf32> -> vector<16x128xf32>
    %524 = vector.extract_strided_slice %4 {offsets = [15, 0], sizes = [1, 128], strides = [1, 1]} : vector<16x384xf32> to vector<1x128xf32>
    %525 = vector.broadcast %524 : vector<1x128xf32> to vector<16x128xf32>
    %526 = arith.addf %523, %525 : vector<16x128xf32>
    %c0_116 = arith.constant 0 : index
    %c0_117 = arith.constant 0 : index
    %527 = vector.load %arg6[%c0_116, %c0_117] : memref<16x128xf32, #tpu.memory_space<vmem>>, vector<16x128xf32>
    tpu.vector_store %arg6[%c0_116, %c0_117], %526 {strides = array<i32>} : memref<16x128xf32, #tpu.memory_space<vmem>>, vector<16x128xf32>,
    return
  }
  func.func @transform_0(%arg0: i32) -> (i32, i32) {
    %c0_i32 = arith.constant 0 : i32
    %c0_i32_0 = arith.constant 0 : i32
    %c0_i32_1 = arith.constant 0 : i32
    return %c0_i32, %c0_i32_0 : i32, i32
  }
  func.func @transform_1(%arg0: i32) -> (i32, i32) {
    %c0_i32 = arith.constant 0 : i32
    %c0_i32_0 = arith.constant 0 : i32
    %c0_i32_1 = arith.constant 0 : i32
    return %c0_i32, %c0_i32_0 : i32, i32
  }
  func.func @transform_2(%arg0: i32) -> (i32, i32) {
    %c0_i32 = arith.constant 0 : i32
    %c0_i32_0 = arith.constant 0 : i32
    %c0_i32_1 = arith.constant 0 : i32
    return %c0_i32, %c0_i32_0 : i32, i32
  }
  func.func @transform_3(%arg0: i32) -> (i32, i32) {
    %c0_i32 = arith.constant 0 : i32
    %c0_i32_0 = arith.constant 0 : i32
    %c0_i32_1 = arith.constant 0 : i32
    return %c0_i32, %c0_i32_0 : i32, i32
  }
  func.func @transform_4(%arg0: i32) -> (i32, i32) {
    %c0_i32 = arith.constant 0 : i32
    %c0_i32_0 = arith.constant 0 : i32
    %c0_i32_1 = arith.constant 0 : i32
    return %c0_i32, %c0_i32_0 : i32, i32
  }
  func.func @transform_5(%arg0: i32) -> (i32, i32) {
    %c0_i32 = arith.constant 0 : i32
    %c0_i32_0 = arith.constant 0 : i32
    %c0_i32_1 = arith.constant 0 : i32
    return %c0_i32, %c0_i32_0 : i32, i32
  }
}

</mosaic_0001>

<bundles_post_ra>
// kernel: tpu_custom_call.1
= control target key start
LH: loop header
LB: loop body
LE: loop exit
PB: predicated region body
PF: predicated region fallthrough
CT: control target
= control target key end

     0   :  { %10 = vsyncpa [#allocation3], 0  ;;  %s6281_s0 = inlined_call_operand.hbm [shape: f32[32,128], index: 0, kind: input, shape index: {}]   ;;  %s6282_s1 = inlined_call_operand.hbm [shape: f32[16,128], index: 1, kind: input, shape index: {}]   ;;  %s6283_s2 = inlined_call_operand.hbm [shape: bf16[128,2176], index: 2, kind: input, shape index: {}]   ;;  %s6284_s3 = inlined_call_operand.hbm [shape: bf16[256,256], index: 3, kind: input, shape index: {}]   ;;  %s6285_s4 = inlined_call_operand.hbm [shape: f32[16,384], index: 4, kind: input, shape index: {}]   ;;  %s6286_s5 = inlined_call_operand.hbm [shape: f32[16,128], index: 5, kind: output, shape index: {}]  }
   0x1   :  { %11 = vsyncpa [#allocation6], 0 }
   0x2   :  { %12 = vsyncpa [#allocation9], 0 }
   0x3   :  { %13 = vsyncpa [#allocation4], 0  ;;  %s5442_s18 = smov [#allocation5]   ;;  %s5443_s20 = smov [#allocation8]  }
   0x4   :  { %s31_s19 = sshll.u32 %s5442_s18, 4  ;;  %s55_s21 = sshll.u32 %s5443_s20, 4  ;;  %s32_s19 = int_to_ptr.vmem [resolvable:$true] %s31_s19  ;;  %s5488_s21 = int_to_ptr.vmem [resolvable:$true] %s55_s21 }
   0x5   :  { %s5302_s24 = scalar_lea.hbm %s6282_s1, 256 }
   0x6   :  { %p5303_p0 = scmp.ne.s32.totalorder %s6282_s1, %s5302_s24  ;;  %p5306_p1 = scmp.lt.u32.totalorder %s5302_s24, %s6282_s1 }
   0x8   :  { %p5308_p2 = pnand %p5306_p1, %p5303_p0 }
   0xa   :  { %5311 = shalt.err (!%p5308_p2)
}
   0xb   :  { %s5312_s29 = scalar_lea.vmem %s32_s19, 256  ;;  %p5317_p4 = scmp.lt.s32.totalorder %s32_s19, %s32_s19 }
   0xc   :  { %p5313_p3 = scmp.ne.s32.totalorder %s32_s19, %s5312_s29  ;;  %p5318_p5 = scmp.lt.s32.totalorder %s5312_s29, %s5312_s29 }
   0xe   :  { %p5319_p6 = por %p5318_p5, %p5317_p4 }
  0x10   :  { %p5320_p7 = pnand %p5319_p6, %p5313_p3 }
  0x12   :  { %5323 = shalt.err (!%p5320_p7)
}
  0x13   :  { %s5444_s30 = smov 128   ;;  %s5445_s6 = smov 8  }
  0x14   :  { %37 = dma.hbm_to_vmem [thread:$0]  %s6282_s1, 256, %s32_s19, [#allocation6], %s5444_s30, %s5444_s30, %s5445_s6  }
  0x15   :  { %s5324_s11 = scalar_lea.hbm %s6284_s3, 4096 }
  0x16   :  { %p5325_p8 = scmp.ne.s32.totalorder %s6284_s3, %s5324_s11  ;;  %p5328_p9 = scmp.lt.u32.totalorder %s5324_s11, %s6284_s3 }
  0x18   :  { %p5330_p10 = pnand %p5328_p9, %p5325_p8 }
  0x1a   :  { %5333 = shalt.err (!%p5330_p10)
}
  0x1b   :  { %s5334_s16 = scalar_lea.vmem %s5488_s21, 4096  ;;  %p5339_p12 = scmp.lt.s32.totalorder %s5488_s21, %s5488_s21 }
  0x1c   :  { %p5335_p11 = scmp.ne.s32.totalorder %s5488_s21, %s5334_s16  ;;  %p5340_p13 = scmp.lt.s32.totalorder %s5334_s16, %s5334_s16 }
  0x1e   :  { %p5341_p0 = por %p5340_p13, %p5339_p12 }
  0x20   :  { %p5342_p1 = pnand %p5341_p0, %p5335_p11 }
  0x22   :  { %5345 = shalt.err (!%p5342_p1)
}
  0x23   :  { %61 = dma.hbm_to_vmem [thread:$0]  %s6284_s3, 4096, %s5488_s21, [#allocation9], %s5444_s30, %s5444_s30, %s5445_s6  }
  0x24   :  { %s5446_s18 = smov [#allocation2]   ;;  %s5447_s20 = smov [#allocation7]  }
  0x25   :  { %s19_s19 = sshll.u32 %s5446_s18, 4  ;;  %s43_s22 = sshll.u32 %s5447_s20, 4  ;;  %s20_s19 = int_to_ptr.vmem [resolvable:$true] %s19_s19  ;;  %s5525_s22 = int_to_ptr.vmem [resolvable:$true] %s43_s22 }
  0x26   :  { %s5346_s25 = scalar_lea.hbm %s6281_s0, 512 }
  0x27   :  { %p5347_p2 = scmp.ne.s32.totalorder %s6281_s0, %s5346_s25  ;;  %p5350_p3 = scmp.lt.u32.totalorder %s5346_s25, %s6281_s0 }
  0x29   :  { %p5352_p4 = pnand %p5350_p3, %p5347_p2 }
  0x2b   :  { %5355 = shalt.err (!%p5352_p4)
}
  0x2c   :  { %s5356_s3 = scalar_lea.vmem %s20_s19, 512  ;;  %p5361_p6 = scmp.lt.s32.totalorder %s20_s19, %s20_s19 }
  0x2d   :  { %p5357_p5 = scmp.ne.s32.totalorder %s20_s19, %s5356_s3  ;;  %p5362_p7 = scmp.lt.s32.totalorder %s5356_s3, %s5356_s3 }
  0x2f   :  { %p5363_p8 = por %p5362_p7, %p5361_p6 }
  0x31   :  { %p5364_p9 = pnand %p5363_p8, %p5357_p5 }
  0x33   :  { %5367 = shalt.err (!%p5364_p9)
}
  0x34   :  { %25 = dma.hbm_to_vmem [thread:$0]  %s6281_s0, 512, %s20_s19, [#allocation3], %s5444_s30, %s5444_s30, %s5445_s6  }
  0x35   :  { %s5368_s10 = scalar_lea.hbm %s6283_s2, 17408 }
  0x36   :  { %p5369_p10 = scmp.ne.s32.totalorder %s6283_s2, %s5368_s10  ;;  %p5372_p11 = scmp.lt.u32.totalorder %s5368_s10, %s6283_s2 }
  0x38   :  { %p5374_p12 = pnand %p5372_p11, %p5369_p10 }
  0x3a   :  { %5377 = shalt.err (!%p5374_p12)
}
  0x3b   :  { %s5378_s15 = scalar_lea.vmem %s5525_s22, 17408  ;;  %p5383_p0 = scmp.lt.s32.totalorder %s5525_s22, %s5525_s22 }
  0x3c   :  { %p5379_p13 = scmp.ne.s32.totalorder %s5525_s22, %s5378_s15  ;;  %p5384_p1 = scmp.lt.s32.totalorder %s5378_s15, %s5378_s15 }
  0x3e   :  { %p5385_p2 = por %p5384_p1, %p5383_p0 }
  0x40   :  { %p5386_p3 = pnand %p5385_p2, %p5379_p13 }
  0x42   :  { %5389 = shalt.err (!%p5386_p3)
}
  0x43   :  { %s5448_s0 = smov 1088   ;;  %s5449_s16 = smov 68  }
  0x44   :  { %49 = dma.hbm_to_vmem [thread:$0]  %s6283_s2, 17408, %s5525_s22, [#allocation6], %s5448_s0, %s5448_s0, %s5449_s16  }
  0x45   :  { %s5450_s18 = smov [#allocation10]   ;;  %s5390_s24 = scalar_lea.hbm %s6285_s4, 768 }
  0x46   :  { %s67_s19 = sshll.u32 %s5450_s18, 4  ;;  %p5391_p4 = scmp.ne.s32.totalorder %s6285_s4, %s5390_s24  ;;  %s68_s19 = int_to_ptr.vmem [resolvable:$true] %s67_s19 }
  0x47   :  { %p5394_p5 = scmp.lt.u32.totalorder %s5390_s24, %s6285_s4 }
  0x49   :  { %p5396_p6 = pnand %p5394_p5, %p5391_p4 }
  0x4b   :  { %5399 = shalt.err (!%p5396_p6)
}
  0x4c   :  { %s5400_s29 = scalar_lea.vmem %s68_s19, 768  ;;  %p5405_p8 = scmp.lt.s32.totalorder %s68_s19, %s68_s19 }
  0x4d   :  { %p5401_p7 = scmp.ne.s32.totalorder %s68_s19, %s5400_s29  ;;  %p5406_p9 = scmp.lt.s32.totalorder %s5400_s29, %s5400_s29 }
  0x4f   :  { %p5407_p10 = por %p5406_p9, %p5405_p8 }
  0x51   :  { %p5408_p11 = pnand %p5407_p10, %p5401_p7 }
  0x53   :  { %5411 = shalt.err (!%p5408_p11)
}
  0x54   :  { %s5451_s2 = smov 384   ;;  %s5452_s22 = smov 24  }
  0x55   :  { %73 = dma.hbm_to_vmem [thread:$0]  %s6285_s4, 768, %s68_s19, [#allocation9], %s5451_s2, %s5451_s2, %s5452_s22  }
  0x56   :  { %5434 = dma.done.wait [#allocation3], 512  }
  0x57   :  { %5435 = vsyncadd [#allocation3], 4294966784 }
  0x58   :  { %5436 = dma.done.wait [#allocation6], 17664  }
  0x59   :  { %5437 = vsyncadd [#allocation6], 4294949632 }
  0x5a   :  { %5438 = dma.done.wait [#allocation9], 4864  }
  0x5b   :  { %5439 = vsyncadd [#allocation9], 4294962432  ;;  %v5453_v0 = vmov 0   ;;  %v4953_v1 = vld [vmem:[#allocation7 + $0x4] ss:$68 sps:$4 sm:$0xff]   ;;  %v90_v9 = vld [vmem:[#allocation2] sm:$0xff]  ;;  %v279_v20 = vlaneseq }
  0x5c   :  { %451 = vmatprep.mubr.bf16.mxu0 %v5453_v0  ;;  %v4955_v2 = vld [vmem:[#allocation7] ss:$68 sps:$4 sm:$0xff]   ;;  %419 = vmatprep.subr.bf16.mxu0 %v4953_v1  ;;  %v4956_v3 = vld [vmem:[#allocation7 + $0x8c] ss:$68 sps:$4 sm:$0xff]   ;;  %v4959_v5 = vld [vmem:[#allocation7 + $0x114] ss:$68 sps:$4 sm:$0xff]  }
  0x5d   :  { %420 = vmatpush1.bf16.msra.mxu0 %v4955_v2  ;;  %v4958_v4 = vld [vmem:[#allocation7 + $0x88] ss:$68 sps:$4 sm:$0xff]   ;;  %v4961_v6 = vld [vmem:[#allocation7 + $0x110] ss:$68 sps:$4 sm:$0xff]   ;;  %v4962_v7 = vld [vmem:[#allocation7 + $0x19c] ss:$68 sps:$4 sm:$0xff]  }
  0x5e   :  { %421 = vmatprep.subr.bf16.mxu0 %v4956_v3  ;;  %v4964_v8 = vld [vmem:[#allocation7 + $0x198] ss:$68 sps:$4 sm:$0xff]   ;;  %v4965_v10 = vld [vmem:[#allocation7 + $0x224] ss:$68 sps:$4 sm:$0xff]   ;;  %v4968_v14 = vld [vmem:[#allocation7 + $0x2ac] ss:$68 sps:$4 sm:$0xff]  }
  0x5f   :  { %v91_v11 = vld [vmem:[#allocation2 + $0x8] sm:$0xff]  ;;  %v4967_v13 = vld [vmem:[#allocation7 + $0x220] ss:$68 sps:$4 sm:$0xff]   ;;  %v4970_v15 = vld [vmem:[#allocation7 + $0x2a8] ss:$68 sps:$4 sm:$0xff]   ;;  %v5573_v21 = vshrl.u32 %v279_v20, 7 }
  0x60   :  { %v277_v12 = vpack.c.bf16 %v91_v11, %v90_v9  ;;  %v4971_v16 = vld [vmem:[#allocation7 + $0x334] ss:$68 sps:$4 sm:$0xff]   ;;  %v4974_v18 = vld [vmem:[#allocation7 + $0x3bc] ss:$68 sps:$4 sm:$0xff]   ;;  %v273_v23 = vld [vmem:[#allocation10 + $0x8] sm:$0xff]  ;;  %s5454_s4 = smov 64  }
  0x61   :  { %422 = vmatpush1.bf16.msra.mxu0 %v4958_v4  ;;  %v4973_v17 = vld [vmem:[#allocation7 + $0x330] ss:$68 sps:$4 sm:$0xff]   ;;  %v4976_v19 = vld [vmem:[#allocation7 + $0x3b8] ss:$68 sps:$4 sm:$0xff]   ;;  %v5576_v22 = vsub.s32 0, %v5573_v21  ;;  %v5578_v24 = vld [vmem:[#allocation10] sm:$0xff] }
  0x62   :  { %423 = vmatprep.subr.bf16.mxu0 %v4959_v5  ;;  %4513 = vmatprep.mubr.bf16.mxu1 %v277_v12  ;;  %v4977_v36 = vld [vmem:[#allocation7 + $0x8] ss:$68 sps:$4 sm:$0xff]   ;;  %v5455_v37 = vmov 0.0   ;;  %v4980_v38 = vld [vmem:[#allocation7 + $0x90] ss:$68 sps:$4 sm:$0xff]   ;;  %v5593_v42 = vld [vmem:[#allocation2 + $0x10] sm:$0xff] }
  0x63   :  { %v5581_v25 = vrot.slane %v273_v23, %v5576_v22  ;;  %v5585_v26 = vrot.slane %v5578_v24, %v5576_v22  ;;  %4497 = vmatprep.subr.bf16.mxu1 %v4977_v36  ;;  %v4983_v39 = vld [vmem:[#allocation7 + $0x118] ss:$68 sps:$4 sm:$0xff]   ;;  %v4986_v40 = vld [vmem:[#allocation7 + $0x1a0] ss:$68 sps:$4 sm:$0xff]   ;;  %v4989_v41 = vld [vmem:[#allocation7 + $0x228] ss:$68 sps:$4 sm:$0xff]  }
  0x64   :  { %4498 = vmatpush3.bf16.msra.mxu1 %v4977_v36  ;;  %v5595_v43 = vld [vmem:[#allocation2 + $0x18] sm:$0xff]  ;;  %v4992_v45 = vld [vmem:[#allocation7 + $0x2b0] ss:$68 sps:$4 sm:$0xff]   ;;  %v4995_v46 = vld [vmem:[#allocation7 + $0x338] ss:$68 sps:$4 sm:$0xff]   ;;  %vm5456_vm0 = vmmov 0  }
  0x65   :  { %424 = vmatpush1.bf16.msra.mxu0 %v4961_v6  ;;  %4499 = vmatprep.subr.bf16.mxu1 %v4980_v38  ;;  %v278_v44 = vpack.c.bf16 %v5595_v43, %v5593_v42  ;;  %v4998_v47 = vld [vmem:[#allocation7 + $0x3c0] ss:$68 sps:$4 sm:$0xff]   ;;  %vm559_vm1 = vcmask 523264   ;;  %v5614_v9 = vld [vmem:[#allocation7 + $0xc] ss:$68 sps:$4 sm:$0xff]   ;;  %vm606_vm2 = vcmask 130048  }
  0x66   :  { %425 = vmatprep.subr.bf16.mxu0 %v4962_v7  ;;  %v5618_v11 = vld [vmem:[#allocation7 + $0x94] ss:$68 sps:$4 sm:$0xff]   ;;  %vm2025_vm3 = vcmask 64512   ;;  %vm2041_vm4 = vcmask 1043456   ;;  %s5457_s7 = smov [#allocation11]  }
  0x67   :  { %v274_v23 = vld [vmem:[#allocation10 + $0x10] sm:$0xff]  ;;  %s4048_s8 = sshll.u32 %s5457_s7, 4  ;;  %s4049_s8 = int_to_ptr.vmem [resolvable:$true] %s4048_s8 }
  0x68   :  { %4500 = vmatpush3.bf16.msra.mxu1 %v4980_v38  ;;  %s5412_s9 = scalar_lea.vmem %s4049_s8, 256  ;;  %p5417_p13 = scmp.lt.s32.totalorder %s4049_s8, %s4049_s8 }
  0x69   :  { %426 = vmatpush1.bf16.msra.mxu0 %v4964_v8  ;;  %4501 = vmatprep.subr.bf16.mxu1 %v4983_v39  ;;  %p5413_p12 = scmp.ne.s32.totalorder %s4049_s8, %s5412_s9  ;;  %p5418_p0 = scmp.lt.s32.totalorder %s5412_s9, %s5412_s9 }
  0x6a   :  { %427 = vmatprep.subr.bf16.mxu0 %v4965_v10 }
  0x6b   :  { %p5419_p1 = por %p5418_p0, %p5417_p13 }
  0x6c   :  { %4502 = vmatpush3.bf16.msra.mxu1 %v4983_v39 }
  0x6d   :  { %428 = vmatpush1.bf16.msra.mxu0 %v4967_v13  ;;  %4503 = vmatprep.subr.bf16.mxu1 %v4986_v40  ;;  %v5628_v13 = vld [vmem:[#allocation7 + $0x1a4] ss:$68 sps:$4 sm:$0xff]   ;;  %p5420_p2 = pnand %p5419_p1, %p5413_p12 }
  0x6e   :  { %429 = vmatprep.subr.bf16.mxu0 %v4968_v14 }
  0x70   :  { %4504 = vmatpush3.bf16.msra.mxu1 %v4986_v40 }
  0x71   :  { %430 = vmatpush1.bf16.msra.mxu0 %v4970_v15  ;;  %4505 = vmatprep.subr.bf16.mxu1 %v4989_v41 }
  0x72   :  { %431 = vmatprep.subr.bf16.mxu0 %v4971_v16 }
  0x74   :  { %4506 = vmatpush3.bf16.msra.mxu1 %v4989_v41 }
  0x75   :  { %432 = vmatpush1.bf16.msra.mxu0 %v4973_v17  ;;  %4507 = vmatprep.subr.bf16.mxu1 %v4992_v45 }
  0x76   :  { %433 = vmatprep.subr.bf16.mxu0 %v4974_v18 }
  0x78   :  { %4508 = vmatpush3.bf16.msra.mxu1 %v4992_v45 }
  0x79   :  { %434 = vmatpush1.bf16.msra.mxu0 %v4976_v19  ;;  %4509 = vmatprep.subr.bf16.mxu1 %v4995_v46 }
  0x7a   :  { %4517 = vmatprep.subr.bf16.mxu0 %v5455_v37 }
  0x7c   :  { %452 = vmatmul.mubr.bf16.vlgmr.msra.gmra.mrb[0].mxu0 %v277_v12  ;;  %4510 = vmatpush3.bf16.msra.mxu1 %v4995_v46  ;;  %v5624_v12 = vld [vmem:[#allocation7 + $0x11c] ss:$68 sps:$4 sm:$0xff]  }
  0x7d   :  { %461 = vmatprep.mubr.bf16.mxu0 %v5453_v0  ;;  %4511 = vmatprep.subr.bf16.mxu1 %v4998_v47 }
  0x80   :  { %4512 = vmatpush3.bf16.msra.mxu1 %v4998_v47 }
  0x81   :  { %4535 = vmatprep.subr.bf16.mxu1 %v5455_v37 }
  0x83   :  { %4514 = vmatmul.mubr.bf16.vlgmr.msra.gmra.mrb[0].mxu1 %v278_v44 }
  0x84   :  { %462 = vmatmul.mubr.bf16.gmra.mrb[4].mxu0 %v278_v44  ;;  %4543 = vmatprep.mubr.msk.bf16.mxu1 %vm5456_vm0, %v5455_v37 }
  0x85   :  { %4525 = vmatprep.mubr.msk.bf16.mxu0 %vm5456_vm0, %v5455_v37 }
 0x14f   :  { %v453_v27 = vpop.f32.mrb[0].mxu0 }
 0x150   :  { %v455_v28 = vpop.f32.mrb[1].mxu0  ;;  %v454_v31 = vadd.f32 %v453_v27, %v5585_v26 }
 0x151   :  { %v457_v29 = vpop.f32.mrb[2].mxu0  ;;  %v456_v30 = vadd.f32 %v455_v28, %v5581_v25  ;;  %v290_v28 = vrot.slane %v274_v23, %v5576_v22 }
 0x152   :  { %v458_v32 = vadd.f32 %v457_v29, %v5585_v26  ;;  %v459_v33 = vpop.f32.mrb[3].mxu0 }
 0x153   :  { %521 = vxpose.xlu0.b32.start [1/2] (short) %v456_v30, 128  ;;  %v460_v35 = vadd.f32 %v459_v33, %v5581_v25 }
 0x154   :  { %v553_v34 = vpack.c.bf16 %v458_v32, %v454_v31 }
 0x156   :  { %680 = vrot.lane.b32.xlu1 %v553_v34, %s5454_s4  ;;  %v4515_v27 = vpop.f32.mrb[0].mxu1 }
 0x157   :  { %522 = vxpose.xlu0.b32.end [2/2] (short) %v460_v35, 128  ;;  %v463_v14 = vpop.f32.mrb[4].mxu0  ;;  %v506_v29 = vpop.f32.mrb[1].mxu1  ;;  %v515_v31 = vadd.f32 %v4515_v27, %v290_v28 }
 0x158   :  { %v464_v15 = vadd.f32 %v463_v14, %v5585_v26  ;;  %v5635_v16 = vpop.f32.mrb[5].mxu0  ;;  %v4516_v30 = vpop.f32.mrb[2].mxu1  ;;  %v507_v32 = vadd.f32 %v506_v29, %v290_v28 }
 0x159   :  { %v467_v17 = vpop.f32.mrb[6].mxu0  ;;  %v518_v33 = vadd.f32 %v4516_v30, %v290_v28 }
 0x15a   :  { %v468_v18 = vadd.f32 %v467_v17, %v5585_v26  ;;  %v5638_v19 = vpop.f32.mrb[7].mxu0 }
 0x15b   :  { %v5643_v36 = vpack.c.bf16 %v518_v33, %v515_v31  ;;  %v470_v23 = vadd.f32 %v5638_v19, %v5581_v25 }
 0x15c   :  { %v5640_v20 = vpack.c.bf16 %v468_v18, %v464_v15  ;;  %v466_v18 = vadd.f32 %v5635_v16, %v5581_v25 }
 0x1c8   :  { %v681_v10 = vpop.permute.xlu1 %680 }
 0x1d3   :  { %v537_v48 = vpop.trf.xlu0 }
 0x1d7   :  { %v538_v49 = vpop.trf.xlu0 }
 0x1d8   :  { %v554_v50 = vpack.c.bf16 %v538_v49, %v537_v48 }
 0x1da   :  { %4518 = vmatpush3.bf16.msra.mxu0 %v554_v50 }
 0x1db   :  { %v539_v51 = vpop.trf.xlu0  ;;  %4519 = vmatprep.subr.bf16.mxu0 %v5455_v37 }
 0x1df   :  { %v540_v52 = vpop.trf.xlu0 }
 0x1e0   :  { %v555_v53 = vpack.c.bf16 %v540_v52, %v539_v51 }
 0x1e2   :  { %4520 = vmatpush3.bf16.msra.mxu0 %v555_v53 }
 0x1e3   :  { %v541_v54 = vpop.trf.xlu0  ;;  %4521 = vmatprep.subr.bf16.mxu0 %v5455_v37 }
 0x1e7   :  { %v542_v55 = vpop.trf.xlu0 }
 0x1e8   :  { %v556_v56 = vpack.c.bf16 %v542_v55, %v541_v54 }
 0x1ea   :  { %4522 = vmatpush3.bf16.msra.mxu0 %v556_v56 }
 0x1eb   :  { %v543_v57 = vpop.trf.xlu0  ;;  %4523 = vmatprep.subr.bf16.mxu0 %v5455_v37 }
 0x1ef   :  { %v544_v58 = vpop.trf.xlu0 }
 0x1f0   :  { %v557_v59 = vpack.c.bf16 %v544_v58, %v543_v57 }
 0x1f2   :  { %4524 = vmatpush3.bf16.msra.mxu0 %v557_v59 }
 0x1f3   :  { %v545_v60 = vpop.trf.xlu0  ;;  %4529 = vmatprep.subr.bf16.mxu0 %v5455_v37 }
 0x1f5   :  { %4526 = vmatmul.mubr.msk.bf16.vlgmr.msra.gmra.mrb[8].mxu0 %vm559_vm1, %v553_v34  ;;  %v509_v34 = vpop.f32.mrb[3].mxu1 }
 0x1f6   :  { %4531 = vmatprep.mubr.msk.bf16.mxu0 %vm5456_vm0, %v5455_v37  ;;  %v510_v35 = vadd.f32 %v509_v34, %v290_v28 }
 0x1f7   :  { %v546_v61 = vpop.trf.xlu0 }
 0x1f8   :  { %v675_v62 = vpack.c.bf16 %v546_v61, %v545_v60  ;;  %v558_v38 = vpack.c.bf16 %v510_v35, %v507_v32 }
 0x1fa   :  { %4536 = vmatpush3.bf16.msra.mxu1 %v675_v62  ;;  %4530 = vmatpush3.bf16.msra.mxu0 %v558_v38 }
 0x1fb   :  { %v547_v63 = vpop.trf.xlu0  ;;  %4537 = vmatprep.subr.bf16.mxu1 %v5455_v37  ;;  %4547 = vmatprep.subr.bf16.mxu0 %v5455_v37 }
 0x1ff   :  { %v548_v1 = vpop.trf.xlu0 }
 0x200   :  { %v676_v2 = vpack.c.bf16 %v548_v1, %v547_v63 }
 0x202   :  { %4538 = vmatpush3.bf16.msra.mxu1 %v676_v2 }
 0x203   :  { %v549_v3 = vpop.trf.xlu0  ;;  %4539 = vmatprep.subr.bf16.mxu1 %v5455_v37 }
 0x207   :  { %v550_v4 = vpop.trf.xlu0 }
 0x208   :  { %v677_v5 = vpack.c.bf16 %v550_v4, %v549_v3 }
 0x20a   :  { %4540 = vmatpush3.bf16.msra.mxu1 %v677_v5 }
 0x20b   :  { %v551_v6 = vpop.trf.xlu0  ;;  %4541 = vmatprep.subr.bf16.mxu1 %v5455_v37 }
 0x20f   :  { %v552_v7 = vpop.trf.xlu0 }
 0x210   :  { %v678_v8 = vpack.c.bf16 %v552_v7, %v551_v6 }
 0x212   :  { %4542 = vmatpush3.bf16.msra.mxu1 %v678_v8 }
 0x213   :  { %4565 = vmatprep.subr.bf16.mxu1 %v5455_v37 }
 0x215   :  { %4544 = vmatmul.mubr.msk.bf16.vlgmr.msra.gmra.mrb[4].mxu1 %vm559_vm1, %v681_v10 }
 0x216   :  { %4566 = vmatpush3.bf16.msra.mxu1 %v5614_v9  ;;  %4573 = vmatprep.mubr.msk.bf16.mxu1 %vm5456_vm0, %v5455_v37 }
 0x217   :  { %4567 = vmatprep.subr.bf16.mxu1 %v5455_v37 }
 0x21a   :  { %4568 = vmatpush3.bf16.msra.mxu1 %v5618_v11 }
 0x21b   :  { %4569 = vmatprep.subr.bf16.mxu1 %v5455_v37 }
 0x21e   :  { %4570 = vmatpush3.bf16.msra.mxu1 %v5624_v12 }
 0x21f   :  { %4571 = vmatprep.subr.bf16.mxu1 %v5455_v37 }
 0x222   :  { %4572 = vmatpush3.bf16.msra.mxu1 %v5628_v13 }
 0x223   :  { %4589 = vmatprep.subr.bf16.mxu1 %v5455_v37 }
 0x2c8   :  { %v597_v26 = vpop.f32.mrb[8].mxu0 }
 0x2c9   :  { %v604_v39 = vmul.f32 0.125, %v597_v26  ;;  %v4527_v40 = vpop.f32.mrb[9].mxu0 }
 0x2ca   :  { %v600_v41 = vpop.f32.mrb[10].mxu0 }
 0x2cb   :  { %v605_v44 = vmul.f32 0.125, %v600_v41  ;;  %v4528_v45 = vpop.f32.mrb[11].mxu0  ;;  %v607_v46 = vsel %vm606_vm2, %v604_v39, -inf  ;;  %v5666_v41 = vld [vmem:[#allocation7 + $0x2b4] ss:$68 sps:$4 sm:$0xff]  }
 0x2cc   :  { %608 = vmax.xlane.f32.xlu1 %v607_v46  ;;  %v5676_v45 = vld [vmem:[#allocation7 + $0x3c4] ss:$68 sps:$4 sm:$0xff]  }
 0x2cd   :  { %v610_v47 = vsel %vm606_vm2, %v605_v44, -inf }
 0x2ce   :  { %611 = vmax.xlane.f32.xlu0 %v610_v47 }
 0x2e8   :  { %v719_v48 = vpop.f32.mrb[4].mxu1 }
 0x2e9   :  { %v726_v49 = vmul.f32 0.125, %v719_v48  ;;  %v4545_v50 = vpop.f32.mrb[5].mxu1 }
 0x2ea   :  { %v722_v51 = vpop.f32.mrb[6].mxu1 }
 0x2eb   :  { %v727_v52 = vmul.f32 0.125, %v722_v51  ;;  %v4546_v53 = vpop.f32.mrb[7].mxu1  ;;  %v728_v54 = vsel %vm606_vm2, %v726_v49, -inf }
 0x2ec   :  { %729 = vmax.xlane.f32.xlu1 %v728_v54 }
 0x2ed   :  { %v731_v55 = vsel %vm606_vm2, %v727_v52, -inf }
 0x2f0   :  { %732 = vmax.xlane.f32.xlu1 %v731_v55 }
 0x359   :  { %v609_v56 = vpop.xlane.xlu1 %608 }
 0x35a   :  { %v613_v57 = vsub.f32 %v604_v39, %v609_v56  ;;  %v5663_v39 = vld [vmem:[#allocation7 + $0x22c] ss:$68 sps:$4 sm:$0xff]  }
 0x35b   :  { %v612_v58 = vpop.xlane.xlu0 %611 }
 0x35c   :  { %v615_v59 = vmul.f32 1.442695, %v613_v57  ;;  %v614_v60 = vsub.f32 %v605_v44, %v612_v58  ;;  %v5672_v44 = vld [vmem:[#allocation7 + $0x33c] ss:$68 sps:$4 sm:$0xff]  }
 0x35e   :  { %5201 = vpow2.f32 %v615_v59  ;;  %v617_v61 = vmul.f32 1.442695, %v614_v60 }
 0x360   :  { %5203 = vpow2.f32 %v617_v61 }
 0x368   :  { %v5202_v62 = vpop.eup %5201 }
 0x369   :  { %v619_v63 = vsel %vm606_vm2, %v5202_v62, 0.0 }
 0x36a   :  { %v5204_v1 = vpop.eup %5203  ;;  %620 = vadd.xlane.f32.xlu1 %v619_v63 }
 0x36b   :  { %v622_v2 = vsel %vm606_vm2, %v5204_v1, 0.0 }
 0x36e   :  { %623 = vadd.xlane.f32.xlu1 %v622_v2 }
 0x379   :  { %v730_v3 = vpop.xlane.xlu1 %729 }
 0x37a   :  { %v734_v4 = vsub.f32 %v726_v49, %v730_v3 }
 0x37c   :  { %v736_v5 = vmul.f32 1.442695, %v734_v4 }
 0x37d   :  { %v733_v6 = vpop.xlane.xlu1 %732 }
 0x37e   :  { %5205 = vpow2.f32 %v736_v5  ;;  %v735_v7 = vsub.f32 %v727_v52, %v733_v6 }
 0x380   :  { %v738_v8 = vmul.f32 1.442695, %v735_v7 }
 0x382   :  { %5207 = vpow2.f32 %v738_v8 }
 0x388   :  { %v5206_v10 = vpop.eup %5205 }
 0x389   :  { %v740_v14 = vsel %vm606_vm2, %v5206_v10, 0.0 }
 0x38a   :  { %741 = vadd.xlane.f32.xlu1 %v740_v14 }
 0x38c   :  { %v5208_v15 = vpop.eup %5207 }
 0x38d   :  { %v743_v17 = vsel %vm606_vm2, %v5208_v15, 0.0 }
 0x38e   :  { %744 = vadd.xlane.f32.xlu1 %v743_v17 }
 0x39f   :  { %752 = vrot.lane.b32.xlu1 %v558_v38, %s5454_s4 }
 0x3c8   :  { %926 = vxpose.xlu1.b32.start [1/2] (short) %v466_v18, 128 }
 0x3cc   :  { %927 = vxpose.xlu1.b32.end [2/2] (short) %v470_v23, 128 }
 0x3f7   :  { %v621_v27 = vpop.xlane.xlu1 %620 }
 0x3f8   :  { %5209 = vrcp.f32 %v621_v27 }
 0x3fb   :  { %v624_v28 = vpop.xlane.xlu1 %623 }
 0x3fc   :  { %5211 = vrcp.f32 %v624_v28 }
 0x402   :  { %v5210_v29 = vpop.eup %5209 }
 0x403   :  { %v627_v31 = vmul.f32 %v5210_v29, %v5202_v62 }
 0x406   :  { %v5212_v30 = vpop.eup %5211 }
 0x407   :  { %v628_v32 = vmul.f32 %v5212_v30, %v5204_v1 }
 0x409   :  { %v629_v33 = vpack.c.bf16 %v628_v32, %v627_v31 }
 0x40b   :  { %4532 = vmatmul.mubr.msk.bf16.vlgmr.msra.gmra.mrb[12].mxu0 %vm606_vm2, %v629_v33 }
 0x40c   :  { %4549 = vmatprep.mubr.msk.bf16.mxu0 %vm5456_vm0, %v5455_v37 }
 0x417   :  { %v742_v16 = vpop.xlane.xlu1 %741 }
 0x418   :  { %5213 = vrcp.f32 %v742_v16 }
 0x41b   :  { %v745_v34 = vpop.xlane.xlu1 %744 }
 0x41c   :  { %5215 = vrcp.f32 %v745_v34 }
 0x41f   :  { %v753_v25 = vpop.permute.xlu1 %752 }
 0x420   :  { %4548 = vmatpush3.bf16.msra.mxu0 %v753_v25 }
 0x421   :  { %4553 = vmatprep.subr.bf16.mxu0 %v5455_v37 }
 0x422   :  { %v5214_v19 = vpop.eup %5213 }
 0x423   :  { %v748_v38 = vmul.f32 %v5214_v19, %v5206_v10 }
 0x426   :  { %v5216_v35 = vpop.eup %5215 }
 0x427   :  { %v749_v26 = vmul.f32 %v5216_v35, %v5208_v15 }
 0x429   :  { %v750_v40 = vpack.c.bf16 %v749_v26, %v748_v38 }
 0x42b   :  { %4550 = vmatmul.mubr.msk.bf16.vlgmr.msra.gmra.mrb[16].mxu0 %vm606_vm2, %v750_v40 }
 0x42c   :  { %4554 = vmatpush3.bf16.msra.mxu0 %v5663_v39  ;;  %4561 = vmatprep.mubr.msk.bf16.mxu0 %vm5456_vm0, %v5455_v37 }
 0x42d   :  { %4555 = vmatprep.subr.bf16.mxu0 %v5455_v37 }
 0x430   :  { %4556 = vmatpush3.bf16.msra.mxu0 %v5666_v41 }
 0x431   :  { %4557 = vmatprep.subr.bf16.mxu0 %v5455_v37 }
 0x434   :  { %4558 = vmatpush3.bf16.msra.mxu0 %v5672_v44 }
 0x435   :  { %4559 = vmatprep.subr.bf16.mxu0 %v5455_v37 }
 0x438   :  { %4560 = vmatpush3.bf16.msra.mxu0 %v5676_v45 }
 0x439   :  { %4577 = vmatprep.subr.bf16.mxu0 %v5455_v37 }
 0x448   :  { %v942_v51 = vpop.trf.xlu1 }
 0x44c   :  { %v943_v52 = vpop.trf.xlu1 }
 0x44d   :  { %v959_v62 = vpack.c.bf16 %v943_v52, %v942_v51 }
 0x450   :  { %v944_v53 = vpop.trf.xlu1 }
 0x454   :  { %v945_v54 = vpop.trf.xlu1 }
 0x455   :  { %v960_v1 = vpack.c.bf16 %v945_v54, %v944_v53 }
 0x458   :  { %v946_v55 = vpop.trf.xlu1 }
 0x45c   :  { %v947_v58 = vpop.trf.xlu1 }
 0x45d   :  { %v961_v2 = vpack.c.bf16 %v947_v58, %v946_v55 }
 0x460   :  { %v948_v63 = vpop.trf.xlu1 }
 0x464   :  { %v949_v3 = vpop.trf.xlu1 }
 0x465   :  { %v962_v4 = vpack.c.bf16 %v949_v3, %v948_v63 }
 0x4de   :  { %v667_v46 = vpop.f32.mrb[12].mxu0 }
 0x4df   :  { %v4533_v47 = vpop.f32.mrb[13].mxu0 }
 0x4e0   :  { %v670_v48 = vpop.f32.mrb[14].mxu0 }
 0x4e1   :  { %v674_v49 = vpack.c.bf16 %v670_v48, %v667_v46  ;;  %v4534_v50 = vpop.f32.mrb[15].mxu0 }
 0x4e3   :  { %4574 = vmatmul.mubr.msk.bf16.vlgmr.msra.gmra.mrb[8].mxu1 %vm559_vm1, %v674_v49  ;;  %v950_v49 = vpop.trf.xlu1 }
 0x4e4   :  { %4590 = vmatpush3.bf16.msra.mxu1 %v5643_v36  ;;  %4591 = vmatprep.mubr.msk.bf16.mxu1 %vm5456_vm0, %v5455_v37 }
 0x4e5   :  { %4595 = vmatprep.subr.bf16.mxu1 %v5455_v37 }
 0x4e7   :  { %v951_v50 = vpop.trf.xlu1 }
 0x4eb   :  { %v952_v51 = vpop.trf.xlu1 }
 0x4ef   :  { %v953_v54 = vpop.trf.xlu1 }
 0x4f0   :  { %v1079_v63 = vpack.c.bf16 %v953_v54, %v952_v51  ;;  %v5294_v51 = vld [vmem:[#allocation2] sm:$0xff] }
 0x4f3   :  { %v954_v55 = vpop.trf.xlu1 }
 0x4fe   :  { %v792_v56 = vpop.f32.mrb[16].mxu0 }
 0x4ff   :  { %v4551_v57 = vpop.f32.mrb[17].mxu0 }
 0x500   :  { %v795_v59 = vpop.f32.mrb[18].mxu0 }
 0x501   :  { %v799_v60 = vpack.c.bf16 %v795_v59, %v792_v56  ;;  %v4552_v61 = vpop.f32.mrb[19].mxu0 }
 0x503   :  { %4562 = vmatmul.mubr.msk.bf16.vlgmr.msra.gmra.mrb[20].mxu0 %vm559_vm1, %v799_v60  ;;  %v955_v60 = vpop.trf.xlu1 }
 0x504   :  { %4578 = vmatpush3.bf16.msra.mxu0 %v959_v62  ;;  %4585 = vmatprep.mubr.msk.bf16.mxu0 %vm5456_vm0, %v5455_v37  ;;  %v1078_v62 = vpack.c.bf16 %v951_v50, %v950_v49 }
 0x505   :  { %4579 = vmatprep.subr.bf16.mxu0 %v5455_v37 }
 0x508   :  { %4580 = vmatpush3.bf16.msra.mxu0 %v960_v1  ;;  %v1080_v1 = vpack.c.bf16 %v955_v60, %v954_v55 }
 0x509   :  { %4581 = vmatprep.subr.bf16.mxu0 %v5455_v37 }
 0x50c   :  { %4582 = vmatpush3.bf16.msra.mxu0 %v961_v2 }
 0x50d   :  { %4583 = vmatprep.subr.bf16.mxu0 %v5455_v37 }
 0x510   :  { %4584 = vmatpush3.bf16.msra.mxu0 %v962_v4 }
 0x511   :  { %4607 = vmatprep.subr.bf16.mxu0 %v5455_v37 }
 0x513   :  { %4586 = vmatmul.mubr.msk.bf16.vlgmr.msra.gmra.mrb[24].mxu0 %vm559_vm1, %v5640_v20 }
 0x514   :  { %4609 = vmatprep.mubr.msk.bf16.mxu0 %vm5456_vm0, %v5455_v37 }
 0x5b6   :  { %v913_v5 = vpop.f32.mrb[8].mxu1 }
 0x5b7   :  { %v4575_v6 = vpop.f32.mrb[9].mxu1 }
 0x5b8   :  { %v916_v7 = vpop.f32.mrb[10].mxu1 }
 0x5b9   :  { %v4576_v8 = vpop.f32.mrb[11].mxu1 }
 0x5d6   :  { %v853_v10 = vpop.f32.mrb[20].mxu0 }
 0x5d7   :  { %v5698_v14 = vadd.f32 %v913_v5, %v853_v10  ;;  %v4563_v15 = vpop.f32.mrb[21].mxu0  ;;  %v5727_v10 = vsub.s32 1, %v5573_v21 }
 0x5d8   :  { %v856_v17 = vpop.f32.mrb[22].mxu0 }
 0x5d9   :  { %v5700_v18 = vadd.f32 %v916_v7, %v856_v17  ;;  %v4564_v23 = vpop.f32.mrb[23].mxu0 }
 0x5e6   :  { %v1001_v27 = vpop.f32.mrb[24].mxu0 }
 0x5e7   :  { %v1008_v28 = vmul.f32 0.125, %v1001_v27  ;;  %v4587_v29 = vpop.f32.mrb[25].mxu0 }
 0x5e8   :  { %v1004_v30 = vpop.f32.mrb[26].mxu0 }
 0x5e9   :  { %v1009_v31 = vmul.f32 0.125, %v1004_v30  ;;  %v4588_v32 = vpop.f32.mrb[27].mxu0  ;;  %v1010_v33 = vsel %vm606_vm2, %v1008_v28, -inf }
 0x5ea   :  { %1011 = vmax.xlane.f32.xlu0 %v1010_v33 }
 0x5eb   :  { %v1013_v16 = vsel %vm606_vm2, %v1009_v31, -inf }
 0x5ee   :  { %1014 = vmax.xlane.f32.xlu0 %v1013_v16 }
 0x677   :  { %v1012_v34 = vpop.xlane.xlu0 %1011 }
 0x678   :  { %v1016_v25 = vsub.f32 %v1008_v28, %v1012_v34 }
 0x67a   :  { %v1018_v19 = vmul.f32 1.442695, %v1016_v25 }
 0x67b   :  { %v1015_v35 = vpop.xlane.xlu0 %1014 }
 0x67c   :  { %5217 = vpow2.f32 %v1018_v19  ;;  %v1017_v38 = vsub.f32 %v1009_v31, %v1015_v35  ;;  %v5293_v31 = vld [vmem:[#allocation2 + $0x8] sm:$0xff] }
 0x67e   :  { %v1020_v26 = vmul.f32 1.442695, %v1017_v38 }
 0x680   :  { %5219 = vpow2.f32 %v1020_v26 }
 0x686   :  { %v5218_v40 = vpop.eup %5217 }
 0x687   :  { %v1022_v46 = vsel %vm606_vm2, %v5218_v40, 0.0 }
 0x688   :  { %1023 = vadd.xlane.f32.xlu0 %v1022_v46 }
 0x68a   :  { %v5220_v47 = vpop.eup %5219 }
 0x68b   :  { %v1025_v48 = vsel %vm606_vm2, %v5220_v47, 0.0 }
 0x68c   :  { %1026 = vadd.xlane.f32.xlu0 %v1025_v48 }
 0x6a2   :  { %1083 = vrot.lane.b32.xlu0 %v5640_v20, %s5454_s4  ;;  %v956_v20 = vpop.trf.xlu1 }
 0x6a6   :  { %v957_v2 = vpop.trf.xlu1 }
 0x6a7   :  { %v1081_v3 = vpack.c.bf16 %v957_v2, %v956_v20 }
 0x715   :  { %v1024_v52 = vpop.xlane.xlu0 %1023 }
 0x716   :  { %5221 = vrcp.f32 %v1024_v52 }
 0x719   :  { %v1027_v53 = vpop.xlane.xlu0 %1026 }
 0x71a   :  { %5223 = vrcp.f32 %v1027_v53 }
 0x71d   :  { %v1084_v4 = vpop.permute.xlu0 %1083 }
 0x720   :  { %v5222_v56 = vpop.eup %5221 }
 0x721   :  { %v1030_v58 = vmul.f32 %v5222_v56, %v5218_v40 }
 0x724   :  { %v5224_v57 = vpop.eup %5223 }
 0x725   :  { %v1031_v59 = vmul.f32 %v5224_v57, %v5220_v47 }
 0x727   :  { %v1032_v61 = vpack.c.bf16 %v1031_v59, %v1030_v58 }
 0x729   :  { %4592 = vmatmul.mubr.msk.bf16.vlgmr.msra.gmra.mrb[12].mxu1 %vm606_vm2, %v1032_v61 }
 0x72a   :  { %4596 = vmatpush3.bf16.msra.mxu1 %v1078_v62  ;;  %4603 = vmatprep.mubr.msk.bf16.mxu1 %vm5456_vm0, %v5455_v37 }
 0x72b   :  { %4597 = vmatprep.subr.bf16.mxu1 %v5455_v37 }
 0x72e   :  { %4598 = vmatpush3.bf16.msra.mxu1 %v1079_v63 }
 0x72f   :  { %4599 = vmatprep.subr.bf16.mxu1 %v5455_v37 }
 0x732   :  { %4600 = vmatpush3.bf16.msra.mxu1 %v1080_v1 }
 0x733   :  { %4601 = vmatprep.subr.bf16.mxu1 %v5455_v37 }
 0x736   :  { %4602 = vmatpush3.bf16.msra.mxu1 %v1081_v3 }
 0x737   :  { %4625 = vmatprep.subr.bf16.mxu1 %v5455_v37 }
 0x739   :  { %4604 = vmatmul.mubr.msk.bf16.vlgmr.msra.gmra.mrb[16].mxu1 %vm559_vm1, %v1084_v4 }
 0x73a   :  { %4626 = vmatpush3.bf16.msra.mxu1 %v5614_v9  ;;  %4633 = vmatprep.mubr.msk.bf16.mxu1 %vm5456_vm0, %v5455_v37 }
 0x73b   :  { %4627 = vmatprep.subr.bf16.mxu1 %v5455_v37 }
 0x73e   :  { %4628 = vmatpush3.bf16.msra.mxu1 %v5618_v11  ;;  %v5731_v11 = vrot.slane %v5578_v24, %v5727_v10 }
 0x73f   :  { %4629 = vmatprep.subr.bf16.mxu1 %v5455_v37 }
 0x740   :  { %v924_v50 = vadd.f32 %v5731_v11, %v5698_v14 }
 0x742   :  { %4630 = vmatpush3.bf16.msra.mxu1 %v5624_v12  ;;  %v1301_v52 = vadd.f32 %v5294_v51, %v924_v50 }
 0x743   :  { %4631 = vmatprep.subr.bf16.mxu1 %v5455_v37 }
 0x746   :  { %4632 = vmatpush3.bf16.msra.mxu1 %v5628_v13  ;;  %v925_v13 = vadd.f32 %v5731_v11, %v5700_v18 }
 0x748   :  { %v5737_v32 = vadd.f32 %v5293_v31, %v925_v13  ;;  %v5015_v31 = vld [vmem:[#allocation7 + $0x234] ss:$68 sps:$4 sm:$0xff]  }
 0x7fc   :  { %v1070_v5 = vpop.f32.mrb[12].mxu1 }
 0x7fd   :  { %v4593_v6 = vpop.f32.mrb[13].mxu1 }
 0x7fe   :  { %v1073_v7 = vpop.f32.mrb[14].mxu1 }
 0x7ff   :  { %v1077_v8 = vpack.c.bf16 %v1073_v7, %v1070_v5  ;;  %v4594_v9 = vpop.f32.mrb[15].mxu1 }
 0x801   :  { %4634 = vmatmul.mubr.msk.bf16.vlgmr.msra.gmra.mrb[20].mxu1 %vm559_vm1, %v1077_v8 }
 0x80c   :  { %v1122_v15 = vpop.f32.mrb[16].mxu1 }
 0x80d   :  { %v1129_v12 = vmul.f32 0.125, %v1122_v15  ;;  %v4605_v17 = vpop.f32.mrb[17].mxu1 }
 0x80e   :  { %v1125_v23 = vpop.f32.mrb[18].mxu1 }
 0x80f   :  { %v1130_v27 = vmul.f32 0.125, %v1125_v23  ;;  %v4606_v28 = vpop.f32.mrb[19].mxu1  ;;  %v1131_v29 = vsel %vm606_vm2, %v1129_v12, -inf  ;;  %v5003_v23 = vld [vmem:[#allocation7 + $0x14] ss:$68 sps:$4 sm:$0xff]  }
 0x810   :  { %1132 = vmax.xlane.f32.xlu1 %v1131_v29  ;;  %v5007_v28 = vld [vmem:[#allocation7 + $0x120] ss:$68 sps:$4 sm:$0xff]   ;;  %v5012_v29 = vld [vmem:[#allocation7 + $0x1ac] ss:$68 sps:$4 sm:$0xff]  }
 0x811   :  { %v1134_v30 = vsel %vm606_vm2, %v1130_v27, -inf }
 0x812   :  { %1135 = vmax.xlane.f32.xlu0 %v1134_v30  ;;  %v5010_v30 = vld [vmem:[#allocation7 + $0x1a8] ss:$68 sps:$4 sm:$0xff]  }
 0x814   :  { %1307 = vadd.xlane.f32.xlu1 %v5737_v32 }
 0x89d   :  { %v1133_v33 = vpop.xlane.xlu1 %1132 }
 0x89e   :  { %v1137_v16 = vsub.f32 %v1129_v12, %v1133_v33  ;;  %v5018_v33 = vld [vmem:[#allocation7 + $0x2bc] ss:$68 sps:$4 sm:$0xff]  }
 0x89f   :  { %v1136_v34 = vpop.xlane.xlu0 %1135 }
 0x8a0   :  { %v1139_v25 = vmul.f32 1.442695, %v1137_v16  ;;  %v1138_v19 = vsub.f32 %v1130_v27, %v1136_v34  ;;  %v5004_v27 = vld [vmem:[#allocation7 + $0x98] ss:$68 sps:$4 sm:$0xff]   ;;  %v5021_v34 = vld [vmem:[#allocation7 + $0x344] ss:$68 sps:$4 sm:$0xff]  }
 0x8a1   :  { %v1308_v7 = vpop.xlane.xlu1 %1307  ;;  %v5016_v16 = vld [vmem:[#allocation7 + $0x2b8] ss:$68 sps:$4 sm:$0xff]  }
 0x8a2   :  { %5225 = vpow2.f32 %v1139_v25  ;;  %v1141_v18 = vmul.f32 1.442695, %v1138_v19  ;;  %v1315_v8 = vmul.f32 0.0078125, %v1308_v7  ;;  %v5019_v25 = vld [vmem:[#allocation7 + $0x340] ss:$68 sps:$4 sm:$0xff]  }
 0x8a3   :  { %v5024_v19 = vld [vmem:[#allocation7 + $0x3cc] ss:$68 sps:$4 sm:$0xff]   ;;  %v5037_v7 = vld [vmem:[#allocation7 + $0x238] ss:$68 sps:$4 sm:$0xff]  }
 0x8a4   :  { %5227 = vpow2.f32 %v1141_v18  ;;  %v5764_v12 = vsub.f32 %v5737_v32, %v1315_v8  ;;  %v5013_v32 = vld [vmem:[#allocation7 + $0x230] ss:$68 sps:$4 sm:$0xff]   ;;  %v5022_v18 = vld [vmem:[#allocation7 + $0x3c8] ss:$68 sps:$4 sm:$0xff]  }
 0x8a5   :  { %v5042_v8 = vld [vmem:[#allocation7 + $0x2c4] ss:$68 sps:$4 sm:$0xff]  }
 0x8a6   :  { %v1323_v13 = vmul.f32 %v5764_v12, %v5764_v12 }
 0x8ac   :  { %v5226_v35 = vpop.eup %5225 }
 0x8ad   :  { %v1143_v38 = vsel %vm606_vm2, %v5226_v35, 0.0 }
 0x8ae   :  { %v5228_v26 = vpop.eup %5227  ;;  %1144 = vadd.xlane.f32.xlu0 %v1143_v38 }
 0x8af   :  { %v1146_v40 = vsel %vm606_vm2, %v5228_v26, 0.0 }
 0x8b2   :  { %1147 = vadd.xlane.f32.xlu0 %v1146_v40 }
 0x8c8   :  { %1155 = vrot.lane.b32.xlu0 %v5643_v36, %s5454_s4 }
 0x8d4   :  { %v1284_v46 = vpop.f32.mrb[20].mxu1 }
 0x8d5   :  { %v4635_v47 = vpop.f32.mrb[21].mxu1 }
 0x8d6   :  { %v1287_v48 = vpop.f32.mrb[22].mxu1 }
 0x8d7   :  { %v4636_v49 = vpop.f32.mrb[23].mxu1 }
 0x8e7   :  { %1305 = vadd.xlane.f32.xlu0 %v1301_v52 }
 0x93b   :  { %v1145_v53 = vpop.xlane.xlu0 %1144 }
 0x93c   :  { %5229 = vrcp.f32 %v1145_v53 }
 0x93f   :  { %v1148_v54 = vpop.xlane.xlu0 %1147 }
 0x940   :  { %5231 = vrcp.f32 %v1148_v54 }
 0x943   :  { %v1156_v55 = vpop.permute.xlu0 %1155 }
 0x944   :  { %4608 = vmatpush3.bf16.msra.mxu0 %v1156_v55 }
 0x945   :  { %4613 = vmatprep.subr.bf16.mxu0 %v5455_v37 }
 0x946   :  { %v5230_v56 = vpop.eup %5229 }
 0x947   :  { %v1151_v57 = vmul.f32 %v5230_v56, %v5226_v35  ;;  %v1295_v56 = vsub.s32 4, %v5573_v21 }
 0x94a   :  { %v5232_v36 = vpop.eup %5231 }
 0x94b   :  { %v1152_v58 = vmul.f32 %v5232_v36, %v5228_v26  ;;  %v5027_v36 = vld [vmem:[#allocation7 + $0x1c] ss:$68 sps:$4 sm:$0xff]  }
 0x94d   :  { %v1153_v59 = vpack.c.bf16 %v1152_v58, %v1151_v57  ;;  %v5780_v58 = vrot.slane %v5578_v24, %v1295_v56 }
 0x94f   :  { %4610 = vmatmul.mubr.msk.bf16.vlgmr.msra.gmra.mrb[28].mxu0 %vm606_vm2, %v1153_v59  ;;  %v1299_v59 = vsub.s32 5, %v5573_v21 }
 0x950   :  { %4614 = vmatpush3.bf16.msra.mxu0 %v5663_v39  ;;  %4621 = vmatprep.mubr.msk.bf16.mxu0 %vm5456_vm0, %v5455_v37 }
 0x951   :  { %4615 = vmatprep.subr.bf16.mxu0 %v5455_v37 }
 0x954   :  { %4616 = vmatpush3.bf16.msra.mxu0 %v5666_v41 }
 0x955   :  { %4617 = vmatprep.subr.bf16.mxu0 %v5455_v37 }
 0x958   :  { %4618 = vmatpush3.bf16.msra.mxu0 %v5672_v44 }
 0x959   :  { %4619 = vmatprep.subr.bf16.mxu0 %v5455_v37 }
 0x95c   :  { %4620 = vmatpush3.bf16.msra.mxu0 %v5676_v45 }
 0x95d   :  { %1448 = vmatprep.subr.bf16.mxu0 %v5003_v23  ;;  %v5043_v23 = vld [vmem:[#allocation7 + $0x348] ss:$68 sps:$4 sm:$0xff]  }
 0x974   :  { %v1306_v1 = vpop.xlane.xlu0 %1305 }
 0x975   :  { %v1314_v5 = vmul.f32 0.0078125, %v1306_v1  ;;  %v5025_v1 = vld [vmem:[#allocation7 + $0x18] ss:$68 sps:$4 sm:$0xff]  }
 0x977   :  { %v1318_v15 = vsub.f32 %v1301_v52, %v1314_v5  ;;  %v5036_v5 = vld [vmem:[#allocation7 + $0x1b4] ss:$68 sps:$4 sm:$0xff]  }
 0x979   :  { %v1322_v17 = vmul.f32 %v1318_v15, %v1318_v15 }
 0xa22   :  { %v1195_v14 = vpop.f32.mrb[28].mxu0 }
 0xa23   :  { %v4611_v60 = vpop.f32.mrb[29].mxu0 }
 0xa24   :  { %v1198_v61 = vpop.f32.mrb[30].mxu0 }
 0xa25   :  { %v1202_v62 = vpack.c.bf16 %v1198_v61, %v1195_v14  ;;  %v4612_v39 = vpop.f32.mrb[31].mxu0  ;;  %v5786_v61 = vrot.slane %v5578_v24, %v1299_v59  ;;  %v5028_v24 = vld [vmem:[#allocation7 + $0xa0] ss:$68 sps:$4 sm:$0xff]  }
 0xa27   :  { %4622 = vmatmul.mubr.msk.bf16.vlgmr.msra.gmra.mrb[32].mxu0 %vm559_vm1, %v1202_v62 }
 0xa28   :  { %1480 = vmatprep.mubr.bf16.mxu0 %v5453_v0 }
 0xafa   :  { %v1240_v20 = vpop.f32.mrb[32].mxu0 }
 0xafb   :  { %v1285_v63 = vadd.f32 %v1284_v46, %v1240_v20  ;;  %v4623_v41 = vpop.f32.mrb[33].mxu0 }
 0xafc   :  { %v1243_v2 = vpop.f32.mrb[34].mxu0 }
 0xafd   :  { %v1291_v44 = vadd.f32 %v1285_v63, %v5731_v11  ;;  %v1288_v3 = vadd.f32 %v1287_v48, %v1243_v2  ;;  %v4624_v4 = vpop.f32.mrb[35].mxu0 }
 0xafe   :  { %v5031_v4 = vld [vmem:[#allocation7 + $0x128] ss:$68 sps:$4 sm:$0xff]  }
 0xaff   :  { %v1292_v45 = vadd.f32 %v1288_v3, %v5731_v11  ;;  %v1303_v6 = vadd.f32 %v1291_v44, %v5593_v42  ;;  %v5001_v11 = vld [vmem:[#allocation7 + $0x10] ss:$68 sps:$4 sm:$0xff]   ;;  %v5006_v42 = vld [vmem:[#allocation7 + $0x9c] ss:$68 sps:$4 sm:$0xff]   ;;  %v5030_v44 = vld [vmem:[#allocation7 + $0xa4] ss:$68 sps:$4 sm:$0xff]  }
 0xb00   :  { %1449 = vmatpush1.bf16.msra.mxu0 %v5001_v11  ;;  %v5033_v3 = vld [vmem:[#allocation7 + $0x12c] ss:$68 sps:$4 sm:$0xff]   ;;  %v5048_v11 = vld [vmem:[#allocation7 + $0x3d4] ss:$68 sps:$4 sm:$0xff]  }
 0xb01   :  { %1309 = vadd.xlane.f32.xlu1 %v1303_v6  ;;  %v1304_v9 = vadd.f32 %v1292_v45, %v5595_v43  ;;  %1450 = vmatprep.subr.bf16.mxu0 %v5006_v42  ;;  %v5009_v43 = vld [vmem:[#allocation7 + $0x124] ss:$68 sps:$4 sm:$0xff]   ;;  %v5034_v45 = vld [vmem:[#allocation7 + $0x1b0] ss:$68 sps:$4 sm:$0xff]  }
 0xb02   :  { %v5055_v42 = vld [vmem:[#allocation8 + $0x10] ss:$8 sps:$4 sm:$0xff]  }
 0xb04   :  { %1451 = vmatpush1.bf16.msra.mxu0 %v5004_v27  ;;  %v5057_v27 = vld [vmem:[#allocation8 + $0xa0] ss:$8 sps:$4 sm:$0xff]  }
 0xb05   :  { %1311 = vadd.xlane.f32.xlu1 %v1304_v9  ;;  %1452 = vmatprep.subr.bf16.mxu0 %v5009_v43  ;;  %v5046_v43 = vld [vmem:[#allocation7 + $0x3d0] ss:$68 sps:$4 sm:$0xff]  }
 0xb08   :  { %1453 = vmatpush1.bf16.msra.mxu0 %v5007_v28  ;;  %v5059_v28 = vld [vmem:[#allocation8 + $0x20] ss:$8 sps:$4 sm:$0xff]  }
 0xb09   :  { %1326 = vadd.xlane.f32.xlu1 %v1322_v17  ;;  %1454 = vmatprep.subr.bf16.mxu0 %v5012_v29  ;;  %v5051_v17 = vld [vmem:[#allocation8] ss:$8 sps:$4 sm:$0xff]   ;;  %v5061_v29 = vld [vmem:[#allocation8 + $0xb0] ss:$8 sps:$4 sm:$0xff]  }
 0xb0c   :  { %1455 = vmatpush1.bf16.msra.mxu0 %v5010_v30  ;;  %v5063_v30 = vld [vmem:[#allocation8 + $0x30] ss:$8 sps:$4 sm:$0xff]  }
 0xb0d   :  { %1328 = vadd.xlane.f32.xlu1 %v1323_v13  ;;  %1456 = vmatprep.subr.bf16.mxu0 %v5015_v31  ;;  %v5053_v13 = vld [vmem:[#allocation8 + $0x90] ss:$8 sps:$4 sm:$0xff]   ;;  %v5065_v31 = vld [vmem:[#allocation8 + $0xc0] ss:$8 sps:$4 sm:$0xff]  }
 0xb10   :  { %1457 = vmatpush1.bf16.msra.mxu0 %v5013_v32  ;;  %v5067_v32 = vld [vmem:[#allocation8 + $0x40] ss:$8 sps:$4 sm:$0xff]  }
 0xb11   :  { %1458 = vmatprep.subr.bf16.mxu0 %v5018_v33  ;;  %v5069_v33 = vld [vmem:[#allocation8 + $0xd0] ss:$8 sps:$4 sm:$0xff]  }
 0xb14   :  { %1459 = vmatpush1.bf16.msra.mxu0 %v5016_v16  ;;  %v5071_v16 = vld [vmem:[#allocation8 + $0x50] ss:$8 sps:$4 sm:$0xff]  }
 0xb15   :  { %1460 = vmatprep.subr.bf16.mxu0 %v5021_v34  ;;  %v5073_v34 = vld [vmem:[#allocation8 + $0xe0] ss:$8 sps:$4 sm:$0xff]  }
 0xb18   :  { %1461 = vmatpush1.bf16.msra.mxu0 %v5019_v25  ;;  %v5075_v25 = vld [vmem:[#allocation8 + $0x60] ss:$8 sps:$4 sm:$0xff]  }
 0xb19   :  { %1462 = vmatprep.subr.bf16.mxu0 %v5024_v19  ;;  %v5077_v19 = vld [vmem:[#allocation8 + $0xf0] ss:$8 sps:$4 sm:$0xff]  }
 0xb1c   :  { %1463 = vmatpush1.bf16.msra.mxu0 %v5022_v18  ;;  %v5079_v18 = vld [vmem:[#allocation8 + $0x70] ss:$8 sps:$4 sm:$0xff]  }
 0xb1d   :  { %1859 = vmatprep.subr.bf16.mxu0 %v5027_v36 }
 0xb8e   :  { %v1310_v35 = vpop.xlane.xlu1 %1309 }
 0xb8f   :  { %v1316_v38 = vmul.f32 0.0078125, %v1310_v35 }
 0xb91   :  { %v5768_v26 = vsub.f32 %v1303_v6, %v1316_v38  ;;  %v5039_v6 = vld [vmem:[#allocation7 + $0x23c] ss:$68 sps:$4 sm:$0xff]  }
 0xb92   :  { %v1312_v40 = vpop.xlane.xlu1 %1311 }
 0xb93   :  { %v1317_v46 = vmul.f32 0.0078125, %v1312_v40  ;;  %v1324_v47 = vmul.f32 %v5768_v26, %v5768_v26 }
 0xb95   :  { %v5772_v48 = vsub.f32 %v1304_v9, %v1317_v46  ;;  %1330 = vadd.xlane.f32.xlu0 %v1324_v47  ;;  %v5040_v9 = vld [vmem:[#allocation7 + $0x2c0] ss:$68 sps:$4 sm:$0xff]  }
 0xb96   :  { %v1327_v49 = vpop.xlane.xlu1 %1326 }
 0xb97   :  { %v1334_v50 = vmul.f32 0.0078125, %v1327_v49  ;;  %v1325_v51 = vmul.f32 %v5772_v48, %v5772_v48 }
 0xb99   :  { %v1338_v52 = vadd.f32 1e-05, %v1334_v50  ;;  %1332 = vadd.xlane.f32.xlu1 %v1325_v51 }
 0xb9a   :  { %v1329_v53 = vpop.xlane.xlu1 %1328 }
 0xb9b   :  { %5233 = vrsqrt.f32 %v1338_v52  ;;  %v1335_v54 = vmul.f32 0.0078125, %v1329_v53 }
 0xb9d   :  { %v1339_v55 = vadd.f32 1e-05, %v1335_v54 }
 0xb9f   :  { %5235 = vrsqrt.f32 %v1339_v55 }
 0xba5   :  { %v5234_v57 = vpop.eup %5233 }
 0xba6   :  { %v1346_v14 = vmul.f32 %v5234_v57, %v1318_v15  ;;  %v5045_v15 = vld [vmem:[#allocation7 + $0x34c] ss:$68 sps:$4 sm:$0xff]  }
 0xba8   :  { %v1350_v39 = vmul.f32 %v1346_v14, %v5780_v58 }
 0xba9   :  { %v5236_v60 = vpop.eup %5235 }
 0xbaa   :  { %v1347_v62 = vmul.f32 %v5236_v60, %v5764_v12  ;;  %v5792_v63 = vadd.f32 %v1350_v39, %v5786_v61  ;;  %v5049_v12 = vld [vmem:[#allocation8 + $0x80] ss:$8 sps:$4 sm:$0xff]   ;;  %v95_v60 = vld [vmem:[#allocation5 + $0x8] sm:$0xff] }
 0xbab   :  { %4324 = vmatprep.subr.bf16.mxu1 %v5049_v12  ;;  %v5823_v39 = vld [vmem:[#allocation10] sm:$0xff] }
 0xbac   :  { %v1351_v20 = vmul.f32 %v1347_v62, %v5780_v58  ;;  %4325 = vmatpush3.bf16.msra.mxu1 %v5051_v17 }
 0xbad   :  { %4326 = vmatprep.subr.bf16.mxu1 %v5053_v13 }
 0xbae   :  { %v5795_v41 = vadd.f32 %v1351_v20, %v5786_v61 }
 0xbb0   :  { %v1358_v2 = vpack.c.bf16 %v5795_v41, %v5792_v63  ;;  %4327 = vmatpush3.bf16.msra.mxu1 %v5055_v42 }
 0xbb1   :  { %4328 = vmatprep.subr.bf16.mxu1 %v5057_v27 }
 0xbb2   :  { %1481 = vmatmul.mubr.bf16.vlgmr.msra.gmra.mrb[36].mxu0 %v1358_v2 }
 0xbb3   :  { %1860 = vmatpush1.bf16.msra.mxu0 %v5025_v1  ;;  %1490 = vmatprep.mubr.bf16.mxu0 %v5453_v0  ;;  %v5296_v1 = vld [vmem:[#allocation10 + $0x8] sm:$0xff] }
 0xbb4   :  { %1861 = vmatprep.subr.bf16.mxu0 %v5030_v44  ;;  %4329 = vmatpush3.bf16.msra.mxu1 %v5059_v28  ;;  %v5829_v28 = vsub.s32 6, %v5573_v21 }
 0xbb5   :  { %4330 = vmatprep.subr.bf16.mxu1 %v5061_v29 }
 0xbb7   :  { %1862 = vmatpush1.bf16.msra.mxu0 %v5028_v24 }
 0xbb8   :  { %1863 = vmatprep.subr.bf16.mxu0 %v5033_v3  ;;  %4331 = vmatpush3.bf16.msra.mxu1 %v5063_v30 }
 0xbb9   :  { %4332 = vmatprep.subr.bf16.mxu1 %v5065_v31 }
 0xbbb   :  { %1864 = vmatpush1.bf16.msra.mxu0 %v5031_v4 }
 0xbbc   :  { %1865 = vmatprep.subr.bf16.mxu0 %v5036_v5  ;;  %4333 = vmatpush3.bf16.msra.mxu1 %v5067_v32 }
 0xbbd   :  { %4334 = vmatprep.subr.bf16.mxu1 %v5069_v33 }
 0xbbf   :  { %1866 = vmatpush1.bf16.msra.mxu0 %v5034_v45 }
 0xbc0   :  { %1867 = vmatprep.subr.bf16.mxu0 %v5039_v6  ;;  %4335 = vmatpush3.bf16.msra.mxu1 %v5071_v16 }
 0xbc1   :  { %4336 = vmatprep.subr.bf16.mxu1 %v5073_v34 }
 0xbc3   :  { %1868 = vmatpush1.bf16.msra.mxu0 %v5037_v7 }
 0xbc4   :  { %1869 = vmatprep.subr.bf16.mxu0 %v5042_v8  ;;  %4337 = vmatpush3.bf16.msra.mxu1 %v5075_v25  ;;  %v1726_v25 = vrot.slane %v5296_v1, %v5829_v28 }
 0xbc5   :  { %4338 = vmatprep.subr.bf16.mxu1 %v5077_v19 }
 0xbc7   :  { %1870 = vmatpush1.bf16.msra.mxu0 %v5040_v9 }
 0xbc8   :  { %1871 = vmatprep.subr.bf16.mxu0 %v5045_v15  ;;  %4339 = vmatpush3.bf16.msra.mxu1 %v5079_v18 }
 0xbc9   :  { %4637 = vmatprep.subr.bf16.mxu1 %v5455_v37 }
 0xbcb   :  { %1872 = vmatpush1.bf16.msra.mxu0 %v5043_v23 }
 0xbcc   :  { %1873 = vmatprep.subr.bf16.mxu0 %v5048_v11 }
 0xbcf   :  { %1874 = vmatpush1.bf16.msra.mxu0 %v5046_v43 }
 0xbd0   :  { %4657 = vmatprep.subr.bf16.mxu0 %v5455_v37 }
 0xc22   :  { %v1331_v35 = vpop.xlane.xlu0 %1330 }
 0xc23   :  { %v1336_v38 = vmul.f32 0.0078125, %v1331_v35 }
 0xc25   :  { %v1340_v40 = vadd.f32 1e-05, %v1336_v38  ;;  %v1722_v38 = vrot.slane %v5823_v39, %v5829_v28 }
 0xc26   :  { %v1333_v46 = vpop.xlane.xlu1 %1332 }
 0xc27   :  { %5237 = vrsqrt.f32 %v1340_v40  ;;  %v1337_v47 = vmul.f32 0.0078125, %v1333_v46 }
 0xc29   :  { %v1341_v49 = vadd.f32 1e-05, %v1337_v47 }
 0xc2b   :  { %5239 = vrsqrt.f32 %v1341_v49 }
 0xc31   :  { %v5238_v50 = vpop.eup %5237 }
 0xc32   :  { %v1348_v51 = vmul.f32 %v5238_v50, %v5768_v26  ;;  %v94_v26 = vld [vmem:[#allocation5] sm:$0xff] }
 0xc33   :  { %v5815_v62 = vpack.c.bf16 %v95_v60, %v94_v26 }
 0xc34   :  { %v1352_v54 = vmul.f32 %v1348_v51, %v5780_v58 }
 0xc35   :  { %v5240_v52 = vpop.eup %5239 }
 0xc36   :  { %v1349_v53 = vmul.f32 %v5240_v52, %v5772_v48  ;;  %v5807_v36 = vadd.f32 %v1352_v54, %v5786_v61  ;;  %v5821_v48 = vsub.s32 2, %v5573_v21 }
 0xc38   :  { %v1353_v55 = vmul.f32 %v1349_v53, %v5780_v58  ;;  %v1363_v20 = vrot.slane %v5823_v39, %v5821_v48  ;;  %v1367_v2 = vrot.slane %v5296_v1, %v5821_v48 }
 0xc3a   :  { %v5810_v57 = vadd.f32 %v1353_v55, %v5786_v61 }
 0xc3c   :  { %v1359_v14 = vpack.c.bf16 %v5810_v57, %v5807_v36 }
 0xc3e   :  { %1491 = vmatmul.mubr.bf16.gmra.mrb[40].mxu0 %v1359_v14 }
 0xc3f   :  { %1891 = vmatprep.mubr.bf16.mxu0 %v5453_v0 }
 0xc46   :  { %1892 = vmatmul.mubr.bf16.vlgmr.msra.gmra.mrb[44].mxu0 %v5815_v62 }
 0xc47   :  { %4665 = vmatprep.mubr.msk.bf16.mxu0 %vm5456_vm0, %v5455_v37 }
 0xc85   :  { %v1482_v44 = vpop.f32.mrb[36].mxu0 }
 0xc86   :  { %v1483_v24 = vadd.f32 %v1482_v44, %v1363_v20  ;;  %v1484_v3 = vpop.f32.mrb[37].mxu0 }
 0xc87   :  { %v1485_v4 = vadd.f32 %v1484_v3, %v1367_v2  ;;  %v1486_v5 = vpop.f32.mrb[38].mxu0 }
 0xc88   :  { %v1487_v45 = vadd.f32 %v1486_v5, %v1363_v20  ;;  %v1488_v6 = vpop.f32.mrb[39].mxu0  ;;  %v1501_v8 = vmax.f32 %v1483_v24, 0.0 }
 0xc89   :  { %v1489_v7 = vadd.f32 %v1488_v6, %v1367_v2  ;;  %v1502_v15 = vmax.f32 %v1485_v4, 0.0 }
 0xc8a   :  { %v1503_v9 = vmax.f32 %v1487_v45, 0.0 }
 0xc8b   :  { %v1504_v12 = vmax.f32 %v1489_v7, 0.0 }
 0xc8c   :  { %v1509_v17 = vpack.c.bf16 %v1503_v9, %v1501_v8 }
 0xc8d   :  { %v1510_v13 = vpack.c.bf16 %v1504_v12, %v1502_v15 }
 0xc8f   :  { %1645 = vmatprep.mubr.bf16.mxu1 %v1510_v13 }
 0xc90   :  { %1646 = vmatmul.mubr.bf16.vlgmr.msra.gmra.mrb[24].mxu1 %v1509_v17 }
 0xd11   :  { %v1492_v23 = vpop.f32.mrb[40].mxu0 }
 0xd12   :  { %v1493_v11 = vadd.f32 %v1492_v23, %v1363_v20  ;;  %v1494_v42 = vpop.f32.mrb[41].mxu0 }
 0xd13   :  { %v1495_v27 = vadd.f32 %v1494_v42, %v1367_v2  ;;  %v1496_v43 = vpop.f32.mrb[42].mxu0  ;;  %v5081_v42 = vld [vmem:[#allocation7 + $0x20] ss:$68 sps:$4 sm:$0xff]  }
 0xd14   :  { %v1497_v29 = vadd.f32 %v1496_v43, %v1363_v20  ;;  %v1498_v30 = vpop.f32.mrb[43].mxu0  ;;  %v1505_v32 = vmax.f32 %v1493_v11, 0.0  ;;  %4638 = vmatpush3.bf16.msra.mxu1 %v5081_v42  ;;  %v5085_v43 = vld [vmem:[#allocation7 + $0x130] ss:$68 sps:$4 sm:$0xff]  }
 0xd15   :  { %v1499_v31 = vadd.f32 %v1498_v30, %v1367_v2  ;;  %v1506_v16 = vmax.f32 %v1495_v27, 0.0  ;;  %v5083_v27 = vld [vmem:[#allocation7 + $0xa8] ss:$68 sps:$4 sm:$0xff]   ;;  %4639 = vmatprep.subr.bf16.mxu1 %v5455_v37  ;;  %v5089_v30 = vld [vmem:[#allocation7 + $0x240] ss:$68 sps:$4 sm:$0xff]  }
 0xd16   :  { %v1507_v33 = vmax.f32 %v1497_v29, 0.0  ;;  %v5087_v29 = vld [vmem:[#allocation7 + $0x1b8] ss:$68 sps:$4 sm:$0xff]  }
 0xd17   :  { %v1508_v34 = vmax.f32 %v1499_v31, 0.0  ;;  %v5091_v31 = vld [vmem:[#allocation7 + $0x2c8] ss:$68 sps:$4 sm:$0xff]  }
 0xd18   :  { %v1511_v19 = vpack.c.bf16 %v1507_v33, %v1505_v32  ;;  %4640 = vmatpush3.bf16.msra.mxu1 %v5083_v27  ;;  %v5093_v32 = vld [vmem:[#allocation7 + $0x350] ss:$68 sps:$4 sm:$0xff]   ;;  %v5095_v33 = vld [vmem:[#allocation7 + $0x3d8] ss:$68 sps:$4 sm:$0xff]  }
 0xd19   :  { %v1512_v18 = vpack.c.bf16 %v1508_v34, %v1506_v16  ;;  %v1893_v35 = vpop.f32.mrb[44].mxu0  ;;  %4641 = vmatprep.subr.bf16.mxu1 %v5455_v37 }
 0xd1a   :  { %v1895_v40 = vpop.f32.mrb[45].mxu0  ;;  %v1894_v6 = vadd.f32 %v1893_v35, %v1722_v38 }
 0xd1b   :  { %v1896_v46 = vadd.f32 %v1895_v40, %v1726_v25  ;;  %1653 = vmatprep.mubr.bf16.mxu1 %v1512_v18  ;;  %v1897_v47 = vpop.f32.mrb[46].mxu0 }
 0xd1c   :  { %v5834_v49 = vadd.f32 %v1897_v47, %v1722_v38  ;;  %1654 = vmatmul.mubr.bf16.gmra.mrb[28].mxu1 %v1511_v19  ;;  %v1899_v50 = vpop.f32.mrb[47].mxu0  ;;  %v5847_v9 = vpack.c.bf16 %v1894_v6, %v1894_v6  ;;  %v5297_v38 = vld [vmem:[#allocation10 + $0x10] sm:$0xff] }
 0xd1d   :  { %v5836_v51 = vadd.f32 %v1899_v50, %v1726_v25  ;;  %1943 = vxpose.xlu0.b32.start.end [1/1] (short) %v1896_v46, 128  ;;  %4653 = vmatprep.mubr.msk.bf16.mxu1 %vm5456_vm0, %v5455_v37  ;;  %v1730_v40 = vrot.slane %v5297_v38, %v5829_v28 }
 0xd1e   :  { %4642 = vmatpush3.bf16.msra.mxu1 %v5085_v43 }
 0xd1f   :  { %4643 = vmatprep.subr.bf16.mxu1 %v5455_v37 }
 0xd22   :  { %4644 = vmatpush3.bf16.msra.mxu1 %v5087_v29  ;;  %v5885_v29 = vld [vmem:[#allocation7 + $0x24] ss:$68 sps:$4 sm:$0xff]  }
 0xd23   :  { %4645 = vmatprep.subr.bf16.mxu1 %v5455_v37 }
 0xd26   :  { %4646 = vmatpush3.bf16.msra.mxu1 %v5089_v30 }
 0xd27   :  { %4647 = vmatprep.subr.bf16.mxu1 %v5455_v37 }
 0xd2a   :  { %4648 = vmatpush3.bf16.msra.mxu1 %v5091_v31  ;;  %v5890_v31 = vld [vmem:[#allocation7 + $0xac] ss:$68 sps:$4 sm:$0xff]  }
 0xd2b   :  { %4649 = vmatprep.subr.bf16.mxu1 %v5455_v37 }
 0xd2e   :  { %4650 = vmatpush3.bf16.msra.mxu1 %v5093_v32  ;;  %v5896_v32 = vld [vmem:[#allocation7 + $0x134] ss:$68 sps:$4 sm:$0xff]  }
 0xd2f   :  { %4651 = vmatprep.subr.bf16.mxu1 %v5455_v37 }
 0xd32   :  { %4652 = vmatpush3.bf16.msra.mxu1 %v5095_v33  ;;  %v5900_v33 = vld [vmem:[#allocation7 + $0x1bc] ss:$68 sps:$4 sm:$0xff]  }
 0xd33   :  { %4669 = vmatprep.subr.bf16.mxu1 %v5455_v37 }
 0xd35   :  { %4654 = vmatmul.mubr.bf16.vlgmr.msra.gmra.mrb[32].mxu1 %v5815_v62 }
 0xd36   :  { %4671 = vmatprep.mubr.msk.bf16.mxu1 %vm5456_vm0, %v5455_v37 }
 0xd63   :  { %v4340_v52 = vpop.f32.mrb[24].mxu1 }
 0xd64   :  { %v4341_v53 = vpop.f32.mrb[25].mxu1 }
 0xd65   :  { %v5840_v54 = vadd.f32 %v4341_v53, %v4340_v52  ;;  %v4343_v55 = vpop.f32.mrb[26].mxu1 }
 0xd66   :  { %v4344_v14 = vpop.f32.mrb[27].mxu1 }
 0xd67   :  { %v5842_v26 = vadd.f32 %v4344_v14, %v4343_v55 }
 0xd9d   :  { %v1959_v60 = vpop.trf.xlu0 }
 0xda1   :  { %v1960_v20 = vpop.trf.xlu0 }
 0xda2   :  { %v1976_v1 = vpack.c.bf16 %v1960_v20, %v1959_v60 }
 0xda4   :  { %4658 = vmatpush3.bf16.msra.mxu0 %v1976_v1 }
 0xda5   :  { %v1961_v2 = vpop.trf.xlu0  ;;  %4659 = vmatprep.subr.bf16.mxu0 %v5455_v37 }
 0xda9   :  { %v1962_v44 = vpop.trf.xlu0 }
 0xdaa   :  { %v1977_v24 = vpack.c.bf16 %v1962_v44, %v1961_v2 }
 0xdac   :  { %4660 = vmatpush3.bf16.msra.mxu0 %v1977_v24 }
 0xdad   :  { %v1963_v3 = vpop.trf.xlu0  ;;  %4661 = vmatprep.subr.bf16.mxu0 %v5455_v37 }
 0xdb1   :  { %v1964_v4 = vpop.trf.xlu0 }
 0xdb2   :  { %v1978_v5 = vpack.c.bf16 %v1964_v4, %v1963_v3 }
 0xdb4   :  { %4662 = vmatpush3.bf16.msra.mxu0 %v1978_v5 }
 0xdb5   :  { %v1965_v45 = vpop.trf.xlu0  ;;  %4663 = vmatprep.subr.bf16.mxu0 %v5455_v37 }
 0xdb9   :  { %v1966_v7 = vpop.trf.xlu0 }
 0xdba   :  { %v1979_v8 = vpack.c.bf16 %v1966_v7, %v1965_v45 }
 0xdbc   :  { %4664 = vmatpush3.bf16.msra.mxu0 %v1979_v8 }
 0xdbd   :  { %4687 = vmatprep.subr.bf16.mxu0 %v5455_v37  ;;  %v1967_v24 = vpop.trf.xlu0 }
 0xdbf   :  { %4666 = vmatmul.mubr.msk.bf16.vlgmr.msra.gmra.mrb[48].mxu0 %vm559_vm1, %v5847_v9 }
 0xdc0   :  { %4689 = vmatprep.mubr.msk.bf16.mxu0 %vm5456_vm0, %v5455_v37 }
 0xdc1   :  { %v1968_v3 = vpop.trf.xlu0 }
 0xdc5   :  { %v1969_v4 = vpop.trf.xlu0 }
 0xdc9   :  { %v1970_v45 = vpop.trf.xlu0 }
 0xdcd   :  { %v1971_v6 = vpop.trf.xlu0 }
 0xdd1   :  { %v1972_v8 = vpop.trf.xlu0 }
 0xdd2   :  { %v2088_v42 = vpack.c.bf16 %v1972_v8, %v1971_v6  ;;  %v5922_v6 = vld [vmem:[#allocation7 + $0x244] ss:$68 sps:$4 sm:$0xff]   ;;  %v5926_v8 = vld [vmem:[#allocation7 + $0x2cc] ss:$68 sps:$4 sm:$0xff]  }
 0xdef   :  { %v4346_v15 = vpop.f32.mrb[28].mxu1 }
 0xdf0   :  { %v4347_v12 = vpop.f32.mrb[29].mxu1 }
 0xdf1   :  { %v5854_v17 = vadd.f32 %v4347_v12, %v4346_v15  ;;  %v4349_v13 = vpop.f32.mrb[30].mxu1 }
 0xdf2   :  { %v4350_v23 = vpop.f32.mrb[31].mxu1 }
 0xdf3   :  { %v5856_v11 = vadd.f32 %v4350_v23, %v4349_v13  ;;  %v2086_v13 = vpack.c.bf16 %v1968_v3, %v1967_v24  ;;  %v1973_v23 = vpop.trf.xlu0 }
 0xdf7   :  { %v1974_v27 = vpop.trf.xlu0 }
 0xdf8   :  { %v2089_v43 = vpack.c.bf16 %v1974_v27, %v1973_v23 }
 0xe08   :  { %v1936_v46 = vpop.f32.mrb[32].mxu1 }
 0xe09   :  { %v1937_v47 = vadd.f32 %v1936_v46, %v1730_v40  ;;  %v4655_v50 = vpop.f32.mrb[33].mxu1 }
 0xe0a   :  { %v1939_v1 = vpop.f32.mrb[34].mxu1 }
 0xe0b   :  { %v5871_v62 = vpack.c.bf16 %v1937_v47, %v1937_v47  ;;  %v1940_v2 = vadd.f32 %v1939_v1, %v1730_v40  ;;  %v4656_v44 = vpop.f32.mrb[35].mxu1 }
 0xe0d   :  { %v2043_v52 = vsel %vm2041_vm4, %v5871_v62, 0 }
 0xe0e   :  { %4670 = vmatpush3.bf16.msra.mxu1 %v2043_v52 }
 0xe0f   :  { %4675 = vmatprep.subr.bf16.mxu1 %v5455_v37 }
 0xe92   :  { %v2018_v16 = vpop.f32.mrb[48].mxu0 }
 0xe93   :  { %v2024_v34 = vmul.f32 0.125, %v2018_v16  ;;  %v4667_v25 = vpop.f32.mrb[49].mxu0  ;;  %v5905_v16 = vpack.c.bf16 %v1940_v2, %v1940_v2 }
 0xe94   :  { %v2021_v19 = vpop.f32.mrb[50].mxu0 }
 0xe95   :  { %v4668_v18 = vpop.f32.mrb[51].mxu0  ;;  %v2026_v35 = vsel %vm2025_vm3, %v2024_v34, -inf }
 0xe96   :  { %2027 = vmax.xlane.f32.xlu1 %v2026_v35  ;;  %v2420_v35 = vsel %vm2041_vm4, %v5905_v16, 0 }
 0xf23   :  { %v2028_v53 = vpop.xlane.xlu1 %2027 }
 0xf24   :  { %v2029_v55 = vsub.f32 %v2024_v34, %v2028_v53 }
 0xf26   :  { %v2030_v14 = vmul.f32 1.442695, %v2029_v55 }
 0xf28   :  { %5241 = vpow2.f32 %v2030_v14 }
 0xf32   :  { %v5242_v60 = vpop.eup %5241 }
 0xf33   :  { %v2032_v20 = vsel %vm2025_vm3, %v5242_v60, 0.0 }
 0xf34   :  { %2033 = vadd.xlane.f32.xlu1 %v2032_v20 }
 0xf45   :  { %2091 = vrot.lane.b32.xlu1 %v5847_v9, %s5454_s4  ;;  %v2087_v9 = vpack.c.bf16 %v1970_v45, %v1969_v4 }
 0xfc1   :  { %v2034_v5 = vpop.xlane.xlu1 %2033 }
 0xfc2   :  { %5243 = vrcp.f32 %v2034_v5 }
 0xfc5   :  { %v2092_v30 = vpop.permute.xlu1 %2091 }
 0xfcc   :  { %v5244_v7 = vpop.eup %5243 }
 0xfcd   :  { %v2036_v15 = vmul.f32 %v5244_v7, %v5242_v60 }
 0xfcf   :  { %v2037_v12 = vpack.c.bf16 %v2036_v15, %v2036_v15  ;;  %v5932_v15 = vld [vmem:[#allocation7 + $0x354] ss:$68 sps:$4 sm:$0xff]  }
 0xfd1   :  { %4672 = vmatmul.mubr.msk.bf16.vlgmr.msra.gmra.mrb[36].mxu1 %vm2025_vm3, %v2037_v12  ;;  %v5936_v12 = vld [vmem:[#allocation7 + $0x3dc] ss:$68 sps:$4 sm:$0xff]  }
 0xfd2   :  { %4676 = vmatpush3.bf16.msra.mxu1 %v2086_v13  ;;  %4683 = vmatprep.mubr.msk.bf16.mxu1 %vm5456_vm0, %v5455_v37 }
 0xfd3   :  { %4677 = vmatprep.subr.bf16.mxu1 %v5455_v37 }
 0xfd6   :  { %4678 = vmatpush3.bf16.msra.mxu1 %v2087_v9 }
 0xfd7   :  { %4679 = vmatprep.subr.bf16.mxu1 %v5455_v37 }
 0xfda   :  { %4680 = vmatpush3.bf16.msra.mxu1 %v2088_v42 }
 0xfdb   :  { %4681 = vmatprep.subr.bf16.mxu1 %v5455_v37 }
 0xfde   :  { %4682 = vmatpush3.bf16.msra.mxu1 %v2089_v43 }
 0xfdf   :  { %4705 = vmatprep.subr.bf16.mxu1 %v5455_v37 }
 0xfe1   :  { %4684 = vmatmul.mubr.msk.bf16.vlgmr.msra.gmra.mrb[40].mxu1 %vm559_vm1, %v2092_v30 }
 0xfe2   :  { %4706 = vmatpush3.bf16.msra.mxu1 %v5885_v29  ;;  %4713 = vmatprep.mubr.msk.bf16.mxu1 %vm5456_vm0, %v5455_v37 }
 0xfe3   :  { %4707 = vmatprep.subr.bf16.mxu1 %v5455_v37 }
 0xfe6   :  { %4708 = vmatpush3.bf16.msra.mxu1 %v5890_v31 }
 0xfe7   :  { %4709 = vmatprep.subr.bf16.mxu1 %v5455_v37 }
 0xfea   :  { %4710 = vmatpush3.bf16.msra.mxu1 %v5896_v32 }
 0xfeb   :  { %4711 = vmatprep.subr.bf16.mxu1 %v5455_v37 }
 0xfee   :  { %4712 = vmatpush3.bf16.msra.mxu1 %v5900_v33 }
 0xfef   :  { %4729 = vmatprep.subr.bf16.mxu1 %v5455_v37 }
0x10a4   :  { %v2079_v34 = vpop.f32.mrb[36].mxu1 }
0x10a5   :  { %v2085_v25 = vpack.c.bf16 %v2079_v34, %v2079_v34  ;;  %v4673_v19 = vpop.f32.mrb[37].mxu1 }
0x10a6   :  { %v2082_v18 = vpop.f32.mrb[38].mxu1 }
0x10a7   :  { %v4674_v38 = vpop.f32.mrb[39].mxu1  ;;  %4714 = vmatmul.mubr.msk.bf16.vlgmr.msra.gmra.mrb[44].mxu1 %vm559_vm1, %v2085_v25 }
0x10a8   :  { %4730 = vmatpush3.bf16.msra.mxu1 %v2420_v35  ;;  %4731 = vmatprep.mubr.msk.bf16.mxu1 %vm5456_vm0, %v5455_v37 }
0x10a9   :  { %4735 = vmatprep.subr.bf16.mxu1 %v5455_v37 }
0x10b4   :  { %v2130_v40 = vpop.f32.mrb[40].mxu1 }
0x10b5   :  { %v2136_v46 = vmul.f32 0.125, %v2130_v40  ;;  %v4685_v47 = vpop.f32.mrb[41].mxu1 }
0x10b6   :  { %v2133_v50 = vpop.f32.mrb[42].mxu1 }
0x10b7   :  { %v4686_v52 = vpop.f32.mrb[43].mxu1  ;;  %v2137_v53 = vsel %vm2025_vm3, %v2136_v46, -inf }
0x10b8   :  { %2138 = vmax.xlane.f32.xlu1 %v2137_v53  ;;  %v2354_v52 = vpack.c.bf16 %v5834_v49, %v5834_v49 }
0x10c9   :  { %2150 = vrot.lane.b32.xlu1 %v5871_v62, %s5454_s4 }
0x10f2   :  { %2322 = vxpose.xlu1.b32.start.end [1/1] (short) %v5836_v51, 128 }
0x1145   :  { %v2139_v55 = vpop.xlane.xlu1 %2138 }
0x1146   :  { %v2140_v14 = vsub.f32 %v2136_v46, %v2139_v55 }
0x1148   :  { %v2141_v60 = vmul.f32 1.442695, %v2140_v14 }
0x1149   :  { %v2151_v20 = vpop.permute.xlu1 %2150 }
0x114a   :  { %5245 = vpow2.f32 %v2141_v60  ;;  %v2156_v1 = vsel %vm2041_vm4, %v2151_v20, 0 }
0x114b   :  { %4688 = vmatpush3.bf16.msra.mxu0 %v2156_v1 }
0x114c   :  { %4693 = vmatprep.subr.bf16.mxu0 %v5455_v37 }
0x1154   :  { %v5246_v2 = vpop.eup %5245 }
0x1155   :  { %v2143_v44 = vsel %vm2025_vm3, %v5246_v2, 0.0 }
0x1156   :  { %2144 = vadd.xlane.f32.xlu0 %v2143_v44 }
0x1172   :  { %v2338_v13 = vpop.trf.xlu1 }
0x1176   :  { %v2339_v23 = vpop.trf.xlu1 }
0x1177   :  { %v2355_v19 = vpack.c.bf16 %v2339_v23, %v2338_v13 }
0x117a   :  { %v5920_v24 = vpop.f32.mrb[44].mxu1  ;;  %v2340_v9 = vpop.trf.xlu1 }
0x117b   :  { %v4715_v3 = vpop.f32.mrb[45].mxu1 }
0x117c   :  { %v2314_v62 = vpop.f32.mrb[46].mxu1 }
0x117d   :  { %v4716_v4 = vpop.f32.mrb[47].mxu1 }
0x117e   :  { %v2341_v42 = vpop.trf.xlu1 }
0x117f   :  { %v2356_v40 = vpack.c.bf16 %v2341_v42, %v2340_v9 }
0x1182   :  { %v2342_v27 = vpop.trf.xlu1 }
0x1186   :  { %v2343_v43 = vpop.trf.xlu1 }
0x1187   :  { %v2357_v46 = vpack.c.bf16 %v2343_v43, %v2342_v27 }
0x118a   :  { %v2344_v38 = vpop.trf.xlu1 }
0x118e   :  { %v2345_v47 = vpop.trf.xlu1 }
0x118f   :  { %v2358_v50 = vpack.c.bf16 %v2345_v47, %v2344_v38 }
0x1192   :  { %v2346_v53 = vpop.trf.xlu1 }
0x1196   :  { %v2347_v55 = vpop.trf.xlu1 }
0x1197   :  { %v2463_v14 = vpack.c.bf16 %v2347_v55, %v2346_v53 }
0x119a   :  { %v2348_v60 = vpop.trf.xlu1 }
0x119e   :  { %v2349_v20 = vpop.trf.xlu1 }
0x119f   :  { %v2464_v1 = vpack.c.bf16 %v2349_v20, %v2348_v60 }
0x11e3   :  { %v2145_v51 = vpop.xlane.xlu0 %2144 }
0x11e4   :  { %5247 = vrcp.f32 %v2145_v51 }
0x11ee   :  { %v5248_v5 = vpop.eup %5247 }
0x11ef   :  { %v2147_v45 = vmul.f32 %v5248_v5, %v5246_v2  ;;  %v2350_v2 = vpop.trf.xlu1 }
0x11f1   :  { %v2148_v7 = vpack.c.bf16 %v2147_v45, %v2147_v45  ;;  %v5957_v45 = vsub.s32 3, %v5573_v21 }
0x11f3   :  { %4690 = vmatmul.mubr.msk.bf16.vlgmr.msra.gmra.mrb[52].mxu0 %vm2025_vm3, %v2148_v7  ;;  %v2351_v44 = vpop.trf.xlu1  ;;  %v5961_v7 = vrot.slane %v5823_v39, %v5957_v45 }
0x11f4   :  { %4694 = vmatpush3.bf16.msra.mxu0 %v5922_v6  ;;  %4701 = vmatprep.mubr.msk.bf16.mxu0 %vm5456_vm0, %v5455_v37  ;;  %v2465_v3 = vpack.c.bf16 %v2351_v44, %v2350_v2 }
0x11f5   :  { %4695 = vmatprep.subr.bf16.mxu0 %v5455_v37  ;;  %v1648_v42 = vadd.f32 %v5840_v54, %v5961_v7 }
0x11f8   :  { %4696 = vmatpush3.bf16.msra.mxu0 %v5926_v8 }
0x11f9   :  { %4697 = vmatprep.subr.bf16.mxu0 %v5455_v37 }
0x11fc   :  { %4698 = vmatpush3.bf16.msra.mxu0 %v5932_v15 }
0x11fd   :  { %4699 = vmatprep.subr.bf16.mxu0 %v5455_v37 }
0x1200   :  { %4700 = vmatpush3.bf16.msra.mxu0 %v5936_v12 }
0x1201   :  { %4717 = vmatprep.subr.bf16.mxu0 %v5455_v37 }
0x12c6   :  { %v2192_v30 = vpop.f32.mrb[52].mxu0 }
0x12c7   :  { %v2198_v34 = vpack.c.bf16 %v2192_v30, %v2192_v30  ;;  %v4691_v25 = vpop.f32.mrb[53].mxu0  ;;  %v1651_v30 = vadd.f32 %v5842_v26, %v5961_v7 }
0x12c8   :  { %v2195_v18 = vpop.f32.mrb[54].mxu0 }
0x12c9   :  { %v4692_v35 = vpop.f32.mrb[55].mxu0  ;;  %4702 = vmatmul.mubr.msk.bf16.vlgmr.msra.gmra.mrb[56].mxu0 %vm559_vm1, %v2198_v34  ;;  %v1662_v34 = vadd.f32 %v1648_v42, %v5792_v63  ;;  %v1663_v25 = vadd.f32 %v1651_v30, %v5795_v41  ;;  %v5118_v30 = vld [vmem:[#allocation7 + $0x13c] ss:$68 sps:$4 sm:$0xff]  }
0x12ca   :  { %4718 = vmatpush3.bf16.msra.mxu0 %v2355_v19  ;;  %4725 = vmatprep.mubr.msk.bf16.mxu0 %vm5456_vm0, %v5455_v37  ;;  %v2352_v19 = vpop.trf.xlu1 }
0x12cb   :  { %4719 = vmatprep.subr.bf16.mxu0 %v5455_v37 }
0x12ce   :  { %4720 = vmatpush3.bf16.msra.mxu0 %v2356_v40  ;;  %v2353_v18 = vpop.trf.xlu1 }
0x12cf   :  { %4721 = vmatprep.subr.bf16.mxu0 %v5455_v37 }
0x12d2   :  { %4722 = vmatpush3.bf16.msra.mxu0 %v2357_v46 }
0x12d3   :  { %4723 = vmatprep.subr.bf16.mxu0 %v5455_v37 }
0x12d6   :  { %4724 = vmatpush3.bf16.msra.mxu0 %v2358_v50 }
0x12d7   :  { %4747 = vmatprep.subr.bf16.mxu0 %v5455_v37 }
0x12d9   :  { %4726 = vmatmul.mubr.msk.bf16.vlgmr.msra.gmra.mrb[60].mxu0 %vm559_vm1, %v2354_v52 }
0x12da   :  { %4749 = vmatprep.mubr.msk.bf16.mxu0 %vm5456_vm0, %v5455_v37 }
0x139c   :  { %v2252_v62 = vpop.f32.mrb[56].mxu0 }
0x139d   :  { %v5954_v4 = vadd.f32 %v5920_v24, %v2252_v62  ;;  %v4703_v49 = vpop.f32.mrb[57].mxu0 }
0x139e   :  { %v2255_v51 = vpop.f32.mrb[58].mxu0 }
0x139f   :  { %v4704_v5 = vpop.f32.mrb[59].mxu0 }
0x13a0   :  { %v5108_v5 = vld [vmem:[#allocation7 + $0x2c] ss:$68 sps:$4 sm:$0xff]  }
0x13ac   :  { %v2397_v13 = vpop.f32.mrb[60].mxu0 }
0x13ad   :  { %v2403_v23 = vmul.f32 0.125, %v2397_v13  ;;  %v4727_v9 = vpop.f32.mrb[61].mxu0 }
0x13ae   :  { %v2400_v27 = vpop.f32.mrb[62].mxu0  ;;  %v5110_v9 = vld [vmem:[#allocation7 + $0xb8] ss:$68 sps:$4 sm:$0xff]  }
0x13af   :  { %v4728_v43 = vpop.f32.mrb[63].mxu0  ;;  %v2404_v24 = vsel %vm2025_vm3, %v2403_v23, -inf }
0x13b0   :  { %2405 = vmax.xlane.f32.xlu1 %v2404_v24  ;;  %v5113_v43 = vld [vmem:[#allocation7 + $0xb4] ss:$68 sps:$4 sm:$0xff]  }
0x13b4   :  { %1666 = vadd.xlane.f32.xlu1 %v1662_v34 }
0x13b8   :  { %1668 = vadd.xlane.f32.xlu1 %v1663_v25 }
0x143d   :  { %v2406_v35 = vpop.xlane.xlu1 %2405 }
0x143e   :  { %v2407_v38 = vsub.f32 %v2403_v23, %v2406_v35  ;;  %v5128_v35 = vld [vmem:[#allocation7 + $0x24c] ss:$68 sps:$4 sm:$0xff]  }
0x1440   :  { %v2408_v40 = vmul.f32 1.442695, %v2407_v38 }
0x1441   :  { %v1667_v54 = vpop.xlane.xlu1 %1666 }
0x1442   :  { %5249 = vpow2.f32 %v2408_v40  ;;  %v1674_v46 = vmul.f32 0.0078125, %v1667_v54  ;;  %v5130_v54 = vld [vmem:[#allocation7 + $0x2d8] ss:$68 sps:$4 sm:$0xff]  }
0x1444   :  { %v5970_v47 = vsub.f32 %v1662_v34, %v1674_v46  ;;  %v5120_v34 = vld [vmem:[#allocation7 + $0x1c8] ss:$68 sps:$4 sm:$0xff]  }
0x1445   :  { %v1669_v50 = vpop.xlane.xlu1 %1668 }
0x1446   :  { %v1675_v53 = vmul.f32 0.0078125, %v1669_v50  ;;  %v1682_v26 = vmul.f32 %v5970_v47, %v5970_v47 }
0x1448   :  { %v5974_v63 = vsub.f32 %v1663_v25, %v1675_v53  ;;  %1686 = vadd.xlane.f32.xlu1 %v1682_v26  ;;  %v5123_v25 = vld [vmem:[#allocation7 + $0x1c4] ss:$68 sps:$4 sm:$0xff]  }
0x144a   :  { %v1683_v41 = vmul.f32 %v5974_v63, %v5974_v63 }
0x144c   :  { %v5250_v55 = vpop.eup %5249  ;;  %1688 = vadd.xlane.f32.xlu1 %v1683_v41 }
0x144d   :  { %v2410_v60 = vsel %vm2025_vm3, %v5250_v55, 0.0 }
0x144e   :  { %2411 = vadd.xlane.f32.xlu0 %v2410_v60 }
0x1464   :  { %2468 = vrot.lane.b32.xlu0 %v2354_v52, %s5454_s4  ;;  %v2466_v52 = vpack.c.bf16 %v2353_v18, %v2352_v19  ;;  %v5125_v19 = vld [vmem:[#allocation7 + $0x250] ss:$68 sps:$4 sm:$0xff]  }
0x14db   :  { %v2412_v20 = vpop.xlane.xlu0 %2411 }
0x14dc   :  { %5251 = vrcp.f32 %v2412_v20  ;;  %v5135_v20 = vld [vmem:[#allocation7 + $0x360] ss:$68 sps:$4 sm:$0xff]  }
0x14df   :  { %v2469_v49 = vpop.permute.xlu0 %2468 }
0x14e6   :  { %v5252_v2 = vpop.eup %5251 }
0x14e7   :  { %v2414_v44 = vmul.f32 %v5252_v2, %v5250_v55  ;;  %v5133_v55 = vld [vmem:[#allocation7 + $0x2d4] ss:$68 sps:$4 sm:$0xff]  }
0x14e9   :  { %v2415_v62 = vpack.c.bf16 %v2414_v44, %v2414_v44  ;;  %v5138_v44 = vld [vmem:[#allocation7 + $0x35c] ss:$68 sps:$4 sm:$0xff]  }
0x14eb   :  { %4732 = vmatmul.mubr.msk.bf16.vlgmr.msra.gmra.mrb[48].mxu1 %vm2025_vm3, %v2415_v62  ;;  %v5140_v62 = vld [vmem:[#allocation7 + $0x3e8] ss:$68 sps:$4 sm:$0xff]  }
0x14ec   :  { %4736 = vmatpush3.bf16.msra.mxu1 %v2463_v14  ;;  %4743 = vmatprep.mubr.msk.bf16.mxu1 %vm5456_vm0, %v5455_v37  ;;  %v5105_v14 = vld [vmem:[#allocation7 + $0x30] ss:$68 sps:$4 sm:$0xff]  }
0x14ed   :  { %4737 = vmatprep.subr.bf16.mxu1 %v5455_v37 }
0x14f0   :  { %4738 = vmatpush3.bf16.msra.mxu1 %v2464_v1  ;;  %v1687_v1 = vpop.xlane.xlu1 %1686 }
0x14f1   :  { %4739 = vmatprep.subr.bf16.mxu1 %v5455_v37  ;;  %v1694_v42 = vmul.f32 0.0078125, %v1687_v1 }
0x14f3   :  { %v1698_v24 = vadd.f32 1e-05, %v1694_v42 }
0x14f4   :  { %4740 = vmatpush3.bf16.msra.mxu1 %v2465_v3  ;;  %v1689_v3 = vpop.xlane.xlu1 %1688 }
0x14f5   :  { %4741 = vmatprep.subr.bf16.mxu1 %v5455_v37 }
0x14f8   :  { %4742 = vmatpush3.bf16.msra.mxu1 %v2466_v52 }
0x14f9   :  { %4765 = vmatprep.subr.bf16.mxu1 %v5455_v37 }
0x14fb   :  { %4744 = vmatmul.mubr.msk.bf16.vlgmr.msra.gmra.mrb[52].mxu1 %vm559_vm1, %v2469_v49 }
0x14fc   :  { %4766 = vmatpush3.bf16.msra.mxu1 %v5885_v29  ;;  %4773 = vmatprep.mubr.msk.bf16.mxu1 %vm5456_vm0, %v5455_v37  ;;  %v1695_v29 = vmul.f32 0.0078125, %v1689_v3 }
0x14fd   :  { %4767 = vmatprep.subr.bf16.mxu1 %v5455_v37 }
0x1500   :  { %4768 = vmatpush3.bf16.msra.mxu1 %v5890_v31 }
0x1501   :  { %4769 = vmatprep.subr.bf16.mxu1 %v5455_v37 }
0x1504   :  { %4770 = vmatpush3.bf16.msra.mxu1 %v5896_v32  ;;  %v1699_v32 = vadd.f32 1e-05, %v1695_v29 }
0x1505   :  { %4771 = vmatprep.subr.bf16.mxu1 %v5455_v37 }
0x1506   :  { %5253 = vrsqrt.f32 %v1699_v32 }
0x1507   :  { %5255 = vrsqrt.f32 %v1698_v24 }
0x1508   :  { %4772 = vmatpush3.bf16.msra.mxu1 %v5900_v33  ;;  %v5115_v33 = vld [vmem:[#allocation7 + $0x140] ss:$68 sps:$4 sm:$0xff]  }
0x1509   :  { %2883 = vmatprep.subr.bf16.mxu1 %v5105_v14  ;;  %v5143_v14 = vld [vmem:[#allocation7 + $0x3e4] ss:$68 sps:$4 sm:$0xff]  }
0x1510   :  { %v5254_v46 = vpop.eup %5253 }
0x1511   :  { %v5256_v41 = vpop.eup %5255  ;;  %v1707_v60 = vmul.f32 %v5254_v46, %v5974_v63 }
0x1512   :  { %v1706_v2 = vmul.f32 %v5256_v41, %v5970_v47 }
0x1513   :  { %v1711_v52 = vmul.f32 %v1707_v60, %v5780_v58 }
0x1514   :  { %v1710_v49 = vmul.f32 %v1706_v2, %v5780_v58  ;;  %v5146_v2 = vld [vmem:[#allocation7 + $0xb0] ss:$68 sps:$4 sm:$0xff]  }
0x1515   :  { %v1715_v1 = vadd.f32 %v1711_v52, %v5786_v61  ;;  %v5152_v52 = vld [vmem:[#allocation7 + $0x3e0] ss:$68 sps:$4 sm:$0xff]  }
0x1516   :  { %v1714_v3 = vadd.f32 %v1710_v49, %v5786_v61 }
0x1518   :  { %v2793_v63 = vpack.c.bf16 %v1715_v1, %v1714_v3 }
0x15be   :  { %v2456_v51 = vpop.f32.mrb[48].mxu1 }
0x15bf   :  { %v2462_v13 = vpack.c.bf16 %v2456_v51, %v2456_v51  ;;  %v4733_v23 = vpop.f32.mrb[49].mxu1 }
0x15c0   :  { %v2459_v31 = vpop.f32.mrb[50].mxu1 }
0x15c1   :  { %v4734_v27 = vpop.f32.mrb[51].mxu1  ;;  %4774 = vmatmul.mubr.msk.bf16.vlgmr.msra.gmra.mrb[56].mxu1 %vm559_vm1, %v2462_v13 }
0x15c2   :  { %2884 = vmatpush1.bf16.msra.mxu1 %v5108_v5  ;;  %2915 = vmatprep.mubr.bf16.mxu1 %v5453_v0  ;;  %v6013_v27 = vld [vmem:[#allocation10 + $0x18] sm:$0xff] }
0x15c3   :  { %2885 = vmatprep.subr.bf16.mxu1 %v5110_v9  ;;  %v6017_v32 = vrot.slane %v6013_v27, %v5727_v10 }
0x15c6   :  { %2886 = vmatpush1.bf16.msra.mxu1 %v5113_v43  ;;  %v276_v43 = vld [vmem:[#allocation10 + $0x20] sm:$0xff] }
0x15c7   :  { %2887 = vmatprep.subr.bf16.mxu1 %v5115_v33  ;;  %v6020_v24 = vrot.slane %v276_v43, %v5727_v10 }
0x15ca   :  { %2888 = vmatpush1.bf16.msra.mxu1 %v5118_v30 }
0x15cb   :  { %2889 = vmatprep.subr.bf16.mxu1 %v5120_v34 }
0x15ce   :  { %v2507_v18 = vpop.f32.mrb[52].mxu1  ;;  %2890 = vmatpush1.bf16.msra.mxu1 %v5123_v25 }
0x15cf   :  { %v2513_v38 = vmul.f32 0.125, %v2507_v18  ;;  %v4745_v40 = vpop.f32.mrb[53].mxu1  ;;  %2891 = vmatprep.subr.bf16.mxu1 %v5125_v19 }
0x15d0   :  { %v2510_v50 = vpop.f32.mrb[54].mxu1 }
0x15d1   :  { %v4746_v53 = vpop.f32.mrb[55].mxu1  ;;  %v2514_v26 = vsel %vm2025_vm3, %v2513_v38, -inf }
0x15d2   :  { %2892 = vmatpush1.bf16.msra.mxu1 %v5128_v35  ;;  %2515 = vmax.xlane.f32.xlu0 %v2514_v26  ;;  %v1659_v26 = vadd.f32 %v5856_v11, %v5961_v7  ;;  %v5148_v11 = vld [vmem:[#allocation7 + $0x1c0] ss:$68 sps:$4 sm:$0xff]  }
0x15d3   :  { %2893 = vmatprep.subr.bf16.mxu1 %v5130_v54 }
0x15d6   :  { %2894 = vmatpush1.bf16.msra.mxu1 %v5133_v55 }
0x15d7   :  { %2895 = vmatprep.subr.bf16.mxu1 %v5135_v20 }
0x15da   :  { %2896 = vmatpush1.bf16.msra.mxu1 %v5138_v44  ;;  %v5150_v44 = vld [vmem:[#allocation7 + $0x2d0] ss:$68 sps:$4 sm:$0xff]  }
0x15db   :  { %2897 = vmatprep.subr.bf16.mxu1 %v5140_v62  ;;  %v5151_v62 = vld [vmem:[#allocation7 + $0x358] ss:$68 sps:$4 sm:$0xff]  }
0x15de   :  { %2898 = vmatpush1.bf16.msra.mxu1 %v5143_v14 }
0x15df   :  { %4809 = vmatprep.subr.bf16.mxu1 %v5455_v37 }
0x15e1   :  { %2916 = vmatmul.mubr.bf16.vlgmr.msra.gmra.mrb[60].mxu1 %v2793_v63  ;;  %v2319_v63 = vsub.s32 7, %v5573_v21 }
0x15e2   :  { %2925 = vmatprep.mubr.bf16.mxu1 %v5453_v0 }
0x165f   :  { %v2516_v47 = vpop.xlane.xlu0 %2515 }
0x1660   :  { %v2517_v29 = vsub.f32 %v2513_v38, %v2516_v47 }
0x1662   :  { %v2518_v51 = vmul.f32 1.442695, %v2517_v29  ;;  %v2320_v29 = vrot.slane %v5823_v39, %v2319_v63 }
0x1664   :  { %5257 = vpow2.f32 %v2518_v51 }
0x166e   :  { %v5258_v5 = vpop.eup %5257 }
0x166f   :  { %v2520_v13 = vsel %vm2025_vm3, %v5258_v5, 0.0 }
0x1670   :  { %2521 = vadd.xlane.f32.xlu0 %v2520_v13 }
0x1686   :  { %2527 = vrot.lane.b32.xlu0 %v5905_v16, %s5454_s4 }
0x1694   :  { %v6011_v23 = vpop.f32.mrb[56].mxu1 }
0x1695   :  { %v4775_v9 = vpop.f32.mrb[57].mxu1 }
0x1696   :  { %v2659_v42 = vpop.f32.mrb[58].mxu1 }
0x1697   :  { %v4776_v31 = vpop.f32.mrb[59].mxu1  ;;  %v6066_v42 = vadd.f32 %v2320_v29, %v5954_v4 }
0x16b4   :  { %v2917_v33 = vpop.f32.mrb[60].mxu1 }
0x16b5   :  { %v2918_v30 = vadd.f32 %v2917_v33, %v6017_v32  ;;  %v2919_v34 = vpop.f32.mrb[61].mxu1 }
0x16b6   :  { %v2921_v16 = vpop.f32.mrb[62].mxu1  ;;  %v2920_v19 = vadd.f32 %v2919_v34, %v6020_v24 }
0x16b7   :  { %v2923_v25 = vpop.f32.mrb[63].mxu1  ;;  %2936 = vxpose.xlu0.b32.start [1/2] (short) %v2918_v30, 128  ;;  %v2922_v35 = vadd.f32 %v2921_v16, %v6017_v32 }
0x16b8   :  { %v2924_v18 = vadd.f32 %v2923_v25, %v6020_v24 }
0x16ba   :  { %v6026_v38 = vpack.c.bf16 %v2924_v18, %v2920_v19 }
0x16bb   :  { %2937 = vxpose.xlu0.b32.end [2/2] (short) %v2922_v35, 128 }
0x16bc   :  { %4810 = vmatpush3.bf16.msra.mxu1 %v6026_v38 }
0x16bd   :  { %4827 = vmatprep.subr.bf16.mxu1 %v5455_v37 }
0x16fd   :  { %v2522_v10 = vpop.xlane.xlu0 %2521 }
0x16fe   :  { %5259 = vrcp.f32 %v2522_v10 }
0x1701   :  { %v2528_v40 = vpop.permute.xlu0 %2527 }
0x1702   :  { %v2533_v54 = vsel %vm2041_vm4, %v2528_v40, 0 }
0x1703   :  { %4748 = vmatpush3.bf16.msra.mxu0 %v2533_v54  ;;  %v2703_v54 = vrot.slane %v6013_v27, %v5576_v22 }
0x1704   :  { %4753 = vmatprep.subr.bf16.mxu0 %v5455_v37 }
0x1708   :  { %v5260_v46 = vpop.eup %5259 }
0x1709   :  { %v2524_v50 = vmul.f32 %v5260_v46, %v5258_v5 }
0x170b   :  { %v2525_v53 = vpack.c.bf16 %v2524_v50, %v2524_v50 }
0x170d   :  { %4750 = vmatmul.mubr.msk.bf16.vlgmr.msra.gmra.mrb[64].mxu0 %vm2025_vm3, %v2525_v53 }
0x170e   :  { %4754 = vmatpush3.bf16.msra.mxu0 %v5922_v6  ;;  %4761 = vmatprep.mubr.msk.bf16.mxu0 %vm5456_vm0, %v5455_v37  ;;  %v6046_v6 = vadd.f32 %v1659_v26, %v5810_v57  ;;  %v5147_v57 = vld [vmem:[#allocation7 + $0x138] ss:$68 sps:$4 sm:$0xff]  }
0x170f   :  { %4755 = vmatprep.subr.bf16.mxu0 %v5455_v37 }
0x1712   :  { %4756 = vmatpush3.bf16.msra.mxu0 %v5926_v8  ;;  %v5145_v8 = vld [vmem:[#allocation7 + $0x28] ss:$68 sps:$4 sm:$0xff]  }
0x1713   :  { %4757 = vmatprep.subr.bf16.mxu0 %v5455_v37 }
0x1716   :  { %4758 = vmatpush3.bf16.msra.mxu0 %v5932_v15 }
0x1717   :  { %4759 = vmatprep.subr.bf16.mxu0 %v5455_v37 }
0x171a   :  { %4760 = vmatpush3.bf16.msra.mxu0 %v5936_v12  ;;  %v5149_v12 = vld [vmem:[#allocation7 + $0x248] ss:$68 sps:$4 sm:$0xff]  }
0x171b   :  { %4777 = vmatprep.subr.bf16.mxu0 %v5455_v37 }
0x1720   :  { %1672 = vadd.xlane.f32.xlu0 %v6046_v6 }
0x1737   :  { %v2952_v49 = vpop.trf.xlu0 }
0x173b   :  { %v2953_v14 = vpop.trf.xlu0 }
0x173c   :  { %v2969_v30 = vpack.c.bf16 %v2953_v14, %v2952_v49  ;;  %v6096_v49 = vld [vmem:[#allocation7 + $0xbc] ss:$68 sps:$4 sm:$0xff]   ;;  %v6102_v14 = vld [vmem:[#allocation7 + $0x144] ss:$68 sps:$4 sm:$0xff]  }
0x173f   :  { %v2954_v1 = vpop.trf.xlu0 }
0x1743   :  { %v2955_v3 = vpop.trf.xlu0 }
0x1744   :  { %v2970_v16 = vpack.c.bf16 %v2955_v3, %v2954_v1 }
0x1747   :  { %v2956_v47 = vpop.trf.xlu0 }
0x174b   :  { %v2957_v31 = vpop.trf.xlu0 }
0x174f   :  { %v2958_v39 = vpop.trf.xlu0 }
0x1753   :  { %v2959_v4 = vpop.trf.xlu0 }
0x1754   :  { %v2972_v25 = vpack.c.bf16 %v2959_v4, %v2958_v39 }
0x1757   :  { %v2960_v19 = vpop.trf.xlu0 }
0x175b   :  { %v2961_v18 = vpop.trf.xlu0 }
0x175f   :  { %v2962_v35 = vpop.trf.xlu0 }
0x1763   :  { %v2963_v10 = vpop.trf.xlu0 }
0x1767   :  { %v2964_v40 = vpop.trf.xlu0 }
0x176b   :  { %v2965_v50 = vpop.trf.xlu0 }
0x176f   :  { %v2966_v22 = vpop.trf.xlu0 }
0x17e0   :  { %v2569_v41 = vpop.f32.mrb[64].mxu0 }
0x17e1   :  { %v2575_v55 = vpack.c.bf16 %v2569_v41, %v2569_v41  ;;  %v4751_v60 = vpop.f32.mrb[65].mxu0  ;;  %v3074_v41 = vpack.c.bf16 %v2961_v18, %v2960_v19 }
0x17e2   :  { %v2572_v20 = vpop.f32.mrb[66].mxu0 }
0x17e3   :  { %v4752_v15 = vpop.f32.mrb[67].mxu0  ;;  %4762 = vmatmul.mubr.msk.bf16.vlgmr.msra.gmra.mrb[68].mxu0 %vm559_vm1, %v2575_v55 }
0x17e4   :  { %4778 = vmatpush3.bf16.msra.mxu0 %v5145_v8  ;;  %4793 = vmatprep.mubr.msk.bf16.mxu0 %vm5456_vm0, %v5455_v37  ;;  %v3075_v15 = vpack.c.bf16 %v2963_v10, %v2962_v35 }
0x17e5   :  { %4779 = vmatprep.subr.bf16.mxu0 %v5455_v37 }
0x17e8   :  { %4780 = vmatpush3.bf16.msra.mxu0 %v5146_v2  ;;  %v3076_v2 = vpack.c.bf16 %v2965_v50, %v2964_v40 }
0x17e9   :  { %4781 = vmatprep.subr.bf16.mxu0 %v5455_v37 }
0x17ec   :  { %4782 = vmatpush3.bf16.msra.mxu0 %v5147_v57  ;;  %v2967_v57 = vpop.trf.xlu0 }
0x17ed   :  { %4783 = vmatprep.subr.bf16.mxu0 %v5455_v37 }
0x17f0   :  { %4784 = vmatpush3.bf16.msra.mxu0 %v5148_v11  ;;  %v3077_v11 = vpack.c.bf16 %v2967_v57, %v2966_v22 }
0x17f1   :  { %4785 = vmatprep.subr.bf16.mxu0 %v5455_v37 }
0x17f4   :  { %4786 = vmatpush3.bf16.msra.mxu0 %v5149_v12  ;;  %v1656_v12 = vadd.f32 %v5854_v17, %v5961_v7 }
0x17f5   :  { %4787 = vmatprep.subr.bf16.mxu0 %v5455_v37 }
0x17f8   :  { %4788 = vmatpush3.bf16.msra.mxu0 %v5150_v44  ;;  %v1664_v44 = vadd.f32 %v1656_v12, %v5807_v36  ;;  %v6106_v36 = vld [vmem:[#allocation7 + $0x1cc] ss:$68 sps:$4 sm:$0xff]  }
0x17f9   :  { %4789 = vmatprep.subr.bf16.mxu0 %v5455_v37 }
0x17fc   :  { %4790 = vmatpush3.bf16.msra.mxu0 %v5151_v62  ;;  %v6093_v62 = vld [vmem:[#allocation7 + $0x34] ss:$68 sps:$4 sm:$0xff]  }
0x17fd   :  { %4791 = vmatprep.subr.bf16.mxu0 %v5455_v37 }
0x1800   :  { %4792 = vmatpush3.bf16.msra.mxu0 %v5152_v52 }
0x1801   :  { %4797 = vmatprep.subr.bf16.mxu0 %v5455_v37 }
0x18b6   :  { %v2613_v51 = vpop.f32.mrb[68].mxu0 }
0x18b7   :  { %v2657_v5 = vadd.f32 %v6011_v23, %v2613_v51  ;;  %v4763_v13 = vpop.f32.mrb[69].mxu0  ;;  %v2971_v23 = vpack.c.bf16 %v2957_v31, %v2956_v47 }
0x18b8   :  { %v2616_v9 = vpop.f32.mrb[70].mxu0  ;;  %v1673_v13 = vpop.xlane.xlu0 %1672 }
0x18b9   :  { %v6068_v43 = vadd.f32 %v2657_v5, %v2320_v29  ;;  %v4764_v33 = vpop.f32.mrb[71].mxu0 }
0x18bb   :  { %v2699_v34 = vpack.c.bf16 %v6068_v43, %v6066_v42 }
0x18bd   :  { %4794 = vmatmul.mubr.bf16.vlgmr.msra.gmra.mrb[72].mxu0 %v2699_v34 }
0x18be   :  { %4798 = vmatpush3.bf16.msra.mxu0 %v2969_v30  ;;  %4805 = vmatprep.mubr.msk.bf16.mxu0 %vm5456_vm0, %v5455_v37  ;;  %v1677_v30 = vmul.f32 0.0078125, %v1673_v13 }
0x18bf   :  { %4799 = vmatprep.subr.bf16.mxu0 %v5455_v37 }
0x18c0   :  { %v1681_v4 = vsub.f32 %v6046_v6, %v1677_v30  ;;  %v6142_v30 = vld [vmem:[#allocation7 + $0x3ec] ss:$68 sps:$4 sm:$0xff]  }
0x18c2   :  { %4800 = vmatpush3.bf16.msra.mxu0 %v2970_v16  ;;  %v1685_v19 = vmul.f32 %v1681_v4, %v1681_v4 }
0x18c3   :  { %4801 = vmatprep.subr.bf16.mxu0 %v5455_v37 }
0x18c6   :  { %4802 = vmatpush3.bf16.msra.mxu0 %v2971_v23 }
0x18c7   :  { %4803 = vmatprep.subr.bf16.mxu0 %v5455_v37 }
0x18ca   :  { %4804 = vmatpush3.bf16.msra.mxu0 %v2972_v25 }
0x18cb   :  { %4815 = vmatprep.subr.bf16.mxu0 %v5455_v37 }
0x1990   :  { %v2786_v46 = vpop.f32.mrb[72].mxu0 }
0x1991   :  { %v2787_v53 = vadd.f32 %v2786_v46, %v2703_v54  ;;  %v4795_v26 = vpop.f32.mrb[73].mxu0 }
0x1992   :  { %v2789_v8 = vpop.f32.mrb[74].mxu0 }
0x1993   :  { %v2968_v55 = vpack.c.bf16 %v2787_v53, %v2787_v53  ;;  %v6080_v60 = vadd.f32 %v2789_v8, %v2703_v54  ;;  %v4796_v20 = vpop.f32.mrb[75].mxu0 }
0x1995   :  { %3079 = vrot.lane.b32.xlu1 %v2968_v55, %s5454_s4  ;;  %4806 = vmatmul.mubr.msk.bf16.vlgmr.msra.gmra.mrb[76].mxu0 %vm559_vm1, %v2968_v55 }
0x1996   :  { %4816 = vmatpush3.bf16.msra.mxu0 %v3074_v41  ;;  %4823 = vmatprep.mubr.msk.bf16.mxu0 %vm5456_vm0, %v5455_v37 }
0x1997   :  { %4817 = vmatprep.subr.bf16.mxu0 %v5455_v37 }
0x199a   :  { %4818 = vmatpush3.bf16.msra.mxu0 %v3075_v15 }
0x199b   :  { %4819 = vmatprep.subr.bf16.mxu0 %v5455_v37 }
0x199e   :  { %4820 = vmatpush3.bf16.msra.mxu0 %v3076_v2 }
0x199f   :  { %4821 = vmatprep.subr.bf16.mxu0 %v5455_v37 }
0x19a2   :  { %4822 = vmatpush3.bf16.msra.mxu0 %v3077_v11 }
0x19a3   :  { %4845 = vmatprep.subr.bf16.mxu0 %v5455_v37 }
0x19b9   :  { %1670 = vadd.xlane.f32.xlu1 %v1664_v44 }
0x1a07   :  { %v3080_v52 = vpop.permute.xlu1 %3079 }
0x1a08   :  { %4824 = vmatmul.mubr.msk.bf16.vlgmr.msra.gmra.mrb[80].mxu0 %vm559_vm1, %v3080_v52 }
0x1a09   :  { %4846 = vmatpush3.bf16.msra.mxu0 %v6093_v62  ;;  %4853 = vmatprep.mubr.msk.bf16.mxu0 %vm5456_vm0, %v5455_v37 }
0x1a0a   :  { %4847 = vmatprep.subr.bf16.mxu0 %v5455_v37 }
0x1a0d   :  { %4848 = vmatpush3.bf16.msra.mxu0 %v6096_v49 }
0x1a0e   :  { %4849 = vmatprep.subr.bf16.mxu0 %v5455_v37 }
0x1a11   :  { %4850 = vmatpush3.bf16.msra.mxu0 %v6102_v14 }
0x1a12   :  { %4851 = vmatprep.subr.bf16.mxu0 %v5455_v37 }
0x1a15   :  { %4852 = vmatpush3.bf16.msra.mxu0 %v6106_v36 }
0x1a16   :  { %4869 = vmatprep.subr.bf16.mxu0 %v5455_v37 }
0x1a46   :  { %v1671_v51 = vpop.xlane.xlu1 %1670 }
0x1a47   :  { %v1676_v5 = vmul.f32 0.0078125, %v1671_v51 }
0x1a49   :  { %v1680_v34 = vsub.f32 %v1664_v44, %v1676_v5 }
0x1a4b   :  { %v1684_v25 = vmul.f32 %v1680_v34, %v1680_v34 }
0x1a68   :  { %v3011_v17 = vpop.f32.mrb[76].mxu0 }
0x1a69   :  { %v3017_v7 = vmul.f32 0.125, %v3011_v17  ;;  %v4807_v1 = vpop.f32.mrb[77].mxu0 }
0x1a6a   :  { %v3014_v3 = vpop.f32.mrb[78].mxu0 }
0x1a6b   :  { %v4808_v47 = vpop.f32.mrb[79].mxu0  ;;  %v3018_v29 = vsel %vm606_vm2, %v3017_v7, -inf }
0x1a6c   :  { %3019 = vmax.xlane.f32.xlu1 %v3018_v29 }
0x1adb   :  { %v3118_v9 = vpop.f32.mrb[80].mxu0 }
0x1adc   :  { %v3124_v31 = vmul.f32 0.125, %v3118_v9  ;;  %v4825_v33 = vpop.f32.mrb[81].mxu0  ;;  %v6129_v9 = vld [vmem:[#allocation7 + $0x254] ss:$68 sps:$4 sm:$0xff]  }
0x1add   :  { %v3121_v16 = vpop.f32.mrb[82].mxu0  ;;  %v6138_v33 = vld [vmem:[#allocation7 + $0x364] ss:$68 sps:$4 sm:$0xff]  }
0x1ade   :  { %v4826_v39 = vpop.f32.mrb[83].mxu0  ;;  %v3125_v23 = vsel %vm606_vm2, %v3124_v31, -inf }
0x1adf   :  { %3126 = vmax.xlane.f32.xlu1 %v3125_v23 }
0x1ae3   :  { %1690 = vadd.xlane.f32.xlu1 %v1684_v25 }
0x1ae7   :  { %1692 = vadd.xlane.f32.xlu1 %v1685_v19 }
0x1af9   :  { %v3020_v18 = vpop.xlane.xlu1 %3019 }
0x1afa   :  { %v3021_v35 = vsub.f32 %v3017_v7, %v3020_v18 }
0x1afc   :  { %v3022_v10 = vmul.f32 1.442695, %v3021_v35 }
0x1afe   :  { %5261 = vpow2.f32 %v3022_v10 }
0x1b08   :  { %v5262_v40 = vpop.eup %5261 }
0x1b09   :  { %v3024_v54 = vsel %vm606_vm2, %v5262_v40, 0.0 }
0x1b0a   :  { %3025 = vadd.xlane.f32.xlu1 %v3024_v54 }
0x1b6c   :  { %v3127_v46 = vpop.xlane.xlu1 %3126 }
0x1b6d   :  { %v3128_v50 = vsub.f32 %v3124_v31, %v3127_v46  ;;  %v6132_v31 = vld [vmem:[#allocation7 + $0x2dc] ss:$68 sps:$4 sm:$0xff]  }
0x1b6f   :  { %v3129_v53 = vmul.f32 1.442695, %v3128_v50 }
0x1b70   :  { %v1691_v26 = vpop.xlane.xlu1 %1690 }
0x1b71   :  { %5263 = vpow2.f32 %v3129_v53  ;;  %v1696_v41 = vmul.f32 0.0078125, %v1691_v26 }
0x1b73   :  { %v1700_v8 = vadd.f32 1e-05, %v1696_v41 }
0x1b74   :  { %v1693_v6 = vpop.xlane.xlu1 %1692 }
0x1b75   :  { %5265 = vrsqrt.f32 %v1700_v8  ;;  %v1697_v55 = vmul.f32 0.0078125, %v1693_v6 }
0x1b77   :  { %v1701_v20 = vadd.f32 1e-05, %v1697_v55 }
0x1b79   :  { %5267 = vrsqrt.f32 %v1701_v20 }
0x1b7b   :  { %v5264_v15 = vpop.eup %5263 }
0x1b7c   :  { %v3131_v22 = vsel %vm606_vm2, %v5264_v15, 0.0 }
0x1b7d   :  { %3132 = vadd.xlane.f32.xlu1 %v3131_v22 }
0x1b7f   :  { %v5266_v2 = vpop.eup %5265 }
0x1b80   :  { %v1708_v57 = vmul.f32 %v5266_v2, %v1680_v34 }
0x1b82   :  { %v1712_v44 = vmul.f32 %v1708_v57, %v5780_v58 }
0x1b83   :  { %v5268_v11 = vpop.eup %5267 }
0x1b84   :  { %v1709_v12 = vmul.f32 %v5268_v11, %v1681_v4  ;;  %v1716_v17 = vadd.f32 %v1712_v44, %v5786_v61 }
0x1b86   :  { %v1713_v52 = vmul.f32 %v1709_v12, %v5780_v58 }
0x1b88   :  { %v1717_v7 = vadd.f32 %v1713_v52, %v5786_v61 }
0x1b8a   :  { %v2794_v1 = vpack.c.bf16 %v1717_v7, %v1716_v17 }
0x1b8c   :  { %2926 = vmatmul.mubr.bf16.gmra.mrb[64].mxu1 %v2794_v1 }
0x1b8d   :  { %4811 = vmatprep.mubr.msk.bf16.mxu1 %vm5456_vm0, %v5455_v37 }
0x1b8e   :  { %3138 = vrot.lane.b32.xlu1 %v6026_v38, %s5454_s4 }
0x1b97   :  { %v3026_v3 = vpop.xlane.xlu1 %3025 }
0x1b98   :  { %5269 = vrcp.f32 %v3026_v3 }
0x1ba2   :  { %v5270_v47 = vpop.eup %5269 }
0x1ba3   :  { %v3028_v29 = vmul.f32 %v5270_v47, %v5262_v40 }
0x1ba5   :  { %v3029_v51 = vpack.c.bf16 %v3028_v29, %v3028_v29 }
0x1ba7   :  { %4812 = vmatmul.mubr.msk.bf16.vlgmr.msra.gmra.mrb[68].mxu1 %vm606_vm2, %v3029_v51 }
0x1ba8   :  { %4829 = vmatprep.mubr.msk.bf16.mxu1 %vm5456_vm0, %v5455_v37 }
0x1c0a   :  { %v3133_v58 = vpop.xlane.xlu1 %3132 }
0x1c0b   :  { %5271 = vrcp.f32 %v3133_v58 }
0x1c0e   :  { %v3139_v61 = vpop.permute.xlu1 %3138 }
0x1c0f   :  { %4828 = vmatpush3.bf16.msra.mxu1 %v3139_v61 }
0x1c10   :  { %4833 = vmatprep.subr.bf16.mxu1 %v5455_v37 }
0x1c15   :  { %v5272_v5 = vpop.eup %5271 }
0x1c16   :  { %v3135_v13 = vmul.f32 %v5272_v5, %v5264_v15 }
0x1c18   :  { %v3136_v38 = vpack.c.bf16 %v3135_v13, %v3135_v13 }
0x1c1a   :  { %4830 = vmatmul.mubr.msk.bf16.vlgmr.msra.gmra.mrb[72].mxu1 %vm606_vm2, %v3136_v38 }
0x1c1b   :  { %4834 = vmatpush3.bf16.msra.mxu1 %v6129_v9  ;;  %4841 = vmatprep.mubr.msk.bf16.mxu1 %vm5456_vm0, %v5455_v37 }
0x1c1c   :  { %4835 = vmatprep.subr.bf16.mxu1 %v5455_v37 }
0x1c1f   :  { %4836 = vmatpush3.bf16.msra.mxu1 %v6132_v31 }
0x1c20   :  { %4837 = vmatprep.subr.bf16.mxu1 %v5455_v37 }
0x1c23   :  { %4838 = vmatpush3.bf16.msra.mxu1 %v6138_v33 }
0x1c24   :  { %4839 = vmatprep.subr.bf16.mxu1 %v5455_v37 }
0x1c27   :  { %4840 = vmatpush3.bf16.msra.mxu1 %v6142_v30 }
0x1c28   :  { %4857 = vmatprep.subr.bf16.mxu1 %v5455_v37 }
0x1c5f   :  { %v2927_v34 = vpop.f32.mrb[64].mxu1 }
0x1c60   :  { %v2928_v16 = vadd.f32 %v2927_v34, %v6017_v32  ;;  %v2929_v39 = vpop.f32.mrb[65].mxu1 }
0x1c61   :  { %v2931_v23 = vpop.f32.mrb[66].mxu1  ;;  %v2930_v25 = vadd.f32 %v2929_v39, %v6020_v24 }
0x1c62   :  { %v2933_v4 = vpop.f32.mrb[67].mxu1  ;;  %3308 = vxpose.xlu1.b32.start [1/2] (short) %v2928_v16, 128  ;;  %v2932_v18 = vadd.f32 %v2931_v23, %v6017_v32  ;;  %v3340_v32 = vpack.c.bf16 %v6080_v60, %v6080_v60 }
0x1c63   :  { %v2934_v19 = vadd.f32 %v2933_v4, %v6020_v24 }
0x1c65   :  { %v6152_v35 = vpack.c.bf16 %v2934_v19, %v2930_v25 }
0x1c66   :  { %3309 = vxpose.xlu1.b32.end [2/2] (short) %v2932_v18, 128 }
0x1c7a   :  { %v3067_v10 = vpop.f32.mrb[68].mxu1 }
0x1c7b   :  { %v3073_v40 = vpack.c.bf16 %v3067_v10, %v3067_v10  ;;  %v4813_v54 = vpop.f32.mrb[69].mxu1 }
0x1c7c   :  { %v3070_v46 = vpop.f32.mrb[70].mxu1 }
0x1c7d   :  { %v4814_v50 = vpop.f32.mrb[71].mxu1  ;;  %4854 = vmatmul.mubr.msk.bf16.vlgmr.msra.gmra.mrb[84].mxu0 %vm559_vm1, %v3073_v40 }
0x1c7e   :  { %4870 = vmatpush3.bf16.msra.mxu0 %v6152_v35  ;;  %4871 = vmatprep.mubr.msk.bf16.mxu0 %vm5456_vm0, %v5455_v37 }
0x1c7f   :  { %4875 = vmatprep.subr.bf16.mxu0 %v5455_v37 }
0x1cbc   :  { %3451 = vrot.lane.b32.xlu1 %v3340_v32, %s5454_s4 }
0x1ce2   :  { %v3324_v24 = vpop.trf.xlu1 }
0x1ce6   :  { %v3325_v53 = vpop.trf.xlu1 }
0x1ce7   :  { %v3341_v20 = vpack.c.bf16 %v3325_v53, %v3324_v24 }
0x1cea   :  { %v3326_v26 = vpop.trf.xlu1 }
0x1ced   :  { %v3178_v41 = vpop.f32.mrb[72].mxu1 }
0x1cee   :  { %v3184_v8 = vpack.c.bf16 %v3178_v41, %v3178_v41  ;;  %v4831_v6 = vpop.f32.mrb[73].mxu1  ;;  %v3327_v55 = vpop.trf.xlu1 }
0x1cef   :  { %v3181_v15 = vpop.f32.mrb[74].mxu1  ;;  %v3342_v60 = vpack.c.bf16 %v3327_v55, %v3326_v26 }
0x1cf0   :  { %v4832_v22 = vpop.f32.mrb[75].mxu1  ;;  %4842 = vmatmul.mubr.msk.bf16.vlgmr.msra.gmra.mrb[76].mxu1 %vm559_vm1, %v3184_v8 }
0x1cf1   :  { %4858 = vmatpush3.bf16.msra.mxu1 %v3341_v20  ;;  %4865 = vmatprep.mubr.msk.bf16.mxu1 %vm5456_vm0, %v5455_v37 }
0x1cf2   :  { %v3328_v2 = vpop.trf.xlu1  ;;  %4859 = vmatprep.subr.bf16.mxu1 %v5455_v37 }
0x1cf5   :  { %4860 = vmatpush3.bf16.msra.mxu1 %v3342_v60 }
0x1cf6   :  { %v3329_v57 = vpop.trf.xlu1  ;;  %4861 = vmatprep.subr.bf16.mxu1 %v5455_v37 }
0x1cf7   :  { %v3343_v11 = vpack.c.bf16 %v3329_v57, %v3328_v2 }
0x1cf9   :  { %4862 = vmatpush3.bf16.msra.mxu1 %v3343_v11 }
0x1cfa   :  { %v3330_v12 = vpop.trf.xlu1  ;;  %4863 = vmatprep.subr.bf16.mxu1 %v5455_v37 }
0x1cfe   :  { %v3331_v44 = vpop.trf.xlu1 }
0x1cff   :  { %v3344_v52 = vpack.c.bf16 %v3331_v44, %v3330_v12 }
0x1d01   :  { %4864 = vmatpush3.bf16.msra.mxu1 %v3344_v52 }
0x1d02   :  { %4887 = vmatprep.subr.bf16.mxu1 %v5455_v37  ;;  %v3332_v10 = vpop.trf.xlu1 }
0x1d04   :  { %4866 = vmatmul.mubr.msk.bf16.vlgmr.msra.gmra.mrb[80].mxu1 %vm559_vm1, %v3340_v32 }
0x1d05   :  { %4889 = vmatprep.mubr.msk.bf16.mxu1 %vm5456_vm0, %v5455_v37 }
0x1d06   :  { %v3333_v40 = vpop.trf.xlu1 }
0x1d07   :  { %v3446_v8 = vpack.c.bf16 %v3333_v40, %v3332_v10 }
0x1d0a   :  { %v3334_v54 = vpop.trf.xlu1 }
0x1d0e   :  { %v3335_v50 = vpop.trf.xlu1 }
0x1d0f   :  { %v3447_v6 = vpack.c.bf16 %v3335_v50, %v3334_v54 }
0x1d12   :  { %v3336_v32 = vpop.trf.xlu1 }
0x1d16   :  { %v3337_v26 = vpop.trf.xlu1 }
0x1d17   :  { %v3448_v20 = vpack.c.bf16 %v3337_v26, %v3336_v32 }
0x1d1a   :  { %v3338_v55 = vpop.trf.xlu1 }
0x1d1e   :  { %v3339_v15 = vpop.trf.xlu1 }
0x1d1f   :  { %v3449_v22 = vpack.c.bf16 %v3339_v15, %v3338_v55 }
0x1d2e   :  { %v3452_v2 = vpop.permute.xlu1 %3451 }
0x1d50   :  { %v3297_v17 = vpop.f32.mrb[84].mxu0 }
0x1d51   :  { %v4855_v7 = vpop.f32.mrb[85].mxu0 }
0x1d52   :  { %v3300_v1 = vpop.f32.mrb[86].mxu0 }
0x1d53   :  { %v4856_v3 = vpop.f32.mrb[87].mxu0 }
0x1dc3   :  { %v3238_v47 = vpop.f32.mrb[76].mxu1 }
0x1dc4   :  { %v6172_v29 = vadd.f32 %v3297_v17, %v3238_v47  ;;  %v4843_v51 = vpop.f32.mrb[77].mxu1 }
0x1dc5   :  { %v3241_v58 = vpop.f32.mrb[78].mxu1 }
0x1dc6   :  { %v4844_v61 = vpop.f32.mrb[79].mxu1 }
0x1dd7   :  { %v3383_v5 = vpop.f32.mrb[80].mxu1 }
0x1dd8   :  { %v3389_v13 = vmul.f32 0.125, %v3383_v5  ;;  %v4867_v38 = vpop.f32.mrb[81].mxu1 }
0x1dd9   :  { %v3386_v34 = vpop.f32.mrb[82].mxu1  ;;  %v5298_v38 = vld [vmem:[#allocation5] sm:$0xff] }
0x1dda   :  { %v4868_v16 = vpop.f32.mrb[83].mxu1  ;;  %v3390_v39 = vsel %vm606_vm2, %v3389_v13, -inf  ;;  %v2671_v34 = vadd.f32 %v5298_v38, %v6066_v42 }
0x1ddb   :  { %3391 = vmax.xlane.f32.xlu0 %v3390_v39  ;;  %v5299_v16 = vld [vmem:[#allocation5 + $0x8] sm:$0xff] }
0x1ddc   :  { %v2672_v39 = vadd.f32 %v5299_v16, %v6068_v43 }
0x1e68   :  { %v3392_v23 = vpop.xlane.xlu0 %3391 }
0x1e69   :  { %v3393_v4 = vsub.f32 %v3389_v13, %v3392_v23 }
0x1e6b   :  { %v3394_v25 = vmul.f32 1.442695, %v3393_v4 }
0x1e6d   :  { %5273 = vpow2.f32 %v3394_v25 }
0x1e77   :  { %v5274_v19 = vpop.eup %5273 }
0x1e78   :  { %v3396_v18 = vsel %vm606_vm2, %v5274_v19, 0.0 }
0x1e79   :  { %3397 = vadd.xlane.f32.xlu0 %v3396_v18 }
0x1f06   :  { %v3398_v46 = vpop.xlane.xlu0 %3397 }
0x1f07   :  { %5275 = vrcp.f32 %v3398_v46 }
0x1f11   :  { %v5276_v24 = vpop.eup %5275 }
0x1f12   :  { %v3400_v53 = vmul.f32 %v5276_v24, %v5274_v19  ;;  %v6220_v24 = vrot.slane %v6013_v27, %v5829_v28 }
0x1f14   :  { %v3401_v41 = vpack.c.bf16 %v3400_v53, %v3400_v53  ;;  %v3306_v53 = vrot.slane %v6013_v27, %v5821_v48 }
0x1f16   :  { %4872 = vmatmul.mubr.msk.bf16.vlgmr.msra.gmra.mrb[88].mxu0 %vm606_vm2, %v3401_v41 }
0x1f17   :  { %4876 = vmatpush3.bf16.msra.mxu0 %v3446_v8  ;;  %4883 = vmatprep.mubr.msk.bf16.mxu0 %vm5456_vm0, %v5455_v37  ;;  %v3307_v8 = vadd.f32 %v3306_v53, %v6172_v29 }
0x1f18   :  { %4877 = vmatprep.subr.bf16.mxu0 %v5455_v37 }
0x1f1b   :  { %4878 = vmatpush3.bf16.msra.mxu0 %v3447_v6 }
0x1f1c   :  { %4879 = vmatprep.subr.bf16.mxu0 %v5455_v37 }
0x1f1f   :  { %4880 = vmatpush3.bf16.msra.mxu0 %v3448_v20 }
0x1f20   :  { %4881 = vmatprep.subr.bf16.mxu0 %v5455_v37 }
0x1f23   :  { %4882 = vmatpush3.bf16.msra.mxu0 %v3449_v22 }
0x1f24   :  { %4905 = vmatprep.subr.bf16.mxu0 %v5455_v37 }
0x1f26   :  { %4884 = vmatmul.mubr.msk.bf16.vlgmr.msra.gmra.mrb[92].mxu0 %vm559_vm1, %v3452_v2 }
0x1f27   :  { %4906 = vmatpush3.bf16.msra.mxu0 %v6093_v62  ;;  %4913 = vmatprep.mubr.msk.bf16.mxu0 %vm5456_vm0, %v5455_v37 }
0x1f28   :  { %4907 = vmatprep.subr.bf16.mxu0 %v5455_v37 }
0x1f2b   :  { %4908 = vmatpush3.bf16.msra.mxu0 %v6096_v49 }
0x1f2c   :  { %4909 = vmatprep.subr.bf16.mxu0 %v5455_v37 }
0x1f2f   :  { %4910 = vmatpush3.bf16.msra.mxu0 %v6102_v14 }
0x1f30   :  { %4911 = vmatprep.subr.bf16.mxu0 %v5455_v37 }
0x1f33   :  { %4912 = vmatpush3.bf16.msra.mxu0 %v6106_v36 }
0x1fe9   :  { %v3439_v60 = vpop.f32.mrb[88].mxu0 }
0x1fea   :  { %v3445_v57 = vpack.c.bf16 %v3439_v60, %v3439_v60  ;;  %v4873_v11 = vpop.f32.mrb[89].mxu0 }
0x1feb   :  { %v3442_v12 = vpop.f32.mrb[90].mxu0 }
0x1fec   :  { %v4874_v62 = vpop.f32.mrb[91].mxu0  ;;  %4914 = vmatmul.mubr.msk.bf16.vlgmr.msra.gmra.mrb[96].mxu0 %vm559_vm1, %v3445_v57 }
0x1ff9   :  { %v3490_v44 = vpop.f32.mrb[92].mxu0 }
0x1ffa   :  { %v3496_v52 = vmul.f32 0.125, %v3490_v44  ;;  %v4885_v17 = vpop.f32.mrb[93].mxu0 }
0x1ffb   :  { %v3493_v7 = vpop.f32.mrb[94].mxu0 }
0x1ffc   :  { %v4886_v49 = vpop.f32.mrb[95].mxu0  ;;  %v3497_v1 = vsel %vm606_vm2, %v3496_v52, -inf }
0x1ffd   :  { %3498 = vmax.xlane.f32.xlu0 %v3497_v1 }
0x208a   :  { %v3499_v14 = vpop.xlane.xlu0 %3498 }
0x208b   :  { %v3500_v3 = vsub.f32 %v3496_v52, %v3499_v14 }
0x208d   :  { %v3501_v47 = vmul.f32 1.442695, %v3500_v3 }
0x208f   :  { %5277 = vpow2.f32 %v3501_v47  ;;  %v5153_v47 = vld [vmem:[#allocation7 + $0x38] ss:$68 sps:$4 sm:$0xff]  }
0x2099   :  { %v5278_v36 = vpop.eup %5277 }
0x209a   :  { %v3503_v51 = vsel %vm606_vm2, %v5278_v36, 0.0 }
0x209b   :  { %3504 = vadd.xlane.f32.xlu0 %v3503_v51  ;;  %v5158_v51 = vld [vmem:[#allocation7 + $0xc4] ss:$68 sps:$4 sm:$0xff]  }
0x20b1   :  { %3510 = vrot.lane.b32.xlu0 %v6152_v35, %s5454_s4 }
0x20bf   :  { %v6198_v58 = vpop.f32.mrb[96].mxu0 }
0x20c0   :  { %v4915_v61 = vpop.f32.mrb[97].mxu0 }
0x20c1   :  { %v3640_v5 = vpop.f32.mrb[98].mxu0  ;;  %v5161_v61 = vld [vmem:[#allocation7 + $0x14c] ss:$68 sps:$4 sm:$0xff]  }
0x20c2   :  { %v4916_v13 = vpop.f32.mrb[99].mxu0  ;;  %v5159_v5 = vld [vmem:[#allocation7 + $0x148] ss:$68 sps:$4 sm:$0xff]  }
0x20d0   :  { %2673 = vadd.xlane.f32.xlu0 %v2671_v34 }
0x20d4   :  { %2675 = vadd.xlane.f32.xlu0 %v2672_v39 }
0x2128   :  { %v3505_v23 = vpop.xlane.xlu0 %3504 }
0x2129   :  { %5279 = vrcp.f32 %v3505_v23  ;;  %v5162_v23 = vld [vmem:[#allocation7 + $0x1d0] ss:$68 sps:$4 sm:$0xff]  }
0x212c   :  { %v3511_v4 = vpop.permute.xlu0 %3510 }
0x212d   :  { %4888 = vmatpush3.bf16.msra.mxu1 %v3511_v4  ;;  %v5167_v4 = vld [vmem:[#allocation7 + $0x25c] ss:$68 sps:$4 sm:$0xff]  }
0x212e   :  { %4893 = vmatprep.subr.bf16.mxu1 %v5455_v37 }
0x2133   :  { %v5280_v35 = vpop.eup %5279 }
0x2134   :  { %v3507_v25 = vmul.f32 %v5280_v35, %v5278_v36  ;;  %v5155_v36 = vld [vmem:[#allocation7 + $0x3c] ss:$68 sps:$4 sm:$0xff]  }
0x2135   :  { %v5165_v35 = vld [vmem:[#allocation7 + $0x258] ss:$68 sps:$4 sm:$0xff]  }
0x2136   :  { %v3508_v19 = vpack.c.bf16 %v3507_v25, %v3507_v25  ;;  %v5170_v25 = vld [vmem:[#allocation7 + $0x2e4] ss:$68 sps:$4 sm:$0xff]  }
0x2138   :  { %4890 = vmatmul.mubr.msk.bf16.vlgmr.msra.gmra.mrb[84].mxu1 %vm606_vm2, %v3508_v19  ;;  %v5168_v19 = vld [vmem:[#allocation7 + $0x2e0] ss:$68 sps:$4 sm:$0xff]  }
0x2139   :  { %4894 = vmatpush3.bf16.msra.mxu1 %v6129_v9  ;;  %4901 = vmatprep.mubr.msk.bf16.mxu1 %vm5456_vm0, %v5455_v37 }
0x213a   :  { %4895 = vmatprep.subr.bf16.mxu1 %v5455_v37 }
0x213d   :  { %4896 = vmatpush3.bf16.msra.mxu1 %v6132_v31 }
0x213e   :  { %4897 = vmatprep.subr.bf16.mxu1 %v5455_v37 }
0x2141   :  { %4898 = vmatpush3.bf16.msra.mxu1 %v6138_v33  ;;  %v6216_v33 = vrot.slane %v6013_v27, %v1299_v59 }
0x2142   :  { %4899 = vmatprep.subr.bf16.mxu1 %v5455_v37 }
0x2145   :  { %4900 = vmatpush3.bf16.msra.mxu1 %v6142_v30 }
0x2146   :  { %3761 = vmatprep.subr.bf16.mxu1 %v5155_v36 }
0x215d   :  { %v2674_v42 = vpop.xlane.xlu0 %2673 }
0x215e   :  { %v2677_v43 = vmul.f32 0.0078125, %v2674_v42  ;;  %v5173_v42 = vld [vmem:[#allocation7 + $0x36c] ss:$68 sps:$4 sm:$0xff]  }
0x2160   :  { %v2679_v18 = vsub.f32 %v2671_v34, %v2677_v43  ;;  %v5171_v43 = vld [vmem:[#allocation7 + $0x368] ss:$68 sps:$4 sm:$0xff]  }
0x2161   :  { %v2676_v10 = vpop.xlane.xlu0 %2675 }
0x2162   :  { %v2678_v9 = vmul.f32 0.0078125, %v2676_v10  ;;  %v2681_v40 = vmul.f32 %v2679_v18, %v2679_v18  ;;  %v5174_v10 = vld [vmem:[#allocation7 + $0x3f0] ss:$68 sps:$4 sm:$0xff]  }
0x2164   :  { %v2680_v54 = vsub.f32 %v2672_v39, %v2678_v9  ;;  %2683 = vadd.xlane.f32.xlu0 %v2681_v40  ;;  %v5164_v39 = vld [vmem:[#allocation7 + $0x1d4] ss:$68 sps:$4 sm:$0xff]   ;;  %v5177_v9 = vld [vmem:[#allocation8 + $0x84] ss:$8 sps:$4 sm:$0xff]  }
0x2165   :  { %v5178_v40 = vld [vmem:[#allocation8 + $0x4] ss:$8 sps:$4 sm:$0xff]   ;;  %4466 = vmatprep.subr.bf16.mxu0 %v5177_v9 }
0x2166   :  { %v2682_v46 = vmul.f32 %v2680_v54, %v2680_v54  ;;  %4467 = vmatpush3.bf16.msra.mxu0 %v5178_v40 }
0x2168   :  { %2685 = vadd.xlane.f32.xlu0 %v2682_v46  ;;  %v5180_v46 = vld [vmem:[#allocation8 + $0x14] ss:$8 sps:$4 sm:$0xff]  }
0x21f1   :  { %v2684_v50 = vpop.xlane.xlu0 %2683 }
0x21f2   :  { %v2687_v31 = vmul.f32 0.0078125, %v2684_v50  ;;  %v5181_v50 = vld [vmem:[#allocation8 + $0xa4] ss:$8 sps:$4 sm:$0xff]  }
0x21f4   :  { %v2689_v32 = vadd.f32 1e-05, %v2687_v31  ;;  %v5182_v31 = vld [vmem:[#allocation8 + $0x24] ss:$8 sps:$4 sm:$0xff]  }
0x21f5   :  { %v2686_v28 = vpop.xlane.xlu0 %2685 }
0x21f6   :  { %5281 = vrsqrt.f32 %v2689_v32  ;;  %v2688_v48 = vmul.f32 0.0078125, %v2686_v28  ;;  %v5183_v32 = vld [vmem:[#allocation8 + $0xb4] ss:$8 sps:$4 sm:$0xff]  }
0x21f8   :  { %v2690_v27 = vadd.f32 1e-05, %v2688_v48 }
0x21fa   :  { %5283 = vrsqrt.f32 %v2690_v27 }
0x2200   :  { %v5282_v30 = vpop.eup %5281 }
0x2201   :  { %v2693_v26 = vmul.f32 %v5282_v30, %v2679_v18  ;;  %v5176_v18 = vld [vmem:[#allocation7 + $0x3f4] ss:$68 sps:$4 sm:$0xff]  }
0x2202   :  { %v5184_v30 = vld [vmem:[#allocation8 + $0x34] ss:$8 sps:$4 sm:$0xff]  }
0x2203   :  { %v2695_v41 = vmul.f32 %v2693_v26, %v6216_v33  ;;  %v5186_v26 = vld [vmem:[#allocation8 + $0x44] ss:$8 sps:$4 sm:$0xff]  }
0x2204   :  { %v5284_v60 = vpop.eup %5283 }
0x2205   :  { %v2697_v6 = vadd.f32 %v2695_v41, %v6220_v24  ;;  %v2694_v57 = vmul.f32 %v5284_v60, %v2680_v54  ;;  %v5179_v54 = vld [vmem:[#allocation8 + $0x94] ss:$8 sps:$4 sm:$0xff]  }
0x2206   :  { %4468 = vmatprep.subr.bf16.mxu0 %v5179_v54  ;;  %v5187_v41 = vld [vmem:[#allocation8 + $0xd4] ss:$8 sps:$4 sm:$0xff]   ;;  %v5193_v54 = vld [vmem:[#allocation7 + $0x40] ss:$68 sps:$4 sm:$0xff]  }
0x2207   :  { %v3644_v55 = vadd.f32 %v3307_v8, %v2697_v6  ;;  %v2696_v11 = vmul.f32 %v2694_v57, %v6216_v33  ;;  %4469 = vmatpush3.bf16.msra.mxu0 %v5180_v46 }
0x2208   :  { %4470 = vmatprep.subr.bf16.mxu0 %v5181_v50 }
0x2209   :  { %3646 = vadd.xlane.f32.xlu0 %v3644_v55  ;;  %v2698_v1 = vadd.f32 %v2696_v11, %v6220_v24 }
0x220b   :  { %v3550_v20 = vpop.f32.mrb[84].mxu1  ;;  %4471 = vmatpush3.bf16.msra.mxu0 %v5182_v31 }
0x220c   :  { %v3556_v59 = vpack.c.bf16 %v3550_v20, %v3550_v20  ;;  %v4891_v15 = vpop.f32.mrb[85].mxu1  ;;  %4472 = vmatprep.subr.bf16.mxu0 %v5183_v32 }
0x220d   :  { %v3553_v22 = vpop.f32.mrb[86].mxu1 }
0x220e   :  { %v4892_v2 = vpop.f32.mrb[87].mxu1  ;;  %4902 = vmatmul.mubr.msk.bf16.vlgmr.msra.gmra.mrb[88].mxu1 %vm559_vm1, %v3556_v59 }
0x220f   :  { %3793 = vmatprep.mubr.bf16.mxu1 %v5453_v0  ;;  %3762 = vmatpush1.bf16.msra.mxu1 %v5153_v47 }
0x2210   :  { %3763 = vmatprep.subr.bf16.mxu1 %v5158_v51  ;;  %4473 = vmatpush3.bf16.msra.mxu0 %v5184_v30 }
0x2296   :  { %v3647_v29 = vpop.xlane.xlu0 %3646 }
0x2297   :  { %v3650_v62 = vmul.f32 0.0078125, %v3647_v29 }
0x2299   :  { %v6232_v0 = vsub.f32 %v3644_v55, %v3650_v62  ;;  %v5189_v62 = vld [vmem:[#allocation8 + $0xe4] ss:$8 sps:$4 sm:$0xff]  }
0x229b   :  { %v3654_v3 = vmul.f32 %v6232_v0, %v6232_v0 }
0x22e1   :  { %v3594_v12 = vpop.f32.mrb[88].mxu1 }
0x22e2   :  { %v3638_v44 = vadd.f32 %v6198_v58, %v3594_v12  ;;  %v4903_v52 = vpop.f32.mrb[89].mxu1  ;;  %v5156_v58 = vld [vmem:[#allocation7 + $0xc0] ss:$68 sps:$4 sm:$0xff]   ;;  %v5188_v12 = vld [vmem:[#allocation8 + $0x54] ss:$8 sps:$4 sm:$0xff]  }
0x22e3   :  { %v3597_v17 = vpop.f32.mrb[90].mxu1  ;;  %3764 = vmatpush1.bf16.msra.mxu1 %v5156_v58  ;;  %v5191_v52 = vld [vmem:[#allocation8 + $0xf4] ss:$8 sps:$4 sm:$0xff]  }
0x22e4   :  { %v3643_v7 = vadd.f32 %v3638_v44, %v3306_v53  ;;  %v4904_v49 = vpop.f32.mrb[91].mxu1  ;;  %3765 = vmatprep.subr.bf16.mxu1 %v5161_v61  ;;  %v5185_v53 = vld [vmem:[#allocation8 + $0xc4] ss:$8 sps:$4 sm:$0xff]   ;;  %v5192_v17 = vld [vmem:[#allocation8 + $0x74] ss:$8 sps:$4 sm:$0xff]  }
0x22e5   :  { %4474 = vmatprep.subr.bf16.mxu0 %v5185_v53  ;;  %v5190_v44 = vld [vmem:[#allocation8 + $0x64] ss:$8 sps:$4 sm:$0xff]  }
0x22e6   :  { %v3645_v14 = vadd.f32 %v3643_v7, %v2698_v1  ;;  %4475 = vmatpush3.bf16.msra.mxu0 %v5186_v26  ;;  %v6244_v7 = vld [vmem:[#allocation10 + $0x18] sm:$0xff]  ;;  %v5301_v1 = vld [vmem:[#allocation10 + $0x20] sm:$0xff] }
0x22e7   :  { %3766 = vmatpush1.bf16.msra.mxu1 %v5159_v5  ;;  %4476 = vmatprep.subr.bf16.mxu0 %v5187_v41  ;;  %v3676_v49 = vrot.slane %v6244_v7, %v5957_v45  ;;  %v5194_v41 = vld [vmem:[#allocation7 + $0xc8] ss:$68 sps:$4 sm:$0xff]  }
0x22e8   :  { %3648 = vadd.xlane.f32.xlu0 %v3645_v14  ;;  %3767 = vmatprep.subr.bf16.mxu1 %v5164_v39 }
0x22ea   :  { %4477 = vmatpush3.bf16.msra.mxu0 %v5188_v12 }
0x22eb   :  { %3768 = vmatpush1.bf16.msra.mxu1 %v5162_v23  ;;  %4478 = vmatprep.subr.bf16.mxu0 %v5189_v62 }
0x22ec   :  { %3656 = vadd.xlane.f32.xlu0 %v3654_v3  ;;  %3769 = vmatprep.subr.bf16.mxu1 %v5167_v4 }
0x22ee   :  { %4479 = vmatpush3.bf16.msra.mxu0 %v5190_v44 }
0x22ef   :  { %3770 = vmatpush1.bf16.msra.mxu1 %v5165_v35  ;;  %4480 = vmatprep.subr.bf16.mxu0 %v5191_v52 }
0x22f0   :  { %3771 = vmatprep.subr.bf16.mxu1 %v5170_v25 }
0x22f2   :  { %4481 = vmatpush3.bf16.msra.mxu0 %v5192_v17 }
0x22f3   :  { %3772 = vmatpush1.bf16.msra.mxu1 %v5168_v19 }
0x22f4   :  { %3773 = vmatprep.subr.bf16.mxu1 %v5173_v42 }
0x22f7   :  { %3774 = vmatpush1.bf16.msra.mxu1 %v5171_v43 }
0x22f8   :  { %3775 = vmatprep.subr.bf16.mxu1 %v5176_v18 }
0x22fb   :  { %3776 = vmatpush1.bf16.msra.mxu1 %v5174_v10 }
0x22fc   :  { %4917 = vmatprep.subr.bf16.mxu1 %v5455_v37 }
0x2375   :  { %v3649_v13 = vpop.xlane.xlu0 %3648 }
0x2376   :  { %v3651_v38 = vmul.f32 0.0078125, %v3649_v13 }
0x2378   :  { %v3653_v34 = vsub.f32 %v3645_v14, %v3651_v38 }
0x2379   :  { %v3657_v8 = vpop.xlane.xlu0 %3656 }
0x237a   :  { %v3655_v16 = vmul.f32 %v3653_v34, %v3653_v34  ;;  %v3660_v6 = vmul.f32 0.0078125, %v3657_v8  ;;  %v5195_v8 = vld [vmem:[#allocation7 + $0x150] ss:$68 sps:$4 sm:$0xff]  }
0x237c   :  { %3658 = vadd.xlane.f32.xlu0 %v3655_v16  ;;  %v3662_v55 = vadd.f32 1e-05, %v3660_v6  ;;  %v5196_v6 = vld [vmem:[#allocation7 + $0x1d8] ss:$68 sps:$4 sm:$0xff]  }
0x237e   :  { %5285 = vrsqrt.f32 %v3662_v55  ;;  %v5197_v55 = vld [vmem:[#allocation7 + $0x260] ss:$68 sps:$4 sm:$0xff]  }
0x2388   :  { %v5286_v22 = vpop.eup %5285 }
0x2389   :  { %v3666_v2 = vmul.f32 %v5286_v22, %v6232_v0  ;;  %v3680_v0 = vrot.slane %v5301_v1, %v5957_v45  ;;  %v3813_v45 = vrot.slane %v6244_v7, %v1295_v56 }
0x238b   :  { %v3668_v27 = vmul.f32 %v3666_v2, %v6216_v33 }
0x238d   :  { %v3670_v57 = vadd.f32 %v3668_v27, %v6220_v24 }
0x2409   :  { %v3659_v20 = vpop.xlane.xlu0 %3658 }
0x240a   :  { %v3661_v59 = vmul.f32 0.0078125, %v3659_v20  ;;  %v5198_v20 = vld [vmem:[#allocation7 + $0x2e8] ss:$68 sps:$4 sm:$0xff]  }
0x240c   :  { %v3663_v15 = vadd.f32 1e-05, %v3661_v59  ;;  %v5199_v59 = vld [vmem:[#allocation7 + $0x370] ss:$68 sps:$4 sm:$0xff]  }
0x240e   :  { %5287 = vrsqrt.f32 %v3663_v15  ;;  %v5200_v15 = vld [vmem:[#allocation7 + $0x3f8] ss:$68 sps:$4 sm:$0xff]  }
0x2418   :  { %v5288_v28 = vpop.eup %5287 }
0x2419   :  { %v3667_v48 = vmul.f32 %v5288_v28, %v3653_v34 }
0x241b   :  { %v3669_v60 = vmul.f32 %v3667_v48, %v6216_v33 }
0x241d   :  { %v3671_v29 = vadd.f32 %v3669_v60, %v6220_v24 }
0x241f   :  { %v3672_v11 = vpack.c.bf16 %v3671_v29, %v3670_v57 }
0x2421   :  { %3794 = vmatmul.mubr.bf16.vlgmr.msra.gmra.mrb[92].mxu1 %v3672_v11 }
0x2422   :  { %4933 = vmatprep.mubr.msk.bf16.mxu1 %vm5456_vm0, %v5455_v37  ;;  %4918 = vmatpush3.bf16.msra.mxu1 %v5193_v54 }
0x2423   :  { %4919 = vmatprep.subr.bf16.mxu1 %v5455_v37 }
0x2426   :  { %4920 = vmatpush3.bf16.msra.mxu1 %v5194_v41 }
0x2427   :  { %4921 = vmatprep.subr.bf16.mxu1 %v5455_v37 }
0x242a   :  { %4922 = vmatpush3.bf16.msra.mxu1 %v5195_v8 }
0x242b   :  { %4923 = vmatprep.subr.bf16.mxu1 %v5455_v37 }
0x242e   :  { %4924 = vmatpush3.bf16.msra.mxu1 %v5196_v6 }
0x242f   :  { %4925 = vmatprep.subr.bf16.mxu1 %v5455_v37 }
0x2432   :  { %4926 = vmatpush3.bf16.msra.mxu1 %v5197_v55 }
0x2433   :  { %4927 = vmatprep.subr.bf16.mxu1 %v5455_v37 }
0x2436   :  { %4928 = vmatpush3.bf16.msra.mxu1 %v5198_v20 }
0x2437   :  { %4929 = vmatprep.subr.bf16.mxu1 %v5455_v37 }
0x243a   :  { %4930 = vmatpush3.bf16.msra.mxu1 %v5199_v59 }
0x243b   :  { %4931 = vmatprep.subr.bf16.mxu1 %v5455_v37 }
0x243e   :  { %4932 = vmatpush3.bf16.msra.mxu1 %v5200_v15 }
0x24f4   :  { %v3795_v14 = vpop.f32.mrb[92].mxu1 }
0x24f5   :  { %v3796_v3 = vadd.f32 %v3795_v14, %v3676_v49  ;;  %v3797_v47 = vpop.f32.mrb[93].mxu1 }
0x24f6   :  { %v3798_v36 = vadd.f32 %v3797_v47, %v3680_v0  ;;  %v3799_v51 = vpop.f32.mrb[94].mxu1 }
0x24f7   :  { %v3800_v58 = vadd.f32 %v3799_v51, %v3676_v49  ;;  %v3801_v61 = vpop.f32.mrb[95].mxu1  ;;  %v3804_v13 = vmax.f32 %v3796_v3, 0.0  ;;  %v3951_v49 = vrot.slane %v6244_v7, %v2319_v63 }
0x24f8   :  { %v3802_v5 = vadd.f32 %v3801_v61, %v3680_v0  ;;  %v3805_v34 = vmax.f32 %v3798_v36, 0.0 }
0x24f9   :  { %v3806_v38 = vmax.f32 %v3800_v58, 0.0 }
0x24fa   :  { %v3807_v16 = vmax.f32 %v3802_v5, 0.0 }
0x24fb   :  { %v3808_v39 = vpack.c.bf16 %v3806_v38, %v3804_v13 }
0x24fc   :  { %v3809_v23 = vpack.c.bf16 %v3807_v16, %v3805_v34 }
0x24fe   :  { %3910 = vmatprep.mubr.bf16.mxu0 %v3809_v23 }
0x24ff   :  { %3911 = vmatmul.mubr.bf16.vlgmr.msra.gmra.mrb[100].mxu0 %v3808_v39 }
0x25d2   :  { %v4482_v4 = vpop.f32.mrb[100].mxu0 }
0x25d3   :  { %v4483_v35 = vpop.f32.mrb[101].mxu0 }
0x25d4   :  { %v4484_v25 = vadd.f32 %v4483_v35, %v4482_v4  ;;  %v4485_v19 = vpop.f32.mrb[102].mxu0 }
0x25d5   :  { %v4486_v42 = vpop.f32.mrb[103].mxu0 }
0x25d6   :  { %v3913_v43 = vadd.f32 %v4484_v25, %v3813_v45  ;;  %v4487_v18 = vadd.f32 %v4486_v42, %v4485_v19 }
0x25d8   :  { %v3916_v10 = vadd.f32 %v4487_v18, %v3813_v45  ;;  %v3919_v9 = vadd.f32 %v3913_v43, %v3670_v57 }
0x25da   :  { %3921 = vadd.xlane.f32.xlu1 %v3919_v9  ;;  %v3920_v40 = vadd.f32 %v3916_v10, %v3671_v29 }
0x25dc   :  { %3923 = vadd.xlane.f32.xlu0 %v3920_v40 }
0x2667   :  { %v3922_v46 = vpop.xlane.xlu1 %3921 }
0x2668   :  { %v3925_v50 = vmul.f32 0.0078125, %v3922_v46 }
0x2669   :  { %v3924_v31 = vpop.xlane.xlu0 %3923 }
0x266a   :  { %v3927_v32 = vsub.f32 %v3919_v9, %v3925_v50  ;;  %v3926_v56 = vmul.f32 0.0078125, %v3924_v31 }
0x266c   :  { %v3929_v30 = vmul.f32 %v3927_v32, %v3927_v32  ;;  %v3928_v53 = vsub.f32 %v3920_v40, %v3926_v56 }
0x266e   :  { %3931 = vadd.xlane.f32.xlu0 %v3929_v30  ;;  %v3930_v26 = vmul.f32 %v3928_v53, %v3928_v53 }
0x2672   :  { %3933 = vadd.xlane.f32.xlu0 %v3930_v26 }
0x26fb   :  { %v3932_v22 = vpop.xlane.xlu0 %3931 }
0x26fc   :  { %v3935_v2 = vmul.f32 0.0078125, %v3932_v22 }
0x26fe   :  { %v3937_v28 = vadd.f32 1e-05, %v3935_v2 }
0x26ff   :  { %v3934_v48 = vpop.xlane.xlu0 %3933 }
0x2700   :  { %5289 = vrsqrt.f32 %v3937_v28  ;;  %v3936_v27 = vmul.f32 0.0078125, %v3934_v48 }
0x2702   :  { %v3938_v60 = vadd.f32 1e-05, %v3936_v27 }
0x2704   :  { %5291 = vrsqrt.f32 %v3938_v60 }
0x270a   :  { %v5290_v57 = vpop.eup %5289 }
0x270b   :  { %v3941_v29 = vmul.f32 %v5290_v57, %v3927_v32 }
0x270d   :  { %v3943_v62 = vmul.f32 %v3941_v29, %v6216_v33 }
0x270e   :  { %v5292_v11 = vpop.eup %5291 }
0x270f   :  { %v3942_v12 = vmul.f32 %v5292_v11, %v3928_v53  ;;  %v3945_v52 = vadd.f32 %v3943_v62, %v6220_v24 }
0x2711   :  { %v3944_v44 = vmul.f32 %v3942_v12, %v6216_v33 }
0x2713   :  { %v3946_v37 = vadd.f32 %v3944_v44, %v6220_v24 }
0x2715   :  { %v3947_v17 = vpack.c.bf16 %v3946_v37, %v3945_v52 }
0x2717   :  { %4934 = vmatmul.mubr.bf16.vlgmr.msra.gmra.mrb[96].mxu1 %v3947_v17 }
0x27ea   :  { %v4034_v1 = vpop.f32.mrb[96].mxu1 }
0x27eb   :  { %v4035_v0 = vadd.f32 %v4034_v1, %v3951_v49  ;;  %v4935_v14 = vpop.f32.mrb[97].mxu1 }
0x27ec   :  { %v4037_v3 = vpop.f32.mrb[98].mxu1 }
0x27ed   :  { %4041 = vst [vmem:[#allocation11] sm:$0xff] %v4035_v0  ;;  %v4038_v47 = vadd.f32 %v4037_v3, %v3951_v49  ;;  %v4936_v36 = vpop.f32.mrb[99].mxu1 }
0x27ef   :  { %4042 = vst [vmem:[#allocation11 + $0x8] sm:$0xff] %v4038_v47 }
0x27f0   :  { %5423 = shalt.err (!%p5420_p2)
}
0x27f1   :  { %s5424_s12 = scalar_lea.hbm %s6286_s5, 256 }
0x27f2   :  { %p5425_p3 = scmp.ne.s32.totalorder %s6286_s5, %s5424_s12  ;;  %p5428_p4 = scmp.lt.u32.totalorder %s5424_s12, %s6286_s5 }
0x27f4   :  { %p5430_p5 = pnand %p5428_p4, %p5425_p3 }
0x27f6   :  { %5433 = shalt.err (!%p5430_p5)
}
0x27f7   :  { %4054 = dma.vmem_to_hbm [thread:$0]  %s4049_s8, 256, %s6286_s5, [#allocation4], %s5444_s30, %s5444_s30, %s5445_s6  }
0x27f8   :  { %5440 = dma.done.wait [#allocation4], 256  }
0x27f9   :  { %5441 = vsyncadd [#allocation4], 4294967040 }
0x27fa   :  { %4058 = vsyncpa [#allocation3], 1 }
0x27fb   :  { %4059 = vsyncpa [#allocation6], 1 }
0x27fc   :  { %4060 = vsyncpa [#allocation9], 1 }
0x27fd   :  { %4061 = vsyncpa [#allocation4], 1 }

</bundles_post_ra>
